<compile_context>
chip_gen: v5e
topology: v5e:2x2
jax: 0.10.0
libtpu: 0.0.40
codegen_flags: <defaults>
</compile_context>

<pallas_src>
import math
import functools

import jax
import jax.numpy as jnp
from jax.experimental import pallas as pl
from jax.experimental.pallas import tpu as pltpu

EPS = 1e-5  # torch.nn.LayerNorm default eps


# ----------------------------- in-kernel helpers -----------------------------

def _ln(x, gamma, beta):
    # PyTorch LayerNorm: biased variance over last dim, then affine. rsqrt -> EUP.
    mean = jnp.mean(x, axis=-1, keepdims=True)
    var = jnp.mean(jnp.square(x - mean), axis=-1, keepdims=True)
    return (x - mean) * jax.lax.rsqrt(var + EPS) * gamma + beta


# --------------------------------- kernel ------------------------------------

def _make_attn_kernel(heads, dim_head, mm_dtype):
    """Fused PerceiverAttention for one batch block of Bb elements.

    Wrapper-side preprocessing (zero kernel cost):
      wq, wk already scaled by dim_head**-0.25, wkv split into wk/wv,
      all weights cast to `mm_dtype`, activations shipped as `mm_dtype`.
    """

    def kernel(x_ref, lat_ref, g1_ref, b1_ref, g2_ref, b2_ref,
               wq_ref, wk_ref, wv_ref, wo_ref, o_ref):
        Bb, n1, dim = x_ref.shape
        _, L, _ = lat_ref.shape
        inner = heads * dim_head

        # LayerNorm statistics in f32 (inputs arrive as bf16 to halve the DMA).
        x = x_ref[...].astype(jnp.float32).reshape(Bb * n1, dim)
        lat = lat_ref[...].astype(jnp.float32).reshape(Bb * L, dim)
        xn = _ln(x, g1_ref[...], b1_ref[...]).astype(mm_dtype)      # (Bb*n1, dim)
        latn = _ln(lat, g2_ref[...], b2_ref[...]).astype(mm_dtype)  # (Bb*L,  dim)

        # Full-width projections (softmax scale folded into wq / wk).
        # Cast to bf16 BEFORE any head-split relayout.
        q = jnp.dot(latn, wq_ref[...],
                    preferred_element_type=jnp.float32).astype(mm_dtype)   # (Bb*L,  inner)
        kx = jnp.dot(xn, wk_ref[...],
                     preferred_element_type=jnp.float32).astype(mm_dtype)  # (Bb*n1, inner)
        kl = jnp.dot(latn, wk_ref[...],
                     preferred_element_type=jnp.float32).astype(mm_dtype)  # (Bb*L,  inner)
        vx = jnp.dot(xn, wv_ref[...],
                     preferred_element_type=jnp.float32).astype(mm_dtype)  # (Bb*n1, inner)
        vl = jnp.dot(latn, wv_ref[...],
                     preferred_element_type=jnp.float32).astype(mm_dtype)  # (Bb*L,  inner)

        def to_heads(t, s):
            # (Bb*s, H*dh) -> (Bb*H, s, dh): single leading batch dim for the einsums.
            return jnp.transpose(t.reshape(Bb, s, heads, dim_head),
                                 (0, 2, 1, 3)).reshape(Bb * heads, s, dim_head)

        qh = to_heads(q, L)
        kxh = to_heads(kx, n1)
        klh = to_heads(kl, L)
        vxh = to_heads(vx, n1)
        vlh = to_heads(vl, L)

        # Scores against the two K blocks (x features, then latents); the torch
        # concat is never materialized -- softmax over [x | latents] is block-wise.
        sx = jnp.einsum("bld,bsd->bls", qh, kxh,
                        preferred_element_type=jnp.float32)   # (Bb*H, L, n1)
        sl = jnp.einsum("bld,bsd->bls", qh, klh,
                        preferred_element_type=jnp.float32)   # (Bb*H, L, L)

        m = jnp.maximum(jnp.max(sx, axis=-1, keepdims=True),
                        jnp.max(sl, axis=-1, keepdims=True))
        ex = jnp.exp(sx - m)
        el = jnp.exp(sl - m)
        inv = pl.reciprocal(jnp.sum(ex, axis=-1, keepdims=True)
                            + jnp.sum(el, axis=-1, keepdims=True), approx=True)

        o = (jnp.einsum("bls,bsd->bld", ex.astype(mm_dtype), vxh,
                        preferred_element_type=jnp.float32)
             + jnp.einsum("bls,bsd->bld", el.astype(mm_dtype), vlh,
                          preferred_element_type=jnp.float32)) * inv   # (Bb*H, L, dh) f32

        # Merge heads back (small bf16 relayout) and do ONE wide out-projection.
        o_flat = jnp.transpose(o.astype(mm_dtype).reshape(Bb, heads, L, dim_head),
                               (0, 2, 1, 3)).reshape(Bb * L, inner)    # (Bb*L, inner)
        out = jnp.dot(o_flat, wo_ref[...],
                      preferred_element_type=jnp.float32)              # (Bb*L, dim)
        o_ref[...] = out.reshape(Bb, L, dim).astype(o_ref.dtype)

    return kernel


# ------------------------------ pallas wrapper --------------------------------

def _largest_divisor_leq(n, cap):
    for d in range(min(n, cap), 0, -1):
        if n % d == 0:
            return d
    return 1


def pallas_perceiver_attention(x, latents, params, *, heads, dim_head,
                               mm_dtype=jnp.bfloat16, block_b=None,
                               single_buffer_consts=True):
    """x: (B, n1, dim) image features; latents: (B, L, dim). Returns (B, L, dim)."""
    B, n1, dim = x.shape
    Bl, L, dim_l = latents.shape
    assert Bl == B and dim_l == dim
    inner = heads * dim_head
    out_dtype = x.dtype

    scale = float(dim_head) ** -0.25  # 1/sqrt(sqrt(dim_head)), applied to q AND k

    # Trace-time weight preprocessing (fold scale, split kv, cast once).
    wq = (params["wq"] * scale).astype(mm_dtype)               # (dim, inner)
    wk = (params["wkv"][:, :inner] * scale).astype(mm_dtype)   # (dim, inner)
    wv = params["wkv"][:, inner:].astype(mm_dtype)             # (dim, inner)
    wo = params["wout"].astype(mm_dtype)                       # (inner, dim)

    g1 = params["g1"].reshape(1, dim).astype(jnp.float32)
    b1 = params["b1"].reshape(1, dim).astype(jnp.float32)
    g2 = params["g2"].reshape(1, dim).astype(jnp.float32)
    b2 = params["b2"].reshape(1, dim).astype(jnp.float32)

    # Ship activations as bf16 (halves the dominant x DMA); LN stats stay f32 in-kernel.
    x_in = x.astype(mm_dtype)
    lat_in = latents.astype(mm_dtype)

    # Batch blocking: Bb elements per grid step raises M on the latent-side matmuls.
    Bb = block_b if block_b is not None else _largest_divisor_leq(B, 8)
    assert B % Bb == 0

    const_kwargs = {}
    if single_buffer_consts:
        # Constant index_map => double buffering buys nothing; halve resident bytes.
        const_kwargs = dict(pipeline_mode=pl.Buffered(1))

    fixed2 = lambda i: (0, 0)

    in_specs = [
        pl.BlockSpec((Bb, n1, dim), lambda i: (i, 0, 0)),
        pl.BlockSpec((Bb, L, dim), lambda i: (i, 0, 0)),
        pl.BlockSpec((1, dim), fixed2, **const_kwargs),
        pl.BlockSpec((1, dim), fixed2, **const_kwargs),
        pl.BlockSpec((1, dim), fixed2, **const_kwargs),
        pl.BlockSpec((1, dim), fixed2, **const_kwargs),
        pl.BlockSpec((dim, inner), fixed2, **const_kwargs),
        pl.BlockSpec((dim, inner), fixed2, **const_kwargs),
        pl.BlockSpec((dim, inner), fixed2, **const_kwargs),
        pl.BlockSpec((inner, dim), fixed2, **const_kwargs),
    ]

    # VMEM budget: resident weights + double-buffered activation blocks + f32 temps,
    # with headroom; capped at 56 MiB so it leaves scratch room on v7x (64 MiB/TC).
    mm_b = jnp.dtype(mm_dtype).itemsize
    out_b = jnp.dtype(out_dtype).itemsize
    wbuf = 1 if single_buffer_consts else 2
    weight_bytes = wbuf * 4 * dim * inner * mm_b
    act_bytes = 2 * (Bb * (n1 + L) * dim * mm_b + Bb * L * dim * out_b)
    tmp_bytes = (Bb * (n1 + L) * dim * 4
                 + (3 * Bb * L + 2 * Bb * n1) * inner * (4 + 2)
                 + 3 * Bb * heads * L * (n1 + L) * 4
                 + Bb * heads * L * dim_head * (4 + 2)
                 + Bb * L * (inner * 2 + dim * 4))
    vmem_limit = int(min(max(2 * (weight_bytes + act_bytes + tmp_bytes),
                             32 << 20), 56 << 20))

    kern = _make_attn_kernel(heads, dim_head, mm_dtype)
    return pl.pallas_call(
        kern,
        out_shape=jax.ShapeDtypeStruct((B, L, dim), out_dtype),
        grid=(B // Bb,),
        in_specs=in_specs,
        out_specs=pl.BlockSpec((Bb, L, dim), lambda i: (i, 0, 0)),
        compiler_params=pltpu.CompilerParams(
            dimension_semantics=("parallel",),
            vmem_limit_bytes=vmem_limit),
    )(x_in, lat_in, g1, b1, g2, b2, wq, wk, wv, wo)


# ------------------------------ parameter setup -------------------------------

def init_perceiver_attention_params(key, *, dim, heads, dim_head):
    inner = heads * dim_head
    kq, kkv, ko = jax.random.split(key, 3)

    def linear_w(k, fan_in, fan_out):  # nn.Linear default-ish init, stored (in, out)
        bound = 1.0 / math.sqrt(fan_in)
        return jax.random.uniform(k, (fan_in, fan_out), jnp.float32, -bound, bound)

    return {
        "g1": jnp.ones((dim,), jnp.float32), "b1": jnp.zeros((dim,), jnp.float32),
        "g2": jnp.ones((dim,), jnp.float32), "b2": jnp.zeros((dim,), jnp.float32),
        "wq": linear_w(kq, dim, inner),
        "wkv": linear_w(kkv, dim, 2 * inner),
        "wout": linear_w(ko, inner, dim),
    }


# ---------------------- pure-JAX f32 reference (PyTorch spec) -----------------

def perceiver_attention_ref(x, latents, p, *, heads, dim_head):
    def ln(t, g, b):
        mu = jnp.mean(t, axis=-1, keepdims=True)
        var = jnp.mean(jnp.square(t - mu), axis=-1, keepdims=True)
        return (t - mu) / jnp.sqrt(var + EPS) * g + b

    xn = ln(x, p["g1"], p["b1"])
    latn = ln(latents, p["g2"], p["b2"])
    b, l, _ = latn.shape
    inner = heads * dim_head

    q = latn @ p["wq"]
    kv = jnp.concatenate([xn, latn], axis=1) @ p["wkv"]
    k, v = kv[..., :inner], kv[..., inner:]

    def rt(t):  # reshape_tensor
        bs, n, _ = t.shape
        return t.reshape(bs, n, heads, -1).transpose(0, 2, 1, 3)

    qh, kh, vh = rt(q), rt(k), rt(v)
    scale = 1.0 / math.sqrt(math.sqrt(dim_head))
    w = (qh * scale) @ jnp.swapaxes(kh * scale, -2, -1)
    w = jax.nn.softmax(w, axis=-1)
    o = w @ vh
    o = o.transpose(0, 2, 1, 3).reshape(b, l, inner)
    return o @ p["wout"]


# ----------------------------------- main --------------------------------------

if __name__ == "__main__":
    # Small config consistent with the module (b, n1, D) / (b, n2, D).
    B, N1, L = 2, 8, 8
    DIM, HEADS, DIM_HEAD = 64, 4, 16

    key = jax.random.PRNGKey(0)
    pkey, xkey, lkey = jax.random.split(key, 3)

    params = init_perceiver_attention_params(pkey, dim=DIM, heads=HEADS,
                                             dim_head=DIM_HEAD)
    x = jax.random.normal(xkey, (B, N1, DIM), jnp.float32)
    latents = jax.random.normal(lkey, (B, L, DIM), jnp.float32)

    fwd = jax.jit(functools.partial(pallas_perceiver_attention,
                                    heads=HEADS, dim_head=DIM_HEAD))
    try:
        out = jax.block_until_ready(fwd(x, latents, params))
    except Exception:
        # Fallback if this JAX build rejects pipeline_mode=pl.Buffered(1) for
        # single-buffered constant operands; everything else is unchanged.
        fwd = jax.jit(functools.partial(pallas_perceiver_attention,
                                        heads=HEADS, dim_head=DIM_HEAD,
                                        single_buffer_consts=False))
        out = jax.block_until_ready(fwd(x, latents, params))

    assert out.shape == (B, L, DIM), out.shape
    assert bool(jnp.all(jnp.isfinite(out)))

    # bf16 inputs/matmuls + approx reciprocal -> compare to f32 reference with tolerance.
    ref = perceiver_attention_ref(x, latents, params, heads=HEADS, dim_head=DIM_HEAD)
    max_err = float(jnp.max(jnp.abs(out - ref)))
    assert max_err < 5e-2, f"max abs err {max_err}"

    print("KERNEL_OK")
</pallas_src>

<mosaic_0001>
module attributes {stable_mosaic.version = 11 : i64} {
  func.func @kernel(%arg0: i32, %arg1: memref<2x8x64xbf16, #tpu.memory_space<vmem>>, %arg2: memref<2x8x64xbf16, #tpu.memory_space<vmem>>, %arg3: memref<1x64xf32, #tpu.memory_space<vmem>>, %arg4: memref<1x64xf32, #tpu.memory_space<vmem>>, %arg5: memref<1x64xf32, #tpu.memory_space<vmem>>, %arg6: memref<1x64xf32, #tpu.memory_space<vmem>>, %arg7: memref<64x64xbf16, #tpu.memory_space<vmem>>, %arg8: memref<64x64xbf16, #tpu.memory_space<vmem>>, %arg9: memref<64x64xbf16, #tpu.memory_space<vmem>>, %arg10: memref<64x64xbf16, #tpu.memory_space<vmem>>, %arg11: memref<2x8x64xf32, #tpu.memory_space<vmem>>) attributes {dimension_semantics = [#tpu.dimension_semantics<parallel>], iteration_bounds = array<i64: 1>, scalar_prefetch = 0 : i64, scratch_operands = 0 : i64, tpu.core_type = #tpu.core_type<tc>, window_params = [{transform_indices = @transform_0, window_bounds = array<i64: 2, 8, 64>}, {transform_indices = @transform_1, window_bounds = array<i64: 2, 8, 64>}, {pipeline_mode = #tpu.pipeline_mode<synchronous>, transform_indices = @transform_2, window_bounds = array<i64: 1, 64>}, {pipeline_mode = #tpu.pipeline_mode<synchronous>, transform_indices = @transform_3, window_bounds = array<i64: 1, 64>}, {pipeline_mode = #tpu.pipeline_mode<synchronous>, transform_indices = @transform_4, window_bounds = array<i64: 1, 64>}, {pipeline_mode = #tpu.pipeline_mode<synchronous>, transform_indices = @transform_5, window_bounds = array<i64: 1, 64>}, {pipeline_mode = #tpu.pipeline_mode<synchronous>, transform_indices = @transform_6, window_bounds = array<i64: 64, 64>}, {pipeline_mode = #tpu.pipeline_mode<synchronous>, transform_indices = @transform_7, window_bounds = array<i64: 64, 64>}, {pipeline_mode = #tpu.pipeline_mode<synchronous>, transform_indices = @transform_8, window_bounds = array<i64: 64, 64>}, {pipeline_mode = #tpu.pipeline_mode<synchronous>, transform_indices = @transform_9, window_bounds = array<i64: 64, 64>}, {transform_indices = @transform_10, window_bounds = array<i64: 2, 8, 64>}]} {
    %c0 = arith.constant 0 : index
    %c0_0 = arith.constant 0 : index
    %c0_1 = arith.constant 0 : index
    %0 = vector.load %arg1[%c0, %c0_0, %c0_1] : memref<2x8x64xbf16, #tpu.memory_space<vmem>>, vector<2x8x64xbf16>
    %1 = arith.extf %0 : vector<2x8x64xbf16> to vector<2x8x64xf32>
    %2 = vector.shape_cast %1 : vector<2x8x64xf32> to vector<16x64xf32>
    %c0_2 = arith.constant 0 : index
    %c0_3 = arith.constant 0 : index
    %c0_4 = arith.constant 0 : index
    %3 = vector.load %arg2[%c0_2, %c0_3, %c0_4] : memref<2x8x64xbf16, #tpu.memory_space<vmem>>, vector<2x8x64xbf16>
    %4 = arith.extf %3 : vector<2x8x64xbf16> to vector<2x8x64xf32>
    %5 = vector.shape_cast %4 : vector<2x8x64xf32> to vector<16x64xf32>
    %c0_5 = arith.constant 0 : index
    %c0_6 = arith.constant 0 : index
    %6 = vector.load %arg3[%c0_5, %c0_6] : memref<1x64xf32, #tpu.memory_space<vmem>>, vector<1x64xf32>
    %c0_7 = arith.constant 0 : index
    %c0_8 = arith.constant 0 : index
    %7 = vector.load %arg4[%c0_7, %c0_8] : memref<1x64xf32, #tpu.memory_space<vmem>>, vector<1x64xf32>
    %cst = arith.constant dense<0.000000e+00> : vector<16xf32>
    %8 = vector.multi_reduction <add>, %2, %cst [1] : vector<16x64xf32> to vector<16xf32>
    %9 = vector.shape_cast %8 : vector<16xf32> to vector<16x1xf32>
    %cst_9 = arith.constant 6.400000e+01 : f32
    %10 = vector.broadcast %cst_9 : f32 to vector<16x1xf32>
    %11 = arith.divf %9, %10 : vector<16x1xf32>
    %12 = vector.broadcast %11 : vector<16x1xf32> to vector<16x64xf32>
    %13 = arith.subf %2, %12 : vector<16x64xf32>
    %14 = arith.mulf %13, %13 : vector<16x64xf32>
    %cst_10 = arith.constant dense<0.000000e+00> : vector<16xf32>
    %15 = vector.multi_reduction <add>, %14, %cst_10 [1] : vector<16x64xf32> to vector<16xf32>
    %16 = vector.shape_cast %15 : vector<16xf32> to vector<16x1xf32>
    %cst_11 = arith.constant 6.400000e+01 : f32
    %17 = vector.broadcast %cst_11 : f32 to vector<16x1xf32>
    %18 = arith.divf %16, %17 : vector<16x1xf32>
    %19 = vector.broadcast %11 : vector<16x1xf32> to vector<16x64xf32>
    %20 = arith.subf %2, %19 : vector<16x64xf32>
    %cst_12 = arith.constant 9.99999974E-6 : f32
    %21 = vector.broadcast %cst_12 : f32 to vector<16x1xf32>
    %22 = arith.addf %18, %21 : vector<16x1xf32>
    %23 = math.rsqrt %22 : vector<16x1xf32>
    %24 = vector.broadcast %23 : vector<16x1xf32> to vector<16x64xf32>
    %25 = arith.mulf %20, %24 : vector<16x64xf32>
    %26 = vector.broadcast %6 : vector<1x64xf32> to vector<16x64xf32>
    %27 = arith.mulf %25, %26 : vector<16x64xf32>
    %28 = vector.broadcast %7 : vector<1x64xf32> to vector<16x64xf32>
    %29 = arith.addf %27, %28 : vector<16x64xf32>
    %30 = arith.truncf %29 : vector<16x64xf32> to vector<16x64xbf16>
    %c0_13 = arith.constant 0 : index
    %c0_14 = arith.constant 0 : index
    %31 = vector.load %arg5[%c0_13, %c0_14] : memref<1x64xf32, #tpu.memory_space<vmem>>, vector<1x64xf32>
    %c0_15 = arith.constant 0 : index
    %c0_16 = arith.constant 0 : index
    %32 = vector.load %arg6[%c0_15, %c0_16] : memref<1x64xf32, #tpu.memory_space<vmem>>, vector<1x64xf32>
    %cst_17 = arith.constant dense<0.000000e+00> : vector<16xf32>
    %33 = vector.multi_reduction <add>, %5, %cst_17 [1] : vector<16x64xf32> to vector<16xf32>
    %34 = vector.shape_cast %33 : vector<16xf32> to vector<16x1xf32>
    %cst_18 = arith.constant 6.400000e+01 : f32
    %35 = vector.broadcast %cst_18 : f32 to vector<16x1xf32>
    %36 = arith.divf %34, %35 : vector<16x1xf32>
    %37 = vector.broadcast %36 : vector<16x1xf32> to vector<16x64xf32>
    %38 = arith.subf %5, %37 : vector<16x64xf32>
    %39 = arith.mulf %38, %38 : vector<16x64xf32>
    %cst_19 = arith.constant dense<0.000000e+00> : vector<16xf32>
    %40 = vector.multi_reduction <add>, %39, %cst_19 [1] : vector<16x64xf32> to vector<16xf32>
    %41 = vector.shape_cast %40 : vector<16xf32> to vector<16x1xf32>
    %cst_20 = arith.constant 6.400000e+01 : f32
    %42 = vector.broadcast %cst_20 : f32 to vector<16x1xf32>
    %43 = arith.divf %41, %42 : vector<16x1xf32>
    %44 = vector.broadcast %36 : vector<16x1xf32> to vector<16x64xf32>
    %45 = arith.subf %5, %44 : vector<16x64xf32>
    %cst_21 = arith.constant 9.99999974E-6 : f32
    %46 = vector.broadcast %cst_21 : f32 to vector<16x1xf32>
    %47 = arith.addf %43, %46 : vector<16x1xf32>
    %48 = math.rsqrt %47 : vector<16x1xf32>
    %49 = vector.broadcast %48 : vector<16x1xf32> to vector<16x64xf32>
    %50 = arith.mulf %45, %49 : vector<16x64xf32>
    %51 = vector.broadcast %31 : vector<1x64xf32> to vector<16x64xf32>
    %52 = arith.mulf %50, %51 : vector<16x64xf32>
    %53 = vector.broadcast %32 : vector<1x64xf32> to vector<16x64xf32>
    %54 = arith.addf %52, %53 : vector<16x64xf32>
    %55 = arith.truncf %54 : vector<16x64xf32> to vector<16x64xbf16>
    %c0_22 = arith.constant 0 : index
    %c0_23 = arith.constant 0 : index
    %56 = vector.load %arg7[%c0_22, %c0_23] : memref<64x64xbf16, #tpu.memory_space<vmem>>, vector<64x64xbf16>
    %cst_24 = arith.constant dense<0.000000e+00> : vector<16x64xf32>
    %57 = tpu.matmul %55, %56, %cst_24 {dimension_numbers = #tpu.dot_dimension_numbers<[1], [0], [0], [1], [0, 0, 1, 1], [], []>} : vector<16x64xbf16>, vector<64x64xbf16>, vector<16x64xf32> -> vector<16x64xf32>
    %58 = arith.truncf %57 : vector<16x64xf32> to vector<16x64xbf16>
    %c0_25 = arith.constant 0 : index
    %c0_26 = arith.constant 0 : index
    %59 = vector.load %arg8[%c0_25, %c0_26] : memref<64x64xbf16, #tpu.memory_space<vmem>>, vector<64x64xbf16>
    %cst_27 = arith.constant dense<0.000000e+00> : vector<16x64xf32>
    %60 = tpu.matmul %30, %59, %cst_27 {dimension_numbers = #tpu.dot_dimension_numbers<[1], [0], [0], [1], [0, 0, 1, 1], [], []>} : vector<16x64xbf16>, vector<64x64xbf16>, vector<16x64xf32> -> vector<16x64xf32>
    %61 = arith.truncf %60 : vector<16x64xf32> to vector<16x64xbf16>
    %c0_28 = arith.constant 0 : index
    %c0_29 = arith.constant 0 : index
    %62 = vector.load %arg8[%c0_28, %c0_29] : memref<64x64xbf16, #tpu.memory_space<vmem>>, vector<64x64xbf16>
    %cst_30 = arith.constant dense<0.000000e+00> : vector<16x64xf32>
    %63 = tpu.matmul %55, %62, %cst_30 {dimension_numbers = #tpu.dot_dimension_numbers<[1], [0], [0], [1], [0, 0, 1, 1], [], []>} : vector<16x64xbf16>, vector<64x64xbf16>, vector<16x64xf32> -> vector<16x64xf32>
    %64 = arith.truncf %63 : vector<16x64xf32> to vector<16x64xbf16>
    %c0_31 = arith.constant 0 : index
    %c0_32 = arith.constant 0 : index
    %65 = vector.load %arg9[%c0_31, %c0_32] : memref<64x64xbf16, #tpu.memory_space<vmem>>, vector<64x64xbf16>
    %cst_33 = arith.constant dense<0.000000e+00> : vector<16x64xf32>
    %66 = tpu.matmul %30, %65, %cst_33 {dimension_numbers = #tpu.dot_dimension_numbers<[1], [0], [0], [1], [0, 0, 1, 1], [], []>} : vector<16x64xbf16>, vector<64x64xbf16>, vector<16x64xf32> -> vector<16x64xf32>
    %67 = arith.truncf %66 : vector<16x64xf32> to vector<16x64xbf16>
    %c0_34 = arith.constant 0 : index
    %c0_35 = arith.constant 0 : index
    %68 = vector.load %arg9[%c0_34, %c0_35] : memref<64x64xbf16, #tpu.memory_space<vmem>>, vector<64x64xbf16>
    %cst_36 = arith.constant dense<0.000000e+00> : vector<16x64xf32>
    %69 = tpu.matmul %55, %68, %cst_36 {dimension_numbers = #tpu.dot_dimension_numbers<[1], [0], [0], [1], [0, 0, 1, 1], [], []>} : vector<16x64xbf16>, vector<64x64xbf16>, vector<16x64xf32> -> vector<16x64xf32>
    %70 = arith.truncf %69 : vector<16x64xf32> to vector<16x64xbf16>
    %71 = vector.shape_cast %58 : vector<16x64xbf16> to vector<2x8x4x16xbf16>
    %72 = tpu.transpose %71, [0, 2, 1, 3] : vector<2x8x4x16xbf16> -> vector<2x4x8x16xbf16>
    %73 = vector.shape_cast %72 : vector<2x4x8x16xbf16> to vector<8x8x16xbf16>
    %74 = vector.shape_cast %61 : vector<16x64xbf16> to vector<2x8x4x16xbf16>
    %75 = tpu.transpose %74, [0, 2, 1, 3] : vector<2x8x4x16xbf16> -> vector<2x4x8x16xbf16>
    %76 = vector.shape_cast %75 : vector<2x4x8x16xbf16> to vector<8x8x16xbf16>
    %77 = vector.shape_cast %64 : vector<16x64xbf16> to vector<2x8x4x16xbf16>
    %78 = tpu.transpose %77, [0, 2, 1, 3] : vector<2x8x4x16xbf16> -> vector<2x4x8x16xbf16>
    %79 = vector.shape_cast %78 : vector<2x4x8x16xbf16> to vector<8x8x16xbf16>
    %80 = vector.shape_cast %67 : vector<16x64xbf16> to vector<2x8x4x16xbf16>
    %81 = tpu.transpose %80, [0, 2, 1, 3] : vector<2x8x4x16xbf16> -> vector<2x4x8x16xbf16>
    %82 = vector.shape_cast %81 : vector<2x4x8x16xbf16> to vector<8x8x16xbf16>
    %83 = vector.shape_cast %70 : vector<16x64xbf16> to vector<2x8x4x16xbf16>
    %84 = tpu.transpose %83, [0, 2, 1, 3] : vector<2x8x4x16xbf16> -> vector<2x4x8x16xbf16>
    %85 = vector.shape_cast %84 : vector<2x4x8x16xbf16> to vector<8x8x16xbf16>
    "tpu.trace_start"() <{level = 10 : i32, message = "bld,bsd->bls"}> : () -> ()
    %cst_37 = arith.constant dense<0.000000e+00> : vector<8x8x8xf32>
    %86 = tpu.matmul %73, %76, %cst_37 {dimension_numbers = #tpu.dot_dimension_numbers<[2], [2], [1], [1], [0, 0, 0, 1, 1, 1], [0], [0]>} : vector<8x8x16xbf16>, vector<8x8x16xbf16>, vector<8x8x8xf32> -> vector<8x8x8xf32>
    %cst_38 = arith.constant dense<0.000000e+00> : vector<8x8x8xf32>
    %87 = tpu.matmul %73, %79, %cst_38 {dimension_numbers = #tpu.dot_dimension_numbers<[2], [2], [1], [1], [0, 0, 0, 1, 1, 1], [0], [0]>} : vector<8x8x16xbf16>, vector<8x8x16xbf16>, vector<8x8x8xf32> -> vector<8x8x8xf32>
    "tpu.trace_stop"() : () -> ()
    %cst_39 = arith.constant dense<0xFF800000> : vector<8x8xf32>
    %88 = vector.multi_reduction <maximumf>, %86, %cst_39 [2] : vector<8x8x8xf32> to vector<8x8xf32>
    %89 = vector.shape_cast %88 : vector<8x8xf32> to vector<8x8x1xf32>
    %cst_40 = arith.constant dense<0xFF800000> : vector<8x8xf32>
    %90 = vector.multi_reduction <maximumf>, %87, %cst_40 [2] : vector<8x8x8xf32> to vector<8x8xf32>
    %91 = vector.shape_cast %90 : vector<8x8xf32> to vector<8x8x1xf32>
    %92 = arith.maximumf %89, %91 : vector<8x8x1xf32>
    %93 = vector.broadcast %92 : vector<8x8x1xf32> to vector<8x8x8xf32>
    %94 = arith.subf %86, %93 : vector<8x8x8xf32>
    %95 = math.exp %94 : vector<8x8x8xf32>
    %96 = vector.broadcast %92 : vector<8x8x1xf32> to vector<8x8x8xf32>
    %97 = arith.subf %87, %96 : vector<8x8x8xf32>
    %98 = math.exp %97 : vector<8x8x8xf32>
    %cst_41 = arith.constant dense<0.000000e+00> : vector<8x8xf32>
    %99 = vector.multi_reduction <add>, %95, %cst_41 [2] : vector<8x8x8xf32> to vector<8x8xf32>
    %100 = vector.shape_cast %99 : vector<8x8xf32> to vector<8x8x1xf32>
    %cst_42 = arith.constant dense<0.000000e+00> : vector<8x8xf32>
    %101 = vector.multi_reduction <add>, %98, %cst_42 [2] : vector<8x8x8xf32> to vector<8x8xf32>
    %102 = vector.shape_cast %101 : vector<8x8xf32> to vector<8x8x1xf32>
    %103 = arith.addf %100, %102 : vector<8x8x1xf32>
    %104 = tpu.reciprocal %103 {approx = true} : vector<8x8x1xf32> -> vector<8x8x1xf32>
    %105 = arith.truncf %95 : vector<8x8x8xf32> to vector<8x8x8xbf16>
    "tpu.trace_start"() <{level = 10 : i32, message = "bls,bsd->bld"}> : () -> ()
    %cst_43 = arith.constant dense<0.000000e+00> : vector<8x8x16xf32>
    %106 = tpu.matmul %105, %82, %cst_43 {dimension_numbers = #tpu.dot_dimension_numbers<[2], [1], [1], [2], [0, 0, 0, 1, 1, 2], [0], [0]>} : vector<8x8x8xbf16>, vector<8x8x16xbf16>, vector<8x8x16xf32> -> vector<8x8x16xf32>
    "tpu.trace_stop"() : () -> ()
    %107 = arith.truncf %98 : vector<8x8x8xf32> to vector<8x8x8xbf16>
    "tpu.trace_start"() <{level = 10 : i32, message = "bls,bsd->bld"}> : () -> ()
    %cst_44 = arith.constant dense<0.000000e+00> : vector<8x8x16xf32>
    %108 = tpu.matmul %107, %85, %cst_44 {dimension_numbers = #tpu.dot_dimension_numbers<[2], [1], [1], [2], [0, 0, 0, 1, 1, 2], [0], [0]>} : vector<8x8x8xbf16>, vector<8x8x16xbf16>, vector<8x8x16xf32> -> vector<8x8x16xf32>
    "tpu.trace_stop"() : () -> ()
    %109 = arith.addf %106, %108 : vector<8x8x16xf32>
    %110 = vector.broadcast %104 : vector<8x8x1xf32> to vector<8x8x16xf32>
    %111 = arith.mulf %109, %110 : vector<8x8x16xf32>
    %112 = arith.truncf %111 : vector<8x8x16xf32> to vector<8x8x16xbf16>
    %113 = vector.shape_cast %112 : vector<8x8x16xbf16> to vector<2x4x8x16xbf16>
    %114 = tpu.transpose %113, [0, 2, 1, 3] : vector<2x4x8x16xbf16> -> vector<2x8x4x16xbf16>
    %115 = vector.shape_cast %114 : vector<2x8x4x16xbf16> to vector<16x64xbf16>
    %c0_45 = arith.constant 0 : index
    %c0_46 = arith.constant 0 : index
    %116 = vector.load %arg10[%c0_45, %c0_46] : memref<64x64xbf16, #tpu.memory_space<vmem>>, vector<64x64xbf16>
    %cst_47 = arith.constant dense<0.000000e+00> : vector<16x64xf32>
    %117 = tpu.matmul %115, %116, %cst_47 {dimension_numbers = #tpu.dot_dimension_numbers<[1], [0], [0], [1], [0, 0, 1, 1], [], []>} : vector<16x64xbf16>, vector<64x64xbf16>, vector<16x64xf32> -> vector<16x64xf32>
    %118 = vector.shape_cast %117 : vector<16x64xf32> to vector<2x8x64xf32>
    %c0_48 = arith.constant 0 : index
    %c0_49 = arith.constant 0 : index
    %c0_50 = arith.constant 0 : index
    %119 = vector.load %arg11[%c0_48, %c0_49, %c0_50] : memref<2x8x64xf32, #tpu.memory_space<vmem>>, vector<2x8x64xf32>
    tpu.vector_store %arg11[%c0_48, %c0_49, %c0_50], %118 {strides = array<i32>} : memref<2x8x64xf32, #tpu.memory_space<vmem>>, vector<2x8x64xf32>,
    return
  }
  func.func @transform_0(%arg0: i32) -> (i32, i32, i32) {
    %c0_i32 = arith.constant 0 : i32
    %c0_i32_0 = arith.constant 0 : i32
    %c0_i32_1 = arith.constant 0 : i32
    return %arg0, %c0_i32, %c0_i32_0 : i32, i32, i32
  }
  func.func @transform_1(%arg0: i32) -> (i32, i32, i32) {
    %c0_i32 = arith.constant 0 : i32
    %c0_i32_0 = arith.constant 0 : i32
    %c0_i32_1 = arith.constant 0 : i32
    return %arg0, %c0_i32, %c0_i32_0 : i32, i32, i32
  }
  func.func @transform_2(%arg0: i32) -> (i32, i32) {
    %c0_i32 = arith.constant 0 : i32
    %c0_i32_0 = arith.constant 0 : i32
    %c0_i32_1 = arith.constant 0 : i32
    return %c0_i32, %c0_i32_0 : i32, i32
  }
  func.func @transform_3(%arg0: i32) -> (i32, i32) {
    %c0_i32 = arith.constant 0 : i32
    %c0_i32_0 = arith.constant 0 : i32
    %c0_i32_1 = arith.constant 0 : i32
    return %c0_i32, %c0_i32_0 : i32, i32
  }
  func.func @transform_4(%arg0: i32) -> (i32, i32) {
    %c0_i32 = arith.constant 0 : i32
    %c0_i32_0 = arith.constant 0 : i32
    %c0_i32_1 = arith.constant 0 : i32
    return %c0_i32, %c0_i32_0 : i32, i32
  }
  func.func @transform_5(%arg0: i32) -> (i32, i32) {
    %c0_i32 = arith.constant 0 : i32
    %c0_i32_0 = arith.constant 0 : i32
    %c0_i32_1 = arith.constant 0 : i32
    return %c0_i32, %c0_i32_0 : i32, i32
  }
  func.func @transform_6(%arg0: i32) -> (i32, i32) {
    %c0_i32 = arith.constant 0 : i32
    %c0_i32_0 = arith.constant 0 : i32
    %c0_i32_1 = arith.constant 0 : i32
    return %c0_i32, %c0_i32_0 : i32, i32
  }
  func.func @transform_7(%arg0: i32) -> (i32, i32) {
    %c0_i32 = arith.constant 0 : i32
    %c0_i32_0 = arith.constant 0 : i32
    %c0_i32_1 = arith.constant 0 : i32
    return %c0_i32, %c0_i32_0 : i32, i32
  }
  func.func @transform_8(%arg0: i32) -> (i32, i32) {
    %c0_i32 = arith.constant 0 : i32
    %c0_i32_0 = arith.constant 0 : i32
    %c0_i32_1 = arith.constant 0 : i32
    return %c0_i32, %c0_i32_0 : i32, i32
  }
  func.func @transform_9(%arg0: i32) -> (i32, i32) {
    %c0_i32 = arith.constant 0 : i32
    %c0_i32_0 = arith.constant 0 : i32
    %c0_i32_1 = arith.constant 0 : i32
    return %c0_i32, %c0_i32_0 : i32, i32
  }
  func.func @transform_10(%arg0: i32) -> (i32, i32, i32) {
    %c0_i32 = arith.constant 0 : i32
    %c0_i32_0 = arith.constant 0 : i32
    %c0_i32_1 = arith.constant 0 : i32
    return %arg0, %c0_i32, %c0_i32_0 : i32, i32, i32
  }
}

module attributes {stable_mosaic.version = 11 : i64} {
  func.func @kernel(%arg0: i32, %arg1: memref<2x8x64xbf16, #tpu.memory_space<vmem>>, %arg2: memref<2x8x64xbf16, #tpu.memory_space<vmem>>, %arg3: memref<1x64xf32, #tpu.memory_space<vmem>>, %arg4: memref<1x64xf32, #tpu.memory_space<vmem>>, %arg5: memref<1x64xf32, #tpu.memory_space<vmem>>, %arg6: memref<1x64xf32, #tpu.memory_space<vmem>>, %arg7: memref<64x64xbf16, #tpu.memory_space<vmem>>, %arg8: memref<64x64xbf16, #tpu.memory_space<vmem>>, %arg9: memref<64x64xbf16, #tpu.memory_space<vmem>>, %arg10: memref<64x64xbf16, #tpu.memory_space<vmem>>, %arg11: memref<2x8x64xf32, #tpu.memory_space<vmem>>) attributes {dimension_semantics = [#tpu.dimension_semantics<parallel>], iteration_bounds = array<i64: 1>, scalar_prefetch = 0 : i64, scratch_operands = 0 : i64, tpu.core_type = #tpu.core_type<tc>, window_params = [{transform_indices = @transform_0, window_bounds = array<i64: 2, 8, 64>}, {transform_indices = @transform_1, window_bounds = array<i64: 2, 8, 64>}, {pipeline_mode = #tpu.pipeline_mode<synchronous>, transform_indices = @transform_2, window_bounds = array<i64: 1, 64>}, {pipeline_mode = #tpu.pipeline_mode<synchronous>, transform_indices = @transform_3, window_bounds = array<i64: 1, 64>}, {pipeline_mode = #tpu.pipeline_mode<synchronous>, transform_indices = @transform_4, window_bounds = array<i64: 1, 64>}, {pipeline_mode = #tpu.pipeline_mode<synchronous>, transform_indices = @transform_5, window_bounds = array<i64: 1, 64>}, {pipeline_mode = #tpu.pipeline_mode<synchronous>, transform_indices = @transform_6, window_bounds = array<i64: 64, 64>}, {pipeline_mode = #tpu.pipeline_mode<synchronous>, transform_indices = @transform_7, window_bounds = array<i64: 64, 64>}, {pipeline_mode = #tpu.pipeline_mode<synchronous>, transform_indices = @transform_8, window_bounds = array<i64: 64, 64>}, {pipeline_mode = #tpu.pipeline_mode<synchronous>, transform_indices = @transform_9, window_bounds = array<i64: 64, 64>}, {transform_indices = @transform_10, window_bounds = array<i64: 2, 8, 64>}]} {
    %c0 = arith.constant 0 : index
    %c0_0 = arith.constant 0 : index
    %c0_1 = arith.constant 0 : index
    %0 = vector.load %arg1[%c0, %c0_0, %c0_1] : memref<2x8x64xbf16, #tpu.memory_space<vmem>>, vector<2x8x64xbf16>
    %1 = arith.extf %0 : vector<2x8x64xbf16> to vector<2x8x64xf32>
    %2 = vector.shape_cast %1 : vector<2x8x64xf32> to vector<16x64xf32>
    %c0_2 = arith.constant 0 : index
    %c0_3 = arith.constant 0 : index
    %c0_4 = arith.constant 0 : index
    %3 = vector.load %arg2[%c0_2, %c0_3, %c0_4] : memref<2x8x64xbf16, #tpu.memory_space<vmem>>, vector<2x8x64xbf16>
    %4 = arith.extf %3 : vector<2x8x64xbf16> to vector<2x8x64xf32>
    %5 = vector.shape_cast %4 : vector<2x8x64xf32> to vector<16x64xf32>
    %c0_5 = arith.constant 0 : index
    %c0_6 = arith.constant 0 : index
    %6 = vector.load %arg3[%c0_5, %c0_6] : memref<1x64xf32, #tpu.memory_space<vmem>>, vector<1x64xf32>
    %c0_7 = arith.constant 0 : index
    %c0_8 = arith.constant 0 : index
    %7 = vector.load %arg4[%c0_7, %c0_8] : memref<1x64xf32, #tpu.memory_space<vmem>>, vector<1x64xf32>
    %cst = arith.constant dense<0.000000e+00> : vector<16xf32>
    %8 = vector.multi_reduction <add>, %2, %cst [1] : vector<16x64xf32> to vector<16xf32>
    %9 = vector.shape_cast %8 : vector<16xf32> to vector<16x1xf32>
    %cst_9 = arith.constant 6.400000e+01 : f32
    %10 = vector.broadcast %cst_9 : f32 to vector<16x1xf32>
    %11 = arith.divf %9, %10 : vector<16x1xf32>
    %12 = vector.broadcast %11 : vector<16x1xf32> to vector<16x64xf32>
    %13 = arith.subf %2, %12 : vector<16x64xf32>
    %14 = arith.mulf %13, %13 : vector<16x64xf32>
    %cst_10 = arith.constant dense<0.000000e+00> : vector<16xf32>
    %15 = vector.multi_reduction <add>, %14, %cst_10 [1] : vector<16x64xf32> to vector<16xf32>
    %16 = vector.shape_cast %15 : vector<16xf32> to vector<16x1xf32>
    %cst_11 = arith.constant 6.400000e+01 : f32
    %17 = vector.broadcast %cst_11 : f32 to vector<16x1xf32>
    %18 = arith.divf %16, %17 : vector<16x1xf32>
    %19 = vector.broadcast %11 : vector<16x1xf32> to vector<16x64xf32>
    %20 = arith.subf %2, %19 : vector<16x64xf32>
    %cst_12 = arith.constant 9.99999974E-6 : f32
    %21 = vector.broadcast %cst_12 : f32 to vector<16x1xf32>
    %22 = arith.addf %18, %21 : vector<16x1xf32>
    %23 = math.rsqrt %22 : vector<16x1xf32>
    %24 = vector.broadcast %23 : vector<16x1xf32> to vector<16x64xf32>
    %25 = arith.mulf %20, %24 : vector<16x64xf32>
    %26 = vector.broadcast %6 : vector<1x64xf32> to vector<16x64xf32>
    %27 = arith.mulf %25, %26 : vector<16x64xf32>
    %28 = vector.broadcast %7 : vector<1x64xf32> to vector<16x64xf32>
    %29 = arith.addf %27, %28 : vector<16x64xf32>
    %30 = arith.truncf %29 : vector<16x64xf32> to vector<16x64xbf16>
    %c0_13 = arith.constant 0 : index
    %c0_14 = arith.constant 0 : index
    %31 = vector.load %arg5[%c0_13, %c0_14] : memref<1x64xf32, #tpu.memory_space<vmem>>, vector<1x64xf32>
    %c0_15 = arith.constant 0 : index
    %c0_16 = arith.constant 0 : index
    %32 = vector.load %arg6[%c0_15, %c0_16] : memref<1x64xf32, #tpu.memory_space<vmem>>, vector<1x64xf32>
    %cst_17 = arith.constant dense<0.000000e+00> : vector<16xf32>
    %33 = vector.multi_reduction <add>, %5, %cst_17 [1] : vector<16x64xf32> to vector<16xf32>
    %34 = vector.shape_cast %33 : vector<16xf32> to vector<16x1xf32>
    %cst_18 = arith.constant 6.400000e+01 : f32
    %35 = vector.broadcast %cst_18 : f32 to vector<16x1xf32>
    %36 = arith.divf %34, %35 : vector<16x1xf32>
    %37 = vector.broadcast %36 : vector<16x1xf32> to vector<16x64xf32>
    %38 = arith.subf %5, %37 : vector<16x64xf32>
    %39 = arith.mulf %38, %38 : vector<16x64xf32>
    %cst_19 = arith.constant dense<0.000000e+00> : vector<16xf32>
    %40 = vector.multi_reduction <add>, %39, %cst_19 [1] : vector<16x64xf32> to vector<16xf32>
    %41 = vector.shape_cast %40 : vector<16xf32> to vector<16x1xf32>
    %cst_20 = arith.constant 6.400000e+01 : f32
    %42 = vector.broadcast %cst_20 : f32 to vector<16x1xf32>
    %43 = arith.divf %41, %42 : vector<16x1xf32>
    %44 = vector.broadcast %36 : vector<16x1xf32> to vector<16x64xf32>
    %45 = arith.subf %5, %44 : vector<16x64xf32>
    %cst_21 = arith.constant 9.99999974E-6 : f32
    %46 = vector.broadcast %cst_21 : f32 to vector<16x1xf32>
    %47 = arith.addf %43, %46 : vector<16x1xf32>
    %48 = math.rsqrt %47 : vector<16x1xf32>
    %49 = vector.broadcast %48 : vector<16x1xf32> to vector<16x64xf32>
    %50 = arith.mulf %45, %49 : vector<16x64xf32>
    %51 = vector.broadcast %31 : vector<1x64xf32> to vector<16x64xf32>
    %52 = arith.mulf %50, %51 : vector<16x64xf32>
    %53 = vector.broadcast %32 : vector<1x64xf32> to vector<16x64xf32>
    %54 = arith.addf %52, %53 : vector<16x64xf32>
    %55 = arith.truncf %54 : vector<16x64xf32> to vector<16x64xbf16>
    %c0_22 = arith.constant 0 : index
    %c0_23 = arith.constant 0 : index
    %56 = vector.load %arg7[%c0_22, %c0_23] : memref<64x64xbf16, #tpu.memory_space<vmem>>, vector<64x64xbf16>
    %cst_24 = arith.constant dense<0.000000e+00> : vector<16x64xf32>
    %57 = tpu.matmul %55, %56, %cst_24 {dimension_numbers = #tpu.dot_dimension_numbers<[1], [0], [0], [1], [0, 0, 1, 1], [], []>} : vector<16x64xbf16>, vector<64x64xbf16>, vector<16x64xf32> -> vector<16x64xf32>
    %58 = arith.truncf %57 : vector<16x64xf32> to vector<16x64xbf16>
    %c0_25 = arith.constant 0 : index
    %c0_26 = arith.constant 0 : index
    %59 = vector.load %arg8[%c0_25, %c0_26] : memref<64x64xbf16, #tpu.memory_space<vmem>>, vector<64x64xbf16>
    %cst_27 = arith.constant dense<0.000000e+00> : vector<16x64xf32>
    %60 = tpu.matmul %30, %59, %cst_27 {dimension_numbers = #tpu.dot_dimension_numbers<[1], [0], [0], [1], [0, 0, 1, 1], [], []>} : vector<16x64xbf16>, vector<64x64xbf16>, vector<16x64xf32> -> vector<16x64xf32>
    %61 = arith.truncf %60 : vector<16x64xf32> to vector<16x64xbf16>
    %c0_28 = arith.constant 0 : index
    %c0_29 = arith.constant 0 : index
    %62 = vector.load %arg8[%c0_28, %c0_29] : memref<64x64xbf16, #tpu.memory_space<vmem>>, vector<64x64xbf16>
    %cst_30 = arith.constant dense<0.000000e+00> : vector<16x64xf32>
    %63 = tpu.matmul %55, %62, %cst_30 {dimension_numbers = #tpu.dot_dimension_numbers<[1], [0], [0], [1], [0, 0, 1, 1], [], []>} : vector<16x64xbf16>, vector<64x64xbf16>, vector<16x64xf32> -> vector<16x64xf32>
    %64 = arith.truncf %63 : vector<16x64xf32> to vector<16x64xbf16>
    %c0_31 = arith.constant 0 : index
    %c0_32 = arith.constant 0 : index
    %65 = vector.load %arg9[%c0_31, %c0_32] : memref<64x64xbf16, #tpu.memory_space<vmem>>, vector<64x64xbf16>
    %cst_33 = arith.constant dense<0.000000e+00> : vector<16x64xf32>
    %66 = tpu.matmul %30, %65, %cst_33 {dimension_numbers = #tpu.dot_dimension_numbers<[1], [0], [0], [1], [0, 0, 1, 1], [], []>} : vector<16x64xbf16>, vector<64x64xbf16>, vector<16x64xf32> -> vector<16x64xf32>
    %67 = arith.truncf %66 : vector<16x64xf32> to vector<16x64xbf16>
    %c0_34 = arith.constant 0 : index
    %c0_35 = arith.constant 0 : index
    %68 = vector.load %arg9[%c0_34, %c0_35] : memref<64x64xbf16, #tpu.memory_space<vmem>>, vector<64x64xbf16>
    %cst_36 = arith.constant dense<0.000000e+00> : vector<16x64xf32>
    %69 = tpu.matmul %55, %68, %cst_36 {dimension_numbers = #tpu.dot_dimension_numbers<[1], [0], [0], [1], [0, 0, 1, 1], [], []>} : vector<16x64xbf16>, vector<64x64xbf16>, vector<16x64xf32> -> vector<16x64xf32>
    %70 = arith.truncf %69 : vector<16x64xf32> to vector<16x64xbf16>
    %71 = vector.shape_cast %58 : vector<16x64xbf16> to vector<2x8x4x16xbf16>
    %72 = tpu.transpose %71, [0, 2, 1, 3] : vector<2x8x4x16xbf16> -> vector<2x4x8x16xbf16>
    %73 = vector.shape_cast %72 : vector<2x4x8x16xbf16> to vector<8x8x16xbf16>
    %74 = vector.shape_cast %61 : vector<16x64xbf16> to vector<2x8x4x16xbf16>
    %75 = tpu.transpose %74, [0, 2, 1, 3] : vector<2x8x4x16xbf16> -> vector<2x4x8x16xbf16>
    %76 = vector.shape_cast %75 : vector<2x4x8x16xbf16> to vector<8x8x16xbf16>
    %77 = vector.shape_cast %64 : vector<16x64xbf16> to vector<2x8x4x16xbf16>
    %78 = tpu.transpose %77, [0, 2, 1, 3] : vector<2x8x4x16xbf16> -> vector<2x4x8x16xbf16>
    %79 = vector.shape_cast %78 : vector<2x4x8x16xbf16> to vector<8x8x16xbf16>
    %80 = vector.shape_cast %67 : vector<16x64xbf16> to vector<2x8x4x16xbf16>
    %81 = tpu.transpose %80, [0, 2, 1, 3] : vector<2x8x4x16xbf16> -> vector<2x4x8x16xbf16>
    %82 = vector.shape_cast %81 : vector<2x4x8x16xbf16> to vector<8x8x16xbf16>
    %83 = vector.shape_cast %70 : vector<16x64xbf16> to vector<2x8x4x16xbf16>
    %84 = tpu.transpose %83, [0, 2, 1, 3] : vector<2x8x4x16xbf16> -> vector<2x4x8x16xbf16>
    %85 = vector.shape_cast %84 : vector<2x4x8x16xbf16> to vector<8x8x16xbf16>
    "tpu.trace_start"() <{level = 10 : i32, message = "bld,bsd->bls"}> : () -> ()
    %cst_37 = arith.constant dense<0.000000e+00> : vector<8x8x8xf32>
    %86 = tpu.matmul %73, %76, %cst_37 {dimension_numbers = #tpu.dot_dimension_numbers<[2], [2], [1], [1], [0, 0, 0, 1, 1, 1], [0], [0]>} : vector<8x8x16xbf16>, vector<8x8x16xbf16>, vector<8x8x8xf32> -> vector<8x8x8xf32>
    %cst_38 = arith.constant dense<0.000000e+00> : vector<8x8x8xf32>
    %87 = tpu.matmul %73, %79, %cst_38 {dimension_numbers = #tpu.dot_dimension_numbers<[2], [2], [1], [1], [0, 0, 0, 1, 1, 1], [0], [0]>} : vector<8x8x16xbf16>, vector<8x8x16xbf16>, vector<8x8x8xf32> -> vector<8x8x8xf32>
    "tpu.trace_stop"() : () -> ()
    %cst_39 = arith.constant dense<0xFF800000> : vector<8x8xf32>
    %88 = vector.multi_reduction <maximumf>, %86, %cst_39 [2] : vector<8x8x8xf32> to vector<8x8xf32>
    %89 = vector.shape_cast %88 : vector<8x8xf32> to vector<8x8x1xf32>
    %cst_40 = arith.constant dense<0xFF800000> : vector<8x8xf32>
    %90 = vector.multi_reduction <maximumf>, %87, %cst_40 [2] : vector<8x8x8xf32> to vector<8x8xf32>
    %91 = vector.shape_cast %90 : vector<8x8xf32> to vector<8x8x1xf32>
    %92 = arith.maximumf %89, %91 : vector<8x8x1xf32>
    %93 = vector.broadcast %92 : vector<8x8x1xf32> to vector<8x8x8xf32>
    %94 = arith.subf %86, %93 : vector<8x8x8xf32>
    %95 = math.exp %94 : vector<8x8x8xf32>
    %96 = vector.broadcast %92 : vector<8x8x1xf32> to vector<8x8x8xf32>
    %97 = arith.subf %87, %96 : vector<8x8x8xf32>
    %98 = math.exp %97 : vector<8x8x8xf32>
    %cst_41 = arith.constant dense<0.000000e+00> : vector<8x8xf32>
    %99 = vector.multi_reduction <add>, %95, %cst_41 [2] : vector<8x8x8xf32> to vector<8x8xf32>
    %100 = vector.shape_cast %99 : vector<8x8xf32> to vector<8x8x1xf32>
    %cst_42 = arith.constant dense<0.000000e+00> : vector<8x8xf32>
    %101 = vector.multi_reduction <add>, %98, %cst_42 [2] : vector<8x8x8xf32> to vector<8x8xf32>
    %102 = vector.shape_cast %101 : vector<8x8xf32> to vector<8x8x1xf32>
    %103 = arith.addf %100, %102 : vector<8x8x1xf32>
    %104 = tpu.reciprocal %103 {approx = true} : vector<8x8x1xf32> -> vector<8x8x1xf32>
    %105 = arith.truncf %95 : vector<8x8x8xf32> to vector<8x8x8xbf16>
    "tpu.trace_start"() <{level = 10 : i32, message = "bls,bsd->bld"}> : () -> ()
    %cst_43 = arith.constant dense<0.000000e+00> : vector<8x8x16xf32>
    %106 = tpu.matmul %105, %82, %cst_43 {dimension_numbers = #tpu.dot_dimension_numbers<[2], [1], [1], [2], [0, 0, 0, 1, 1, 2], [0], [0]>} : vector<8x8x8xbf16>, vector<8x8x16xbf16>, vector<8x8x16xf32> -> vector<8x8x16xf32>
    "tpu.trace_stop"() : () -> ()
    %107 = arith.truncf %98 : vector<8x8x8xf32> to vector<8x8x8xbf16>
    "tpu.trace_start"() <{level = 10 : i32, message = "bls,bsd->bld"}> : () -> ()
    %cst_44 = arith.constant dense<0.000000e+00> : vector<8x8x16xf32>
    %108 = tpu.matmul %107, %85, %cst_44 {dimension_numbers = #tpu.dot_dimension_numbers<[2], [1], [1], [2], [0, 0, 0, 1, 1, 2], [0], [0]>} : vector<8x8x8xbf16>, vector<8x8x16xbf16>, vector<8x8x16xf32> -> vector<8x8x16xf32>
    "tpu.trace_stop"() : () -> ()
    %109 = arith.addf %106, %108 : vector<8x8x16xf32>
    %110 = vector.broadcast %104 : vector<8x8x1xf32> to vector<8x8x16xf32>
    %111 = arith.mulf %109, %110 : vector<8x8x16xf32>
    %112 = arith.truncf %111 : vector<8x8x16xf32> to vector<8x8x16xbf16>
    %113 = vector.shape_cast %112 : vector<8x8x16xbf16> to vector<2x4x8x16xbf16>
    %114 = tpu.transpose %113, [0, 2, 1, 3] : vector<2x4x8x16xbf16> -> vector<2x8x4x16xbf16>
    %115 = vector.shape_cast %114 : vector<2x8x4x16xbf16> to vector<16x64xbf16>
    %c0_45 = arith.constant 0 : index
    %c0_46 = arith.constant 0 : index
    %116 = vector.load %arg10[%c0_45, %c0_46] : memref<64x64xbf16, #tpu.memory_space<vmem>>, vector<64x64xbf16>
    %cst_47 = arith.constant dense<0.000000e+00> : vector<16x64xf32>
    %117 = tpu.matmul %115, %116, %cst_47 {dimension_numbers = #tpu.dot_dimension_numbers<[1], [0], [0], [1], [0, 0, 1, 1], [], []>} : vector<16x64xbf16>, vector<64x64xbf16>, vector<16x64xf32> -> vector<16x64xf32>
    %118 = vector.shape_cast %117 : vector<16x64xf32> to vector<2x8x64xf32>
    %c0_48 = arith.constant 0 : index
    %c0_49 = arith.constant 0 : index
    %c0_50 = arith.constant 0 : index
    %119 = vector.load %arg11[%c0_48, %c0_49, %c0_50] : memref<2x8x64xf32, #tpu.memory_space<vmem>>, vector<2x8x64xf32>
    tpu.vector_store %arg11[%c0_48, %c0_49, %c0_50], %118 {strides = array<i32>} : memref<2x8x64xf32, #tpu.memory_space<vmem>>, vector<2x8x64xf32>,
    return
  }
  func.func @transform_0(%arg0: i32) -> (i32, i32, i32) {
    %c0_i32 = arith.constant 0 : i32
    %c0_i32_0 = arith.constant 0 : i32
    %c0_i32_1 = arith.constant 0 : i32
    return %arg0, %c0_i32, %c0_i32_0 : i32, i32, i32
  }
  func.func @transform_1(%arg0: i32) -> (i32, i32, i32) {
    %c0_i32 = arith.constant 0 : i32
    %c0_i32_0 = arith.constant 0 : i32
    %c0_i32_1 = arith.constant 0 : i32
    return %arg0, %c0_i32, %c0_i32_0 : i32, i32, i32
  }
  func.func @transform_2(%arg0: i32) -> (i32, i32) {
    %c0_i32 = arith.constant 0 : i32
    %c0_i32_0 = arith.constant 0 : i32
    %c0_i32_1 = arith.constant 0 : i32
    return %c0_i32, %c0_i32_0 : i32, i32
  }
  func.func @transform_3(%arg0: i32) -> (i32, i32) {
    %c0_i32 = arith.constant 0 : i32
    %c0_i32_0 = arith.constant 0 : i32
    %c0_i32_1 = arith.constant 0 : i32
    return %c0_i32, %c0_i32_0 : i32, i32
  }
  func.func @transform_4(%arg0: i32) -> (i32, i32) {
    %c0_i32 = arith.constant 0 : i32
    %c0_i32_0 = arith.constant 0 : i32
    %c0_i32_1 = arith.constant 0 : i32
    return %c0_i32, %c0_i32_0 : i32, i32
  }
  func.func @transform_5(%arg0: i32) -> (i32, i32) {
    %c0_i32 = arith.constant 0 : i32
    %c0_i32_0 = arith.constant 0 : i32
    %c0_i32_1 = arith.constant 0 : i32
    return %c0_i32, %c0_i32_0 : i32, i32
  }
  func.func @transform_6(%arg0: i32) -> (i32, i32) {
    %c0_i32 = arith.constant 0 : i32
    %c0_i32_0 = arith.constant 0 : i32
    %c0_i32_1 = arith.constant 0 : i32
    return %c0_i32, %c0_i32_0 : i32, i32
  }
  func.func @transform_7(%arg0: i32) -> (i32, i32) {
    %c0_i32 = arith.constant 0 : i32
    %c0_i32_0 = arith.constant 0 : i32
    %c0_i32_1 = arith.constant 0 : i32
    return %c0_i32, %c0_i32_0 : i32, i32
  }
  func.func @transform_8(%arg0: i32) -> (i32, i32) {
    %c0_i32 = arith.constant 0 : i32
    %c0_i32_0 = arith.constant 0 : i32
    %c0_i32_1 = arith.constant 0 : i32
    return %c0_i32, %c0_i32_0 : i32, i32
  }
  func.func @transform_9(%arg0: i32) -> (i32, i32) {
    %c0_i32 = arith.constant 0 : i32
    %c0_i32_0 = arith.constant 0 : i32
    %c0_i32_1 = arith.constant 0 : i32
    return %c0_i32, %c0_i32_0 : i32, i32
  }
  func.func @transform_10(%arg0: i32) -> (i32, i32, i32) {
    %c0_i32 = arith.constant 0 : i32
    %c0_i32_0 = arith.constant 0 : i32
    %c0_i32_1 = arith.constant 0 : i32
    return %arg0, %c0_i32, %c0_i32_0 : i32, i32, i32
  }
}

</mosaic_0001>

<bundles_post_ra>
// kernel: pallas_perceiver_attention.1
= control target key start
LH: loop header
LB: loop body
LE: loop exit
PB: predicated region body
PF: predicated region fallthrough
CT: control target
= control target key end

     0   :  { %vm47_vm0 = vcmask 523264   ;;  %s4081_s0 = inlined_call_operand.vmem [shape: bf16[2,8,64], index: 0, kind: input, shape index: {}]   ;;  %s4082_s1 = inlined_call_operand.vmem [shape: bf16[2,8,64], index: 1, kind: input, shape index: {}]   ;;  %s4083_s2 = inlined_call_operand.vmem [shape: f32[1,64], index: 2, kind: input, shape index: {}]   ;;  %s4084_s3 = inlined_call_operand.vmem [shape: f32[1,64], index: 3, kind: input, shape index: {}]   ;;  %s4085_s4 = inlined_call_operand.vmem [shape: f32[1,64], index: 4, kind: input, shape index: {}]   ;;  %s4086_s5 = inlined_call_operand.vmem [shape: f32[1,64], index: 5, kind: input, shape index: {}]   ;;  %s4087_s6 = inlined_call_operand.vmem [shape: bf16[64,64], index: 6, kind: input, shape index: {}]   ;;  %s4088_s7 = inlined_call_operand.vmem [shape: bf16[64,64], index: 7, kind: input, shape index: {}]   ;;  %s4089_s8 = inlined_call_operand.vmem [shape: bf16[64,64], index: 8, kind: input, shape index: {}]   ;;  %s4090_s9 = inlined_call_operand.vmem [shape: bf16[64,64], index: 9, kind: input, shape index: {}]   ;;  %s4091_s10 = inlined_call_operand.hbm [shape: f32[2,8,64], index: 10, kind: output, shape index: {}]  }
   0x1   :  { %v2793_v0 = vld [vmem:[%s4082_s1] sm:$0xff]  }
   0x2   :  { %v2789_v1 = vld [vmem:[%s4081_s0] sm:$0xff]   ;;  %v2794_v2 = vunpack.c.l.bf16 %v2793_v0 }
   0x3   :  { %v2790_v3 = vunpack.c.l.bf16 %v2789_v1 }
   0x4   :  { %15 = vsyncpa [#allocation3], 0  ;;  %v112_v4 = vsel %vm47_vm0, %v2794_v2, 0.0  ;;  %v2795_v6 = vunpack.c.h.bf16 %v2793_v0  ;;  %v2791_v7 = vunpack.c.h.bf16 %v2789_v1  ;;  %v2896_v10 = vmov 64.0   ;;  %v2775_v37 = vld [vmem:[%s4087_s6 + $0x18] sm:$0xff]  ;;  %v2774_v40 = vld [vmem:[%s4087_s6 + $0x10] sm:$0xff] }
   0x5   :  { %v48_v5 = vsel %vm47_vm0, %v2790_v3, 0.0  ;;  %113 = vadd.xlane.f32.xlu1 %v112_v4  ;;  %2812 = vrcp.f32 %v2896_v10  ;;  %v2779_v38 = vld [vmem:[%s4088_s7 + $0x18] sm:$0xff]  ;;  %206 = vmatpush.bf16.msra.mxu0 %v2775_v37  ;;  %v2778_v41 = vld [vmem:[%s4088_s7 + $0x10] sm:$0xff]  ;;  %v2773_v43 = vld [vmem:[%s4087_s6 + $0x8] sm:$0xff]  ;;  %vm398_vm14 = vcmask 1047556   ;;  %vm1560_vm15 = vcmask 130048  }
   0x6   :  { %49 = vadd.xlane.f32.xlu0 %v48_v5  ;;  %v115_v8 = vsel %vm47_vm0, %v2795_v6, 0.0  ;;  %v51_v9 = vsel %vm47_vm0, %v2791_v7, 0.0  ;;  %v2783_v39 = vld [vmem:[%s4089_s8 + $0x18] sm:$0xff]  ;;  %257 = vmatpush.bf16.msra.mxu1 %v2779_v38  ;;  %v2782_v42 = vld [vmem:[%s4089_s8 + $0x10] sm:$0xff]  ;;  %v2777_v44 = vld [vmem:[%s4088_s7 + $0x8] sm:$0xff]  ;;  %s2902_s21 = smov 16  }
   0x7   :  { %273 = vmatpush.bf16.msra.mxu2 %v2779_v38  ;;  %321 = vmatpush.bf16.msra.mxu3 %v2783_v39  ;;  %v2781_v45 = vld [vmem:[%s4089_s8 + $0x8] sm:$0xff]  ;;  %v2772_v50 = vld [vmem:[%s4087_s6] sm:$0xff]  ;;  %s2903_s22 = smov 32   ;;  %s2904_s23 = smov 48  }
   0x8   :  { %v2776_v51 = vld [vmem:[%s4088_s7] sm:$0xff]  ;;  %s2905_s12 = smov [#allocation2]   ;;  %s2906_s16 = smov 128  }
   0x9   :  { %207 = vmatpush.bf16.msra.mxu0 %v2774_v40  ;;  %v2780_v52 = vld [vmem:[%s4089_s8] sm:$0xff]  ;;  %s2656_s13 = sshll.u32 %s2905_s12, 4  ;;  %s2907_s0 = smov 8   ;;  %s2657_s13 = int_to_ptr.vmem [resolvable:$true] %s2656_s13 }
   0xa   :  { %258 = vmatpush.bf16.msra.mxu1 %v2778_v41 }
   0xb   :  { %v2813_v11 = vpop.eup %2812  ;;  %274 = vmatpush.bf16.msra.mxu2 %v2778_v41  ;;  %322 = vmatpush.bf16.msra.mxu3 %v2782_v42 }
   0xc   :  { %v55_v12 = vmul.f32 64.0, %v2813_v11  ;;  %vm59_vm1 = vweird.f32 %v2813_v11 }
   0xd   :  { %116 = vadd.xlane.f32.xlu1 %v115_v8  ;;  %208 = vmatpush.bf16.msra.mxu0 %v2773_v43 }
   0xe   :  { %52 = vadd.xlane.f32.xlu0 %v51_v9  ;;  %v56_v13 = vsub.f32 1.0, %v55_v12  ;;  %259 = vmatpush.bf16.msra.mxu1 %v2777_v44 }
   0xf   :  { %275 = vmatpush.bf16.msra.mxu2 %v2777_v44  ;;  %323 = vmatpush.bf16.msra.mxu3 %v2781_v45 }
  0x10   :  { %v57_v14 = vmul.f32 %v2813_v11, %v56_v13 }
  0x11   :  { %209 = vmatpush.bf16.msra.mxu0 %v2772_v50 }
  0x12   :  { %v58_v15 = vadd.f32 %v2813_v11, %v57_v14  ;;  %260 = vmatpush.bf16.msra.mxu1 %v2776_v51 }
  0x13   :  { %276 = vmatpush.bf16.msra.mxu2 %v2776_v51  ;;  %324 = vmatpush.bf16.msra.mxu3 %v2780_v52 }
  0x14   :  { %v2973_v16 = vsel %vm59_vm1, %v2813_v11, %v58_v15  ;;  %vm2029_vm1 = vcmask 1043456  }
  0x15   :  { %337 = vmatpush.bf16.msrb.mxu0 %v2783_v39 }
  0x19   :  { %338 = vmatpush.bf16.msrb.mxu0 %v2782_v42 }
  0x1d   :  { %339 = vmatpush.bf16.msrb.mxu0 %v2781_v45 }
  0x21   :  { %340 = vmatpush.bf16.msrb.mxu0 %v2780_v52 }
  0x78   :  { %v114_v17 = vpop.xlane.xlu1 %113 }
  0x79   :  { %v50_v18 = vpop.xlane.xlu0 %49  ;;  %v118_v19 = vmul.f32 %v114_v17, %v2973_v16 }
  0x7a   :  { %v61_v20 = vmul.f32 %v2973_v16, %v50_v18 }
  0x7b   :  { %v2977_v21 = vsub.f32 %v2794_v2, %v118_v19 }
  0x7c   :  { %v2979_v22 = vsub.f32 %v2790_v3, %v61_v20 }
  0x7d   :  { %v122_v23 = vmul.f32 %v2977_v21, %v2977_v21 }
  0x7e   :  { %v65_v24 = vmul.f32 %v2979_v22, %v2979_v22 }
  0x7f   :  { %v124_v25 = vsel %vm47_vm0, %v122_v23, 0.0 }
  0x80   :  { %v67_v26 = vsel %vm47_vm0, %v65_v24, 0.0  ;;  %v117_v27 = vpop.xlane.xlu1 %116  ;;  %125 = vadd.xlane.f32.xlu0 %v124_v25  ;;  %v2808_v24 = vld [vmem:[%s4085_s4] ss:$0 sm:$0xff] }
  0x81   :  { %68 = vadd.xlane.f32.xlu2 %v67_v26  ;;  %v53_v28 = vpop.xlane.xlu0 %52  ;;  %v119_v29 = vmul.f32 %v117_v27, %v2973_v16  ;;  %v2810_v27 = vld [vmem:[%s4083_s2] ss:$0 sm:$0xff]  ;;  %s2897_s2 = smov 80  }
  0x82   :  { %v62_v30 = vmul.f32 %v2973_v16, %v53_v28 }
  0x83   :  { %v2989_v31 = vsub.f32 %v2795_v6, %v119_v29 }
  0x84   :  { %v2991_v32 = vsub.f32 %v2791_v7, %v62_v30 }
  0x85   :  { %v123_v33 = vmul.f32 %v2989_v31, %v2989_v31 }
  0x86   :  { %v66_v34 = vmul.f32 %v2991_v32, %v2991_v32 }
  0x87   :  { %v127_v35 = vsel %vm47_vm0, %v123_v33, 0.0 }
  0x88   :  { %v70_v36 = vsel %vm47_vm0, %v66_v34, 0.0  ;;  %128 = vadd.xlane.f32.xlu1 %v127_v35  ;;  %v2809_v34 = vld [vmem:[%s4086_s5] ss:$0 sm:$0xff]  ;;  %s2899_s5 = smov 112  }
  0x89   :  { %71 = vadd.xlane.f32.xlu2 %v70_v36  ;;  %v2811_v36 = vld [vmem:[%s4084_s3] ss:$0 sm:$0xff]  ;;  %s2898_s3 = smov 96  }
  0xf3   :  { %v126_v47 = vpop.xlane.xlu0 %125 }
  0xf4   :  { %v69_v46 = vpop.xlane.xlu2 %68  ;;  %v130_v49 = vmul.f32 %v126_v47, %v2973_v16 }
  0xf5   :  { %v73_v48 = vmul.f32 %v69_v46, %v2973_v16 }
  0xf6   :  { %v132_v54 = vadd.f32 1e-05, %v130_v49 }
  0xf7   :  { %v75_v53 = vadd.f32 1e-05, %v73_v48 }
  0xf8   :  { %vm140_vm2 = vweird.f32 %v132_v54 }
  0xf9   :  { %2814 = vrsqrt.f32 %v75_v53  ;;  %vm83_vm5 = vweird.f32 %v75_v53 }
  0xfa   :  { %2816 = vrsqrt.f32 %v132_v54 }
  0xfb   :  { %v129_v55 = vpop.xlane.xlu1 %128 }
  0xfc   :  { %v72_v56 = vpop.xlane.xlu2 %71  ;;  %v131_v57 = vmul.f32 %v129_v55, %v2973_v16 }
  0xfd   :  { %v74_v58 = vmul.f32 %v72_v56, %v2973_v16 }
  0xfe   :  { %v133_v60 = vadd.f32 1e-05, %v131_v57 }
  0xff   :  { %v2815_v59 = vpop.eup %2814  ;;  %v76_v61 = vadd.f32 1e-05, %v74_v58 }
 0x100   :  { %v2817_v62 = vpop.eup %2816  ;;  %v78_v63 = vmul.f32 %v2815_v59, %v75_v53  ;;  %2818 = vrsqrt.f32 %v133_v60  ;;  %vm84_vm4 = vweird.f32 %v2815_v59  ;;  %vm150_vm8 = vweird.f32 %v133_v60 }
 0x101   :  { %v135_v0 = vmul.f32 %v2817_v62, %v132_v54  ;;  %2820 = vrsqrt.f32 %v76_v61  ;;  %vm141_vm3 = vweird.f32 %v2817_v62  ;;  %vm85_vm7 = vmor %vm83_vm5, %vm84_vm4  ;;  %vm93_vm12 = vweird.f32 %v76_v61 }
 0x102   :  { %v79_v1 = vmul.f32 %v2815_v59, %v78_v63  ;;  %vm142_vm6 = vmor %vm140_vm2, %vm141_vm3  ;;  %v2900_v63 = vmov 1983009808   ;;  %vm1841_vm2 = vcmask 64512   ;;  %vm2596_vm3 = vcmask 261120  }
 0x103   :  { %v136_v2 = vmul.f32 %v2817_v62, %v135_v0  ;;  %v389_v0 = vunpack.c.l.s4 %v2900_v63  ;;  %vm2599_vm4 = vcmask 392192  }
 0x104   :  { %v80_v3 = vmul.f32 0.5, %v79_v1 }
 0x105   :  { %v137_v4 = vmul.f32 0.5, %v136_v2 }
 0x106   :  { %v81_v5 = vsub.f32 1.5, %v80_v3  ;;  %v2819_v6 = vpop.eup %2818  ;;  %v3129_v3 = vunpack.c.0.s8 %v389_v0 }
 0x107   :  { %v138_v7 = vsub.f32 1.5, %v137_v4  ;;  %v2821_v8 = vpop.eup %2820  ;;  %v145_v9 = vmul.f32 %v2819_v6, %v133_v60  ;;  %vm151_vm9 = vweird.f32 %v2819_v6 }
 0x108   :  { %v82_v10 = vmul.f32 %v2815_v59, %v81_v5  ;;  %v88_v12 = vmul.f32 %v2821_v8, %v76_v61  ;;  %vm94_vm10 = vweird.f32 %v2821_v8  ;;  %vm152_vm11 = vmor %vm150_vm8, %vm151_vm9 }
 0x109   :  { %v139_v11 = vmul.f32 %v2817_v62, %v138_v7  ;;  %v146_v13 = vmul.f32 %v2819_v6, %v145_v9  ;;  %vm95_vm13 = vmor %vm93_vm12, %vm94_vm10  ;;  %v2901_v7 = vmov 1934713408  }
 0x10a   :  { %v89_v14 = vmul.f32 %v2821_v8, %v88_v12  ;;  %v86_v17 = vsel %vm85_vm7, %v2815_v59, %v82_v10 }
 0x10b   :  { %v143_v15 = vsel %vm142_vm6, %v2817_v62, %v139_v11  ;;  %v147_v16 = vmul.f32 0.5, %v146_v13  ;;  %v97_v25 = vmul.f32 %v86_v17, %v2979_v22 }
 0x10c   :  { %v90_v18 = vmul.f32 0.5, %v89_v14  ;;  %v154_v20 = vmul.f32 %v143_v15, %v2977_v21 }
 0x10d   :  { %v148_v19 = vsub.f32 1.5, %v147_v16  ;;  %v102_v35 = vmul.f32 %v2810_v27, %v97_v25 }
 0x10e   :  { %v91_v23 = vsub.f32 1.5, %v90_v18  ;;  %v159_v33 = vmul.f32 %v2808_v24, %v154_v20 }
 0x10f   :  { %v149_v26 = vmul.f32 %v2819_v6, %v148_v19  ;;  %v107_v41 = vadd.f32 %v2811_v36, %v102_v35 }
 0x110   :  { %v92_v28 = vmul.f32 %v2821_v8, %v91_v23  ;;  %v164_v39 = vadd.f32 %v2809_v34, %v159_v33 }
 0x111   :  { %v153_v29 = vsel %vm152_vm11, %v2819_v6, %v149_v26 }
 0x112   :  { %v155_v21 = vmul.f32 %v153_v29, %v2989_v31  ;;  %v96_v30 = vsel %vm95_vm13, %v2821_v8, %v92_v28  ;;  %v403_v8 = vunpack.c.l.s4 %v2901_v7 }
 0x113   :  { %v98_v22 = vmul.f32 %v96_v30, %v2991_v32 }
 0x114   :  { %v160_v37 = vmul.f32 %v2808_v24, %v155_v21  ;;  %v3137_v20 = vunpack.c.0.s8 %v403_v8 }
 0x115   :  { %v103_v38 = vmul.f32 %v2810_v27, %v98_v22 }
 0x116   :  { %v165_v40 = vadd.f32 %v2809_v34, %v160_v37 }
 0x117   :  { %v108_v42 = vadd.f32 %v2811_v36, %v103_v38 }
 0x118   :  { %v166_v31 = vpack.c.bf16 %v165_v40, %v164_v39 }
 0x119   :  { %v109_v43 = vpack.c.bf16 %v108_v42, %v107_v41 }
 0x11a   :  { %2686 = vmatmul.msk.bf16.vlgmr.msra.gmra.mxu0 %vm47_vm0, %v166_v31  ;;  %2704 = vmatmul.msk.bf16.vlgmr.msra.gmra.mxu2 %vm47_vm0, %v166_v31 }
 0x11b   :  { %2703 = vmatmul.msk.bf16.vlgmr.msra.gmra.mxu1 %vm47_vm0, %v109_v43  ;;  %2721 = vmatmul.msk.bf16.vlgmr.msra.gmra.mxu3 %vm47_vm0, %v109_v43 }
 0x12a   :  { %2722 = vmatmul.msk.bf16.vlgmr.msrb.gmra.mxu0 %vm47_vm0, %v166_v31 }
 0x197   :  { %v211_v45 = vpop.f32.mrf.mxu0 }
 0x198   :  { %v262_v32 = vpop.f32.mrf.mxu1  ;;  %v3063_v47 = vpack.c.bf16 %v211_v45, %v211_v45 }
 0x199   :  { %v267_v44 = vpack.c.bf16 %v262_v32, %v262_v32 }
 0x19a   :  { %v366_v12 = vshrl.u32 %v3063_v47, 16 }
 0x19b   :  { %602 = vrot.lane.b32.xlu1 %v267_v44, %s2897_s2  ;;  %598 = vrot.lane.b32.xlu0 %v267_v44, %s2898_s3  ;;  %v609_v5 = vshrl.u32 %v267_v44, 16 }
 0x19c   :  { %594 = vrot.lane.b32.xlu2 %v267_v44, %s2899_s5 }
 0x19d   :  { %v278_v51 = vpop.f32.mrf.mxu2 }
 0x19e   :  { %v3081_v52 = vpack.c.bf16 %v278_v51, %v278_v51  ;;  %v326_v55 = vpop.f32.mrf.mxu3 }
 0x19f   :  { %v213_v49 = vpop.f32.mrf.mxu0  ;;  %v3097_v56 = vpack.c.bf16 %v326_v55, %v326_v55 }
 0x1a0   :  { %v264_v46 = vpop.f32.mrf.mxu1  ;;  %v3073_v50 = vpack.c.bf16 %v213_v49, %v213_v49  ;;  %v851_v23 = vshrl.u32 %v3081_v52, 16 }
 0x1a1   :  { %v3065_v48 = vpack.c.bf16 %v264_v46, %v264_v46  ;;  %v1093_v30 = vshrl.u32 %v3097_v56, 16 }
 0x1a2   :  { %v378_v21 = vshrl.u32 %v3073_v50, 16 }
 0x1a3   :  { %596 = vrot.lane.b32.xlu1 %v3065_v48, %s2899_s5  ;;  %355 = vrot.lane.b32.xlu0 %v3063_v47, %s2898_s3  ;;  %v621_v29 = vshrl.u32 %v3065_v48, 16 }
 0x1a4   :  { %351 = vrot.lane.b32.xlu2 %v3063_v47, %s2899_s5 }
 0x1a5   :  { %v280_v53 = vpop.f32.mrf.mxu2 }
 0x1a6   :  { %v3089_v54 = vpack.c.bf16 %v280_v53, %v280_v53 }
 0x1a7   :  { %v342_v57 = vpop.f32.mrf.mxu0 }
 0x1a8   :  { %v3105_v58 = vpack.c.bf16 %v342_v57, %v342_v57  ;;  %v863_v37 = vshrl.u32 %v3089_v54, 16 }
 0x1aa   :  { %v1335_v38 = vshrl.u32 %v3105_v58, 16 }
 0x1ab   :  { %600 = vrot.lane.b32.xlu0 %v3065_v48, %s2898_s3  ;;  %353 = vrot.lane.b32.xlu1 %v3073_v50, %s2899_s5 }
 0x1ac   :  { %359 = vrot.lane.b32.xlu2 %v3063_v47, %s2897_s2 }
 0x1af   :  { %v344_v59 = vpop.f32.mrf.mxu0 }
 0x1b0   :  { %v3113_v60 = vpack.c.bf16 %v344_v59, %v344_v59 }
 0x1b2   :  { %v1347_v39 = vshrl.u32 %v3113_v60, 16 }
 0x1b3   :  { %357 = vrot.lane.b32.xlu0 %v3073_v50, %s2898_s3  ;;  %836 = vrot.lane.b32.xlu1 %v3081_v52, %s2899_s5 }
 0x1b4   :  { %604 = vrot.lane.b32.xlu2 %v3065_v48, %s2897_s2 }
 0x1bb   :  { %840 = vrot.lane.b32.xlu0 %v3081_v52, %s2898_s3  ;;  %838 = vrot.lane.b32.xlu1 %v3089_v54, %s2899_s5 }
 0x1bc   :  { %361 = vrot.lane.b32.xlu2 %v3073_v50, %s2897_s2 }
 0x1c3   :  { %842 = vrot.lane.b32.xlu0 %v3089_v54, %s2898_s3  ;;  %1082 = vrot.lane.b32.xlu1 %v3097_v56, %s2898_s3 }
 0x1c4   :  { %844 = vrot.lane.b32.xlu2 %v3081_v52, %s2897_s2 }
 0x1cb   :  { %1086 = vrot.lane.b32.xlu0 %v3097_v56, %s2897_s2  ;;  %1320 = vrot.lane.b32.xlu1 %v3105_v58, %s2899_s5 }
 0x1cc   :  { %846 = vrot.lane.b32.xlu2 %v3089_v54, %s2897_s2 }
 0x1d3   :  { %1324 = vrot.lane.b32.xlu0 %v3105_v58, %s2898_s3  ;;  %1322 = vrot.lane.b32.xlu1 %v3113_v60, %s2899_s5 }
 0x1d4   :  { %1078 = vrot.lane.b32.xlu2 %v3097_v56, %s2899_s5 }
 0x1db   :  { %1326 = vrot.lane.b32.xlu1 %v3113_v60, %s2898_s3 }
 0x1dc   :  { %1328 = vrot.lane.b32.xlu2 %v3105_v58, %s2897_s2 }
 0x1e3   :  { %1330 = vrot.lane.b32.xlu1 %v3113_v60, %s2897_s2 }
 0x1f6   :  { %v595_v61 = vpop.permute.xlu2 %594 }
 0x1f7   :  { %v610_v1 = vshrl.u32 %v595_v61, 16  ;;  %v608_v4 = vpack.i.b16 %v595_v61, %v267_v44 }
 0x1f9   :  { %v611_v6 = vpack.i.b16 %v610_v1, %v609_v5  ;;  %v634_v9 = vperm.slane %v608_v4, %v3129_v3 }
 0x1fb   :  { %v660_v15 = vperm.slane %v611_v6, %v3129_v3  ;;  %v642_v24 = vrot.slane %v634_v9, 4 }
 0x1fd   :  { %v668_v33 = vrot.slane %v660_v15, 4 }
 0x1fe   :  { %v352_v62 = vpop.permute.xlu2 %351 }
 0x1ff   :  { %v367_v10 = vshrl.u32 %v352_v62, 16  ;;  %v365_v11 = vpack.i.b16 %v352_v62, %v3063_v47 }
 0x201   :  { %v368_v25 = vpack.i.b16 %v367_v10, %v366_v12  ;;  %v391_v28 = vperm.slane %v365_v11, %v3129_v3 }
 0x203   :  { %v418_v40 = vperm.slane %v368_v25, %v3129_v3  ;;  %v400_v43 = vrot.slane %v391_v28, 4 }
 0x205   :  { %v426_v0 = vrot.slane %v418_v40, 4 }
 0x206   :  { %v3127_v2 = vpop.permute.xlu2 %359 }
 0x207   :  { %v373_v1 = vshrl.u32 %v3127_v2, 16 }
 0x20d   :  { %v603_v13 = vpop.permute.xlu1 %602  ;;  %v599_v14 = vpop.permute.xlu0 %598 }
 0x20e   :  { %v616_v16 = vshrl.u32 %v603_v13, 16  ;;  %v3135_v17 = vpop.permute.xlu2 %604  ;;  %v614_v18 = vpack.i.b16 %v603_v13, %v599_v14  ;;  %v615_v19 = vshrl.u32 %v599_v14, 16 }
 0x210   :  { %v617_v26 = vpack.i.b16 %v616_v16, %v615_v19  ;;  %v639_v27 = vperm.slane %v614_v18, %v3129_v3 }
 0x212   :  { %v640_v34 = vrot.slane %v639_v27, 4  ;;  %v643_v22 = vsel %vm398_vm14, %v639_v27, %v642_v24  ;;  %v665_v35 = vperm.slane %v617_v26, %v3129_v3 }
 0x213   :  { %v651_v36 = vperm.slane %v643_v22, %v3137_v20 }
 0x214   :  { %v641_v41 = vsel %vm398_vm14, %v640_v34, %v634_v9  ;;  %v666_v42 = vrot.slane %v665_v35, 4  ;;  %v669_v31 = vsel %vm398_vm14, %v665_v35, %v668_v33  ;;  %v628_v9 = vshrl.u32 %v3135_v17, 16 }
 0x215   :  { %v647_v32 = vperm.slane %v641_v41, %v3137_v20  ;;  %v654_v44 = vrot.slane %v651_v36, 4  ;;  %v677_v45 = vperm.slane %v669_v31, %v3137_v20  ;;  %v597_v46 = vpop.permute.xlu1 %596  ;;  %v356_v47 = vpop.permute.xlu0 %355 }
 0x216   :  { %v667_v49 = vsel %vm398_vm14, %v666_v42, %v660_v15  ;;  %v620_v51 = vpack.i.b16 %v597_v46, %v3065_v48  ;;  %v622_v53 = vshrl.u32 %v597_v46, 16  ;;  %v3158_v55 = vpop.permute.xlu2 %361  ;;  %v371_v57 = vpack.i.b16 %v3127_v2, %v356_v47 }
 0x217   :  { %v652_v59 = vrot.slane %v647_v32, 4  ;;  %v655_v61 = vsel %vm398_vm14, 0, %v654_v44  ;;  %v673_v62 = vperm.slane %v667_v49, %v3137_v20  ;;  %v680_v63 = vrot.slane %v677_v45, 4 }
 0x218   :  { %v623_v4 = vpack.i.b16 %v622_v53, %v621_v29  ;;  %v3165_v5 = vperm.slane %v620_v51, %v3129_v3  ;;  %v739_v7 = vrot.slane %v655_v61, 4  ;;  %v372_v8 = vshrl.u32 %v356_v47, 16 }
 0x219   :  { %v678_v6 = vrot.slane %v673_v62, 4  ;;  %v3168_v48 = vsel %vm398_vm14, 0, %v680_v63  ;;  %v653_v10 = vsel %vm398_vm14, 0, %v652_v59  ;;  %v396_v12 = vperm.slane %v371_v57, %v3129_v3 }
 0x21a   :  { %v3173_v11 = vperm.slane %v623_v4, %v3129_v3  ;;  %v758_v2 = vrot.slane %v3168_v48, 4  ;;  %v385_v13 = vshrl.u32 %v3158_v55, 16  ;;  %v374_v14 = vpack.i.b16 %v373_v1, %v372_v8 }
 0x21b   :  { %v3179_v15 = vsel %vm398_vm14, %v654_v44, %v647_v32  ;;  %v694_v16 = vrot.slane %v3165_v5, 4  ;;  %v397_v18 = vrot.slane %v396_v12, 4  ;;  %v401_v19 = vsel %vm398_vm14, %v396_v12, %v400_v43 }
 0x21c   :  { %v3184_v24 = vsel %vm398_vm14, 0, %v678_v6  ;;  %v720_v25 = vrot.slane %v3173_v11, 4  ;;  %v409_v26 = vperm.slane %v401_v19, %v3137_v20  ;;  %v423_v27 = vperm.slane %v374_v14, %v3129_v3 }
 0x21d   :  { %v354_v29 = vpop.permute.xlu1 %353  ;;  %v601_v33 = vpop.permute.xlu0 %600  ;;  %v3190_v34 = vsel %vm398_vm14, %v739_v7, %v653_v10  ;;  %v399_v22 = vsel %vm398_vm14, %v397_v18, %v391_v28  ;;  %v738_v41 = vperm.slane %v3179_v15, %v3129_v3  ;;  %v3218_v4 = vsel %vm398_vm14, %v680_v63, %v673_v62 }
 0x21e   :  { %v377_v35 = vpack.i.b16 %v354_v29, %v3073_v50  ;;  %v379_v36 = vshrl.u32 %v354_v29, 16  ;;  %v405_v42 = vperm.slane %v399_v22, %v3137_v20  ;;  %v412_v31 = vrot.slane %v409_v26, 4  ;;  %v3199_v45 = vpop.permute.xlu2 %844 }
 0x21f   :  { %v424_v43 = vrot.slane %v423_v27, 4  ;;  %v427_v32 = vsel %vm398_vm14, %v423_v27, %v426_v0  ;;  %v626_v28 = vpack.i.b16 %v3135_v17, %v601_v33  ;;  %v744_v47 = vperm.slane %v3190_v34, %v3129_v3 }
 0x220   :  { %v435_v44 = vperm.slane %v427_v32, %v3137_v20  ;;  %v380_v46 = vpack.i.b16 %v379_v36, %v378_v21  ;;  %v410_v49 = vrot.slane %v405_v42, 4  ;;  %v413_v51 = vsel %vm398_vm14, 0, %v412_v31 }
 0x221   :  { %v425_v53 = vsel %vm398_vm14, %v424_v43, %v418_v40  ;;  %v444_v57 = vperm.slane %v377_v35, %v3129_v3  ;;  %v3211_v0 = vsel %vm398_vm14, %v412_v31, %v405_v42  ;;  %v497_v50 = vrot.slane %v413_v51, 4 }
 0x222   :  { %v431_v59 = vperm.slane %v425_v53, %v3137_v20  ;;  %v438_v61 = vrot.slane %v435_v44, 4  ;;  %v411_v21 = vsel %vm398_vm14, 0, %v410_v49  ;;  %v3215_v17 = vperm.slane %v380_v46, %v3129_v3 }
 0x223   :  { %v627_v1 = vshrl.u32 %v601_v33, 16  ;;  %v3222_v7 = vsel %vm398_vm14, %v497_v50, %v411_v21  ;;  %v496_v10 = vperm.slane %v3211_v0, %v3129_v3  ;;  %v858_v14 = vshrl.u32 %v3199_v45, 16 }
 0x224   :  { %v436_v6 = vrot.slane %v431_v59, 4  ;;  %v439_v40 = vsel %vm398_vm14, 0, %v438_v61  ;;  %v3225_v8 = vsel %vm398_vm14, %v438_v61, %v431_v59  ;;  %v502_v12 = vperm.slane %v3222_v7, %v3129_v3 }
 0x225   :  { %v452_v18 = vrot.slane %v444_v57, 4  ;;  %v837_v62 = vpop.permute.xlu1 %836  ;;  %v358_v63 = vpop.permute.xlu0 %357  ;;  %v515_v19 = vperm.slane %v3225_v8, %v3129_v3  ;;  %v516_v26 = vrot.slane %v439_v40, 4  ;;  %v629_v27 = vpack.i.b16 %v628_v9, %v627_v1 }
 0x226   :  { %v691_v29 = vperm.slane %v626_v28, %v3129_v3  ;;  %v437_v33 = vsel %vm398_vm14, 0, %v436_v6  ;;  %v850_v22 = vpack.i.b16 %v837_v62, %v3081_v52  ;;  %v852_v35 = vshrl.u32 %v837_v62, 16 }
 0x227   :  { %v383_v36 = vpack.i.b16 %v3158_v55, %v358_v63  ;;  %v478_v42 = vrot.slane %v3215_v17, 4  ;;  %v717_v32 = vperm.slane %v629_v27, %v3129_v3  ;;  %v384_v46 = vshrl.u32 %v358_v63, 16 }
 0x228   :  { %v692_v31 = vrot.slane %v691_v29, 4  ;;  %v695_v43 = vsel %vm398_vm14, %v691_v29, %v694_v16  ;;  %v853_v9 = vpack.i.b16 %v852_v35, %v851_v23  ;;  %v3246_v49 = vsel %vm398_vm14, %v516_v26, %v437_v33  ;;  %v3251_v16 = vpop.permute.xlu2 %846 }
 0x229   :  { %v703_v44 = vperm.slane %v695_v43, %v3137_v20  ;;  %v449_v28 = vperm.slane %v383_v36, %v3129_v3  ;;  %v718_v53 = vrot.slane %v717_v32, 4  ;;  %v721_v59 = vsel %vm398_vm14, %v717_v32, %v720_v25 }
 0x22a   :  { %v693_v51 = vsel %vm398_vm14, %v692_v31, %v3165_v5  ;;  %v729_v52 = vperm.slane %v721_v59, %v3137_v20  ;;  %v3256_v23 = vperm.slane %v850_v22, %v3129_v3  ;;  %v3261_v1 = vperm.slane %v853_v9, %v3129_v3 }
 0x22b   :  { %v699_v61 = vperm.slane %v693_v51, %v3137_v20  ;;  %v706_v50 = vrot.slane %v703_v44, 4  ;;  %v719_v21 = vsel %vm398_vm14, %v718_v53, %v3173_v11  ;;  %v386_v5 = vpack.i.b16 %v385_v13, %v384_v46 }
 0x22c   :  { %v450_v25 = vrot.slane %v449_v28, 4  ;;  %v725_v62 = vperm.slane %v719_v21, %v3137_v20  ;;  %v732_v63 = vrot.slane %v729_v52, 4  ;;  %v453_v11 = vsel %vm398_vm14, %v449_v28, %v452_v18 }
 0x22d   :  { %v704_v6 = vrot.slane %v699_v61, 4  ;;  %v707_v40 = vsel %vm398_vm14, 0, %v706_v50  ;;  %v3268_v26 = vsel %vm398_vm14, %v706_v50, %v699_v61  ;;  %v870_v13 = vshrl.u32 %v3251_v16, 16 }
 0x22e   :  { %v777_v27 = vrot.slane %v707_v40, 4  ;;  %v451_v29 = vsel %vm398_vm14, %v450_v25, %v444_v57  ;;  %v3274_v55 = vsel %vm398_vm14, 0, %v732_v63  ;;  %v884_v22 = vrot.slane %v3256_v23, 4 }
 0x22f   :  { %v705_v33 = vsel %vm398_vm14, 0, %v704_v6  ;;  %v730_v35 = vrot.slane %v725_v62, 4  ;;  %v776_v36 = vperm.slane %v3268_v26, %v3129_v3  ;;  %v910_v31 = vrot.slane %v3261_v1, 4 }
 0x230   :  { %v457_v43 = vperm.slane %v451_v29, %v3137_v20  ;;  %v3283_v57 = vsel %vm398_vm14, %v777_v27, %v705_v33  ;;  %v461_v18 = vperm.slane %v453_v11, %v3137_v20  ;;  %v475_v32 = vperm.slane %v386_v5, %v3129_v3  ;;  %v1079_v21 = vpop.permute.xlu2 %1078 }
 0x231   :  { %v745_v44 = vrot.slane %v744_v47, 4  ;;  %v3291_v9 = vsel %vm398_vm14, %v732_v63, %v725_v62  ;;  %v796_v46 = vrot.slane %v3274_v55, 4  ;;  %v759_v51 = vsel %vm398_vm14, %v758_v2, %v3184_v24 }
 0x232   :  { %v462_v28 = vrot.slane %v457_v43, 4  ;;  %v464_v53 = vrot.slane %v461_v18, 4  ;;  %v476_v59 = vrot.slane %v475_v32, 4  ;;  %v479_v61 = vsel %vm398_vm14, %v475_v32, %v478_v42 }
 0x233   :  { %v746_v34 = vsel %vm398_vm14, %v745_v44, %v738_v41  ;;  %v3304_v47 = vsel %vm398_vm14, 0, %v730_v35  ;;  %v487_v50 = vperm.slane %v479_v61, %v3137_v20  ;;  %v763_v48 = vperm.slane %v759_v51, %v3129_v3 }
 0x234   :  { %v750_v52 = vperm.slane %v746_v34, %v3137_v20  ;;  %v463_v2 = vsel %vm398_vm14, 0, %v462_v28  ;;  %v465_v24 = vsel %vm398_vm14, 0, %v464_v53  ;;  %v477_v42 = vsel %vm398_vm14, %v476_v59, %v3215_v17 }
 0x235   :  { %v757_v15 = vperm.slane %v3218_v4, %v3129_v3  ;;  %v483_v41 = vperm.slane %v477_v42, %v3137_v20  ;;  %v490_v5 = vrot.slane %v487_v50, 4  ;;  %v3317_v25 = vsel %vm398_vm14, %v464_v53, %v457_v43  ;;  %v841_v4 = vpop.permute.xlu0 %840  ;;  %v839_v53 = vpop.permute.xlu1 %838 }
 0x236   :  { %v535_v6 = vrot.slane %v465_v24, 4  ;;  %v764_v40 = vrot.slane %v763_v48, 4  ;;  %v751_v62 = vrot.slane %v750_v52, 4  ;;  %v1092_v63 = vpack.i.b16 %v1079_v21, %v3097_v56 }
 0x237   :  { %v1094_v27 = vshrl.u32 %v1079_v21, 16  ;;  %v488_v29 = vrot.slane %v483_v41, 4  ;;  %v491_v11 = vsel %vm398_vm14, 0, %v490_v5  ;;  %v3323_v33 = vsel %vm398_vm14, %v490_v5, %v483_v41 }
 0x238   :  { %v536_v17 = vsel %vm398_vm14, %v535_v6, %v463_v2  ;;  %v554_v18 = vrot.slane %v491_v11, 4  ;;  %v765_v43 = vsel %vm398_vm14, %v764_v40, %v757_v15  ;;  %v534_v44 = vperm.slane %v3317_v25, %v3129_v3 }
 0x239   :  { %v540_v35 = vperm.slane %v536_v17, %v3129_v3  ;;  %v489_v32 = vsel %vm398_vm14, 0, %v488_v29  ;;  %v769_v28 = vperm.slane %v765_v43, %v3137_v20  ;;  %v752_v51 = vsel %vm398_vm14, 0, %v751_v62 }
 0x23a   :  { %v553_v59 = vperm.slane %v3323_v33, %v3129_v3  ;;  %v555_v61 = vsel %vm398_vm14, %v554_v18, %v489_v32  ;;  %v813_v34 = vshrl.u32 %v750_v52, 16  ;;  %v1095_v50 = vpack.i.b16 %v1094_v27, %v1093_v30 }
 0x23b   :  { %v812_v48 = vpack.i.b16 %v769_v28, %v750_v52  ;;  %v814_v21 = vshrl.u32 %v769_v28, 16  ;;  %v770_v2 = vrot.slane %v769_v28, 4  ;;  %v3338_v24 = vperm.slane %v1092_v63, %v3129_v3 }
 0x23c   :  { %v3340_v42 = vrot.slane %v540_v35, 4  ;;  %v819_v15 = vshrl.u32 %v752_v51, 16  ;;  %v862_v41 = vpack.i.b16 %v839_v53, %v3089_v54  ;;  %v864_v5 = vshrl.u32 %v839_v53, 16 }
 0x23d   :  { %v559_v6 = vperm.slane %v555_v61, %v3129_v3  ;;  %v1565_v40 = vsel %vm1560_vm15, %v812_v48, 0  ;;  %v815_v62 = vpack.i.b16 %v814_v21, %v813_v34  ;;  %v771_v56 = vsel %vm398_vm14, 0, %v770_v2  ;;  %v843_v53 = vpop.permute.xlu0 %842 }
 0x23e   :  { %1574 = vmatpush.bf16.xpose.msrb.mxu1 %v1565_v40  ;;  %v818_v30 = vpack.i.b16 %v771_v56, %v752_v51  ;;  %v820_v52 = vshrl.u32 %v771_v56, 16  ;;  %v3347_v27 = vperm.slane %v1095_v50, %v3129_v3  ;;  %v865_v63 = vpack.i.b16 %v864_v5, %v863_v37 }
 0x23f   :  { %v1584_v29 = vsel %vm1560_vm15, %v815_v62, 0  ;;  %v1126_v11 = vrot.slane %v3338_v24, 4  ;;  %v856_v17 = vpack.i.b16 %v3199_v45, %v841_v4  ;;  %v857_v35 = vshrl.u32 %v841_v4, 16 }
 0x240   :  { %1593 = vmatpush.bf16.xpose.msrb.mxu2 %v1584_v29  ;;  %v1603_v18 = vsel %vm1560_vm15, %v818_v30, 0  ;;  %v821_v43 = vpack.i.b16 %v820_v52, %v819_v15  ;;  %v3356_v32 = vperm.slane %v862_v41, %v3129_v3  ;;  %v503_v28 = vrot.slane %v502_v12, 4  ;;  %v3399_v52 = vpop.permute.xlu2 %1328 }
 0x241   :  { %v3361_v54 = vrot.slane %v559_v6, 4  ;;  %1612 = vmatpush.bf16.xpose.msrb.mxu3 %v1603_v18  ;;  %v859_v37 = vpack.i.b16 %v858_v14, %v857_v35  ;;  %v881_v51 = vperm.slane %v856_v17, %v3129_v3  ;;  %v521_v4 = vperm.slane %v3246_v49, %v3129_v3  ;;  %v3403_v18 = vpop.permute.xlu1 %1082 }
 0x242   :  { %v1622_v61 = vsel %vm1560_vm15, %v821_v43, 0  ;;  %v1152_v34 = vrot.slane %v3347_v27, 4  ;;  %v3371_v50 = vperm.slane %v865_v63, %v3129_v3  ;;  %v504_v7 = vsel %vm398_vm14, %v503_v28, %v496_v10 }
 0x243   :  { %1631 = vmatpush.bf16.xpose.msra.mxu0 %v1622_v61  ;;  %v882_v45 = vrot.slane %v881_v51, 4  ;;  %v885_v12 = vsel %vm398_vm14, %v881_v51, %v884_v22  ;;  %v907_v14 = vperm.slane %v859_v37, %v3129_v3  ;;  %v508_v49 = vperm.slane %v504_v7, %v3137_v20 }
 0x244   :  { %v936_v48 = vrot.slane %v3356_v32, 4  ;;  %v893_v21 = vperm.slane %v885_v12, %v3137_v20  ;;  %v522_v2 = vrot.slane %v521_v4, 4  ;;  %v868_v15 = vpack.i.b16 %v3251_v16, %v843_v53 }
 0x245   :  { %v883_v0 = vsel %vm398_vm14, %v882_v45, %v3256_v23  ;;  %v908_v10 = vrot.slane %v907_v14, 4  ;;  %v911_v41 = vsel %vm398_vm14, %v907_v14, %v910_v31  ;;  %v571_v22 = vshrl.u32 %v508_v49, 16 }
 0x246   :  { %v889_v5 = vperm.slane %v883_v0, %v3137_v20  ;;  %v896_v6 = vrot.slane %v893_v21, 4  ;;  %v919_v40 = vperm.slane %v911_v41, %v3137_v20  ;;  %v523_v62 = vsel %vm398_vm14, %v522_v2, %v515_v19 }
 0x247   :  { %v909_v56 = vsel %vm398_vm14, %v908_v10, %v3261_v1  ;;  %v527_v23 = vperm.slane %v523_v62, %v3137_v20  ;;  %v509_v30 = vrot.slane %v508_v49, 4  ;;  %v869_v31 = vshrl.u32 %v843_v53, 16 }
 0x248   :  { %v894_v63 = vrot.slane %v889_v5, 4  ;;  %v897_v29 = vsel %vm398_vm14, 0, %v896_v6  ;;  %v915_v17 = vperm.slane %v909_v56, %v3137_v20  ;;  %v922_v35 = vrot.slane %v919_v40, 4 }
 0x249   :  { %v3406_v8 = vsel %vm398_vm14, %v896_v6, %v889_v5  ;;  %v981_v19 = vrot.slane %v897_v29, 4  ;;  %v3408_v43 = vpack.i.b16 %v527_v23, %v508_v49  ;;  %v572_v1 = vshrl.u32 %v527_v23, 16 }
 0x24a   :  { %v962_v28 = vrot.slane %v3371_v50, 4  ;;  %v895_v37 = vsel %vm398_vm14, 0, %v894_v63  ;;  %v3413_v51 = vsel %vm398_vm14, 0, %v922_v35  ;;  %v1342_v4 = vshrl.u32 %v3399_v52, 16 }
 0x24b   :  { %v920_v53 = vrot.slane %v915_v17, 4  ;;  %v980_v61 = vperm.slane %v3406_v8, %v3129_v3  ;;  %2723 = vmatmul.msk.bf16.vlgmr.msrb.gmra.mxu1 %vm1560_vm15, %v3408_v43  ;;  %v3420_v7 = vpack.i.b16 %v572_v1, %v571_v22  ;;  %v1099_v45 = vshrl.u32 %v3403_v18, 16 }
 0x24c   :  { %v3424_v12 = vsel %vm398_vm14, %v981_v19, %v895_v37  ;;  %v510_v14 = vsel %vm398_vm14, 0, %v509_v30  ;;  %v528_v49 = vrot.slane %v527_v23, 4  ;;  %v871_v21 = vpack.i.b16 %v870_v13, %v869_v31 }
 0x24d   :  { %v3430_v2 = vsel %vm398_vm14, %v922_v35, %v915_v17  ;;  %v1000_v0 = vrot.slane %v3413_v51, 4  ;;  %2724 = vmatmul.msk.bf16.vlgmr.msrb.gmra.mxu2 %vm1560_vm15, %v3420_v7  ;;  %v933_v10 = vperm.slane %v868_v15, %v3129_v3  ;;  %v782_v41 = vperm.slane %v3283_v57, %v3129_v3  ;;  %v1321_v35 = vpop.permute.xlu1 %1320 }
 0x24e   :  { %v529_v22 = vsel %vm398_vm14, 0, %v528_v49  ;;  %v577_v5 = vshrl.u32 %v510_v14, 16  ;;  %v959_v6 = vperm.slane %v871_v21, %v3129_v3  ;;  %v797_v16 = vsel %vm398_vm14, %v796_v46, %v3304_v47 }
 0x24f   :  { %v3444_v13 = vpack.i.b16 %v529_v22, %v510_v14  ;;  %v578_v40 = vshrl.u32 %v529_v22, 16  ;;  %v934_v62 = vrot.slane %v933_v10, 4  ;;  %v937_v56 = vsel %vm398_vm14, %v933_v10, %v936_v48 }
 0x250   :  { %v945_v15 = vperm.slane %v937_v56, %v3137_v20  ;;  %v960_v23 = vrot.slane %v959_v6, 4  ;;  %v963_v57 = vsel %vm398_vm14, %v959_v6, %v962_v28  ;;  %v783_v30 = vrot.slane %v782_v41, 4  ;;  %v1087_v41 = vpop.permute.xlu0 %1086 }
 0x251   :  { %v3449_v31 = vpack.i.b16 %v578_v40, %v577_v5  ;;  %2725 = vmatmul.msk.bf16.vlgmr.msrb.gmra.mxu3 %vm1560_vm15, %v3444_v13  ;;  %v935_v55 = vsel %vm398_vm14, %v934_v62, %v3356_v32  ;;  %v971_v46 = vperm.slane %v963_v57, %v3137_v20  ;;  %v801_v47 = vperm.slane %v797_v16, %v3129_v3 }
 0x252   :  { %v941_v48 = vperm.slane %v935_v55, %v3137_v20  ;;  %v948_v63 = vrot.slane %v945_v15, 4  ;;  %v961_v29 = vsel %vm398_vm14, %v960_v23, %v3371_v50  ;;  %v784_v17 = vsel %vm398_vm14, %v783_v30, %v776_v36 }
 0x253   :  { %2726 = vmatmul.msk.bf16.vlgmr.msra.gmra.mxu0 %vm1560_vm15, %v3449_v31  ;;  %v967_v32 = vperm.slane %v961_v29, %v3137_v20  ;;  %v974_v19 = vrot.slane %v971_v46, 4  ;;  %v795_v1 = vperm.slane %v3291_v9, %v3129_v3  ;;  %v802_v28 = vrot.slane %v801_v47, 4 }
 0x254   :  { %v946_v37 = vrot.slane %v941_v48, 4  ;;  %v949_v14 = vsel %vm398_vm14, 0, %v948_v63  ;;  %v3471_v50 = vsel %vm398_vm14, %v948_v63, %v941_v48  ;;  %v788_v26 = vperm.slane %v784_v17, %v3137_v20 }
 0x255   :  { %v3475_v36 = vsel %vm398_vm14, 0, %v920_v53  ;;  %v972_v49 = vrot.slane %v967_v32, 4  ;;  %v3478_v21 = vsel %vm398_vm14, 0, %v974_v19  ;;  %v1334_v10 = vpack.i.b16 %v1321_v35, %v3105_v58 }
 0x256   :  { %v1018_v9 = vperm.slane %v3471_v50, %v3129_v3  ;;  %v1019_v22 = vrot.slane %v949_v14, 4  ;;  %v803_v5 = vsel %vm398_vm14, %v802_v28, %v795_v1  ;;  %v1336_v6 = vshrl.u32 %v1321_v35, 16 }
 0x257   :  { %v947_v16 = vsel %vm398_vm14, 0, %v946_v37  ;;  %v3486_v40 = vsel %vm398_vm14, %v974_v19, %v967_v32  ;;  %v1038_v53 = vrot.slane %v3478_v21, 4  ;;  %v807_v62 = vperm.slane %v803_v5, %v3137_v20  ;;  %v1323_v5 = vpop.permute.xlu1 %1322 }
 0x258   :  { %v3491_v56 = vsel %vm398_vm14, 0, %v972_v49  ;;  %v825_v15 = vshrl.u32 %v788_v26, 16  ;;  %v789_v23 = vrot.slane %v788_v26, 4  ;;  %v1098_v57 = vpack.i.b16 %v1087_v41, %v3403_v18 }
 0x259   :  { %v824_v30 = vpack.i.b16 %v807_v62, %v788_v26  ;;  %v826_v55 = vshrl.u32 %v807_v62, 16  ;;  %v808_v46 = vrot.slane %v807_v62, 4  ;;  %v1100_v47 = vshrl.u32 %v1087_v41, 16 }
 0x25a   :  { %v3495_v48 = vsel %vm398_vm14, %v1019_v22, %v947_v16  ;;  %v790_v63 = vsel %vm398_vm14, 0, %v789_v23  ;;  %v1337_v29 = vpack.i.b16 %v1336_v6, %v1335_v38  ;;  %v1123_v17 = vperm.slane %v1098_v57, %v3129_v3 }
 0x25b   :  { %v1641_v35 = vsel %vm1560_vm15, %v824_v30, 0  ;;  %v827_v32 = vpack.i.b16 %v826_v55, %v825_v15  ;;  %v809_v19 = vsel %vm398_vm14, 0, %v808_v46  ;;  %v3504_v1 = vperm.slane %v1334_v10, %v3129_v3 }
 0x25c   :  { %1650 = vmatpush.bf16.xpose.msra.mxu1 %v1641_v35  ;;  %v830_v28 = vpack.i.b16 %v809_v19, %v790_v63  ;;  %v831_v37 = vshrl.u32 %v790_v63, 16  ;;  %v832_v14 = vshrl.u32 %v809_v19, 16  ;;  %v1101_v26 = vpack.i.b16 %v1100_v47, %v1099_v45 }
 0x25d   :  { %v1660_v58 = vsel %vm1560_vm15, %v827_v32, 0  ;;  %v1124_v38 = vrot.slane %v1123_v17, 4  ;;  %v1127_v49 = vsel %vm398_vm14, %v1123_v17, %v1126_v11  ;;  %v542_v10 = vsel %vm398_vm14, %v3340_v42, %v534_v44 }
 0x25e   :  { %1669 = vmatpush.bf16.xpose.msra.mxu2 %v1660_v58  ;;  %v1679_v41 = vsel %vm1560_vm15, %v830_v28, 0  ;;  %v833_v22 = vpack.i.b16 %v832_v14, %v831_v37  ;;  %v1135_v18 = vperm.slane %v1127_v49, %v3137_v20  ;;  %v1149_v45 = vperm.slane %v1101_v26, %v3129_v3  ;;  %v1325_v14 = vpop.permute.xlu0 %1324 }
 0x25f   :  { %1688 = vmatpush.bf16.xpose.msra.mxu3 %v1679_v41  ;;  %v3521_v6 = vperm.slane %v1337_v29, %v3129_v3  ;;  %v1125_v11 = vsel %vm398_vm14, %v1124_v38, %v3338_v24  ;;  %v546_v25 = vperm.slane %v542_v10, %v3137_v20  ;;  %v561_v44 = vsel %vm398_vm14, %v3361_v54, %v553_v59 }
 0x260   :  { %v1698_v42 = vsel %vm1560_vm15, %v833_v22, 0  ;;  %v1131_v16 = vperm.slane %v1125_v11, %v3137_v20  ;;  %v1138_v62 = vrot.slane %v1135_v18, 4  ;;  %v1150_v15 = vrot.slane %v1149_v45, 4 }
 0x261   :  { %1707 = vmatpush.bf16.xpose.msrb.mxu0 %v1698_v42  ;;  %v1153_v23 = vsel %vm398_vm14, %v1149_v45, %v1152_v34  ;;  %v565_v24 = vperm.slane %v561_v44, %v3137_v20  ;;  %v547_v57 = vrot.slane %v546_v25, 4  ;;  %v1346_v30 = vpack.i.b16 %v1323_v5, %v3113_v60 }
 0x262   :  { %v1136_v33 = vrot.slane %v1131_v16, 4  ;;  %v1139_v55 = vsel %vm398_vm14, 0, %v1138_v62  ;;  %v1151_v59 = vsel %vm398_vm14, %v1150_v15, %v3347_v27  ;;  %v1161_v54 = vperm.slane %v1153_v23, %v3137_v20 }
 0x263   :  { %v1157_v46 = vperm.slane %v1151_v59, %v3137_v20  ;;  %v3544_v47 = vsel %vm398_vm14, %v1138_v62, %v1131_v16  ;;  %v1223_v63 = vrot.slane %v1139_v55, 4  ;;  %v3546_v34 = vpack.i.b16 %v565_v24, %v546_v25 }
 0x264   :  { %v1137_v29 = vsel %vm398_vm14, 0, %v1136_v33  ;;  %v1164_v17 = vrot.slane %v1161_v54, 4  ;;  %v583_v35 = vshrl.u32 %v546_v25, 16  ;;  %v584_v32 = vshrl.u32 %v565_v24, 16 }
 0x265   :  { %v1162_v19 = vrot.slane %v1157_v46, 4  ;;  %v3550_v28 = vsel %vm398_vm14, %v1223_v63, %v1137_v29  ;;  %2727 = vmatmul.msk.bf16.vlgmr.msra.gmra.mxu1 %vm1560_vm15, %v3546_v34  ;;  %v548_v27 = vsel %vm398_vm14, 0, %v547_v57  ;;  %v566_v37 = vrot.slane %v565_v24, 4 }
 0x266   :  { %v1368_v26 = vrot.slane %v3504_v1, 4  ;;  %v1394_v58 = vrot.slane %v3521_v6, 4  ;;  %v3558_v38 = vsel %vm398_vm14, %v1164_v17, %v1157_v46  ;;  %v3560_v49 = vpack.i.b16 %v584_v32, %v583_v35  ;;  %v3601_v46 = vpop.permute.xlu1 %1326 }
 0x267   :  { %v3563_v10 = vsel %vm398_vm14, 0, %v1164_v17  ;;  %v1222_v41 = vperm.slane %v3544_v47, %v3129_v3  ;;  %v567_v22 = vsel %vm398_vm14, 0, %v566_v37  ;;  %v1348_v18 = vshrl.u32 %v1323_v5, 16 }
 0x268   :  { %2728 = vmatmul.msk.bf16.vlgmr.msra.gmra.mxu2 %vm1560_vm15, %v3560_v49  ;;  %v3570_v45 = vpack.i.b16 %v567_v22, %v548_v27  ;;  %v589_v11 = vshrl.u32 %v548_v27, 16  ;;  %v590_v25 = vshrl.u32 %v567_v22, 16  ;;  %v1340_v44 = vpack.i.b16 %v3399_v52, %v1325_v14 }
 0x269   :  { %v3574_v42 = vsel %vm398_vm14, 0, %v1162_v19  ;;  %v3577_v16 = vperm.slane %v1346_v30, %v3129_v3  ;;  %v1341_v62 = vshrl.u32 %v1325_v14, 16  ;;  %v986_v15 = vperm.slane %v3424_v12, %v3129_v3 }
 0x26a   :  { %v1242_v5 = vrot.slane %v3563_v10, 4  ;;  %2729 = vmatmul.msk.bf16.vlgmr.msra.gmra.mxu3 %vm1560_vm15, %v3570_v45  ;;  %v3584_v23 = vpack.i.b16 %v590_v25, %v589_v11  ;;  %v1365_v24 = vperm.slane %v1340_v44, %v3129_v3  ;;  %v1001_v57 = vsel %vm398_vm14, %v1000_v0, %v3475_v36 }
 0x26b   :  { %v1349_v30 = vpack.i.b16 %v1348_v18, %v1347_v39  ;;  %v1343_v12 = vpack.i.b16 %v1342_v4, %v1341_v62  ;;  %v987_v33 = vrot.slane %v986_v15, 4  ;;  %v1005_v55 = vperm.slane %v1001_v57, %v3129_v3 }
 0x26c   :  { %2730 = vmatmul.msk.bf16.vlgmr.msrb.gmra.mxu0 %vm1560_vm15, %v3584_v23  ;;  %v1366_v59 = vrot.slane %v1365_v24, 4  ;;  %v1369_v54 = vsel %vm398_vm14, %v1365_v24, %v1368_v26  ;;  %v999_v51 = vperm.slane %v3430_v2, %v3129_v3  ;;  %v1024_v60 = vperm.slane %v3495_v48, %v3129_v3 }
 0x26d   :  { %v1420_v39 = vrot.slane %v3577_v16, 4  ;;  %v1377_v52 = vperm.slane %v1369_v54, %v3137_v20  ;;  %v1391_v4 = vperm.slane %v1343_v12, %v3129_v3  ;;  %v988_v0 = vsel %vm398_vm14, %v987_v33, %v980_v61 }
 0x26e   :  { %v1367_v36 = vsel %vm398_vm14, %v1366_v59, %v3504_v1  ;;  %v992_v2 = vperm.slane %v988_v0, %v3137_v20  ;;  %v1006_v63 = vrot.slane %v1005_v55, 4  ;;  %v1025_v29 = vrot.slane %v1024_v60, 4  ;;  %v1331_v60 = vpop.permute.xlu1 %1330 }
 0x26f   :  { %v1373_v48 = vperm.slane %v1367_v36, %v3137_v20  ;;  %v1380_v17 = vrot.slane %v1377_v52, 4  ;;  %v1392_v35 = vrot.slane %v1391_v4, 4  ;;  %v1395_v32 = vsel %vm398_vm14, %v1391_v4, %v1394_v58 }
 0x270   :  { %v3618_v19 = vperm.slane %v1349_v30, %v3129_v3  ;;  %v1403_v8 = vperm.slane %v1395_v32, %v3137_v20  ;;  %v1007_v61 = vsel %vm398_vm14, %v1006_v63, %v999_v51  ;;  %v993_v27 = vrot.slane %v992_v2, 4 }
 0x271   :  { %v1378_v37 = vrot.slane %v1373_v48, 4  ;;  %v1381_v1 = vsel %vm398_vm14, 0, %v1380_v17  ;;  %v1393_v14 = vsel %vm398_vm14, %v1392_v35, %v3521_v6  ;;  %v1460_v26 = vsel %vm398_vm14, %v1380_v17, %v1373_v48 }
 0x272   :  { %v1399_v22 = vperm.slane %v1393_v14, %v3137_v20  ;;  %v1406_v18 = vrot.slane %v1403_v8, 4  ;;  %v1465_v58 = vrot.slane %v1381_v1, 4  ;;  %v1353_v11 = vshrl.u32 %v3601_v46, 16 }
 0x273   :  { %v1379_v25 = vsel %vm398_vm14, 0, %v1378_v37  ;;  %v1011_v44 = vperm.slane %v1007_v61, %v3137_v20  ;;  %v994_v62 = vsel %vm398_vm14, 0, %v993_v27  ;;  %v1026_v15 = vsel %vm398_vm14, %v1025_v29, %v1018_v9 }
 0x274   :  { %v1446_v6 = vrot.slane %v3618_v19, 4  ;;  %v1404_v24 = vrot.slane %v1399_v22, 4  ;;  %v1464_v57 = vperm.slane %v1460_v26, %v3129_v3  ;;  %v1055_v30 = vshrl.u32 %v992_v2, 16 }
 0x275   :  { %v3638_v12 = vsel %vm398_vm14, 0, %v1406_v18  ;;  %v1054_v33 = vpack.i.b16 %v1011_v44, %v992_v2  ;;  %v1056_v55 = vshrl.u32 %v1011_v44, 16  ;;  %v1012_v59 = vrot.slane %v1011_v44, 4 }
 0x276   :  { %v1466_v54 = vsel %vm398_vm14, %v1465_v58, %v1379_v25  ;;  %v3642_v51 = vsel %vm398_vm14, %v1406_v18, %v1399_v22  ;;  %v1061_v50 = vshrl.u32 %v994_v62, 16  ;;  %v1030_v9 = vperm.slane %v1026_v15, %v3137_v20 }
 0x277   :  { %v1714_v52 = vsel %vm1560_vm15, %v1054_v33, 0  ;;  %v1057_v4 = vpack.i.b16 %v1056_v55, %v1055_v30  ;;  %v1013_v0 = vsel %vm398_vm14, 0, %v1012_v59  ;;  %v1039_v36 = vsel %vm398_vm14, %v1038_v53, %v3491_v56 }
 0x278   :  { %1723 = vmatpush.bf16.xpose.msrb.mxu1 %v1714_v52  ;;  %v1060_v2 = vpack.i.b16 %v1013_v0, %v994_v62  ;;  %v1062_v63 = vshrl.u32 %v1013_v0, 16  ;;  %v1037_v29 = vperm.slane %v3486_v40, %v3129_v3  ;;  %v1043_v48 = vperm.slane %v1039_v36, %v3129_v3 }
 0x279   :  { %v1730_v17 = vsel %vm1560_vm15, %v1057_v4, 0  ;;  %v1031_v35 = vrot.slane %v1030_v9, 4  ;;  %v1352_v32 = vpack.i.b16 %v1331_v60, %v3601_v46  ;;  %v1354_v8 = vshrl.u32 %v1331_v60, 16 }
 0x27a   :  { %1739 = vmatpush.bf16.xpose.msrb.mxu2 %v1730_v17  ;;  %v1746_v61 = vsel %vm1560_vm15, %v1060_v2, 0  ;;  %v1063_v21 = vpack.i.b16 %v1062_v63, %v1061_v50  ;;  %v1044_v27 = vrot.slane %v1043_v48, 4  ;;  %v1470_v53 = vperm.slane %v1466_v54, %v3129_v3 }
 0x27b   :  { %v1484_v56 = vrot.slane %v3638_v12, 4  ;;  %1755 = vmatpush.bf16.xpose.msrb.mxu3 %v1746_v61  ;;  %v1032_v40 = vsel %vm398_vm14, 0, %v1031_v35  ;;  %v1355_v37 = vpack.i.b16 %v1354_v8, %v1353_v11  ;;  %v1417_v1 = vperm.slane %v1352_v32, %v3129_v3 }
 0x27c   :  { %v1405_v14 = vsel %vm398_vm14, 0, %v1404_v24  ;;  %v1762_v46 = vsel %vm1560_vm15, %v1063_v21, 0  ;;  %v1045_v26 = vsel %vm398_vm14, %v1044_v27, %v1037_v29  ;;  %v1471_v22 = vrot.slane %v1470_v53, 4 }
 0x27d   :  { %1771 = vmatpush.bf16.xpose.msra.mxu0 %v1762_v46  ;;  %v1049_v18 = vperm.slane %v1045_v26, %v3137_v20  ;;  %v1418_v58 = vrot.slane %v1417_v1, 4  ;;  %v1421_v25 = vsel %vm398_vm14, %v1417_v1, %v1420_v39  ;;  %v1443_v44 = vperm.slane %v1355_v37, %v3129_v3 }
 0x27e   :  { %v1067_v11 = vshrl.u32 %v1030_v9, 16  ;;  %v1073_v62 = vshrl.u32 %v1032_v40, 16  ;;  %v1429_v15 = vperm.slane %v1421_v25, %v3137_v20  ;;  %v1472_v24 = vsel %vm398_vm14, %v1471_v22, %v1464_v57 }
 0x27f   :  { %2731 = vmatmul.msk.bf16.vlgmr.msrb.gmra.mxu1 %vm1560_vm15, %v3408_v43  ;;  %v1066_v30 = vpack.i.b16 %v1049_v18, %v1030_v9  ;;  %v1068_v12 = vshrl.u32 %v1049_v18, 16  ;;  %v1050_v33 = vrot.slane %v1049_v18, 4  ;;  %v1419_v55 = vsel %vm398_vm14, %v1418_v58, %v3577_v16 }
 0x280   :  { %v1425_v59 = vperm.slane %v1419_v55, %v3137_v20  ;;  %v1432_v39 = vrot.slane %v1429_v15, 4  ;;  %v1444_v54 = vrot.slane %v1443_v44, 4  ;;  %v1447_v50 = vsel %vm398_vm14, %v1443_v44, %v1446_v6 }
 0x281   :  { %v1778_v60 = vsel %vm1560_vm15, %v1066_v30, 0  ;;  %2732 = vmatmul.msk.bf16.vlgmr.msrb.gmra.mxu2 %vm1560_vm15, %v3420_v7  ;;  %v1069_v57 = vpack.i.b16 %v1068_v12, %v1067_v11  ;;  %v1051_v43 = vsel %vm398_vm14, 0, %v1050_v33  ;;  %v1455_v9 = vperm.slane %v1447_v50, %v3137_v20 }
 0x282   :  { %1787 = vmatpush.bf16.xpose.msra.mxu1 %v1778_v60  ;;  %2733 = vmatmul.msk.bf16.vlgmr.msrb.gmra.mxu3 %vm1560_vm15, %v3444_v13  ;;  %v1072_v16 = vpack.i.b16 %v1051_v43, %v1032_v40  ;;  %v1074_v52 = vshrl.u32 %v1051_v43, 16  ;;  %v1430_v4 = vrot.slane %v1425_v59, 4  ;;  %v1433_v0 = vsel %vm398_vm14, 0, %v1432_v39 }
 0x283   :  { %v1794_v6 = vsel %vm1560_vm15, %v1069_v57, 0  ;;  %v1445_v36 = vsel %vm398_vm14, %v1444_v54, %v3618_v19  ;;  %v1458_v7 = vrot.slane %v1455_v9, 4  ;;  %v1485_v2 = vsel %vm398_vm14, %v1484_v56, %v1405_v14 }
 0x284   :  { %1803 = vmatpush.bf16.xpose.msra.mxu2 %v1794_v6  ;;  %v1810_v63 = vsel %vm1560_vm15, %v1072_v16, 0  ;;  %2734 = vmatmul.msk.bf16.vlgmr.msra.gmra.mxu0 %vm1560_vm15, %v3449_v31  ;;  %v1075_v13 = vpack.i.b16 %v1074_v52, %v1073_v62  ;;  %v1431_v29 = vsel %vm398_vm14, 0, %v1430_v4  ;;  %v1451_v48 = vperm.slane %v1445_v36, %v3137_v20 }
 0x285   :  { %1819 = vmatpush.bf16.xpose.msra.mxu3 %v1810_v63  ;;  %v1459_v17 = vsel %vm398_vm14, 0, %v1458_v7  ;;  %v1503_v35 = vrot.slane %v1433_v0, 4  ;;  %v1476_v19 = vperm.slane %v1472_v24, %v3137_v20  ;;  %v1483_v32 = vperm.slane %v3642_v51, %v3129_v3 }
 0x286   :  { %v1826_v8 = vsel %vm1560_vm15, %v1075_v13, 0  ;;  %v1456_v61 = vrot.slane %v1451_v48, 4  ;;  %v1498_v21 = vsel %vm398_vm14, %v1432_v39, %v1425_v59  ;;  %v1522_v31 = vrot.slane %v1459_v17, 4 }
 0x287   :  { %1835 = vmatpush.bf16.xpose.msrb.mxu0 %v1826_v8  ;;  %v1504_v27 = vsel %vm398_vm14, %v1503_v35, %v1431_v29  ;;  %v1489_v53 = vperm.slane %v1485_v2, %v3129_v3  ;;  %v1477_v56 = vrot.slane %v1476_v19, 4  ;;  %v1517_v37 = vsel %vm398_vm14, %v1458_v7, %v1451_v48 }
 0x288   :  { %v1457_v40 = vsel %vm398_vm14, 0, %v1456_v61  ;;  %v1508_v1 = vperm.slane %v1504_v27, %v3129_v3  ;;  %v1228_v51 = vperm.slane %v3550_v28, %v3129_v3  ;;  %v1502_v14 = vperm.slane %v1498_v21, %v3129_v3 }
 0x289   :  { %v1490_v46 = vrot.slane %v1489_v53, 4  ;;  %v1539_v26 = vshrl.u32 %v1476_v19, 16  ;;  %v1523_v22 = vsel %vm398_vm14, %v1522_v31, %v1457_v40  ;;  %v1478_v18 = vsel %vm398_vm14, 0, %v1477_v56 }
 0x28a   :  { %v1509_v58 = vrot.slane %v1508_v1, 4  ;;  %v1527_v25 = vperm.slane %v1523_v22, %v3129_v3  ;;  %v1229_v44 = vrot.slane %v1228_v51, 4  ;;  %v1521_v62 = vperm.slane %v1517_v37, %v3129_v3 }
 0x28b   :  { %v1491_v11 = vsel %vm398_vm14, %v1490_v46, %v1483_v32  ;;  %v1241_v15 = vperm.slane %v3558_v38, %v3129_v3  ;;  %v1243_v28 = vsel %vm398_vm14, %v1242_v5, %v3574_v42  ;;  %v1545_v55 = vshrl.u32 %v1478_v18, 16 }
 0x28c   :  { %v1495_v24 = vperm.slane %v1491_v11, %v3137_v20  ;;  %v1510_v30 = vsel %vm398_vm14, %v1509_v58, %v1502_v14  ;;  %v1528_v12 = vrot.slane %v1527_v25, 4  ;;  %v1230_v33 = vsel %vm398_vm14, %v1229_v44, %v1222_v41  ;;  %v328_v58 = vpop.f32.mrf.mxu3 }
 0x28d   :  { %v1514_v59 = vperm.slane %v1510_v30, %v3137_v20  ;;  %v3727_v38 = vperm.slane %v1230_v33, %v3137_v20  ;;  %v1247_v10 = vperm.slane %v1243_v28, %v3129_v3 }
 0x28e   :  { %v1538_v39 = vpack.i.b16 %v1495_v24, %v1476_v19  ;;  %v1540_v42 = vshrl.u32 %v1495_v24, 16  ;;  %v1496_v5 = vrot.slane %v1495_v24, 4  ;;  %v1529_v54 = vsel %vm398_vm14, %v1528_v12, %v1521_v62 }
 0x28f   :  { %2735 = vmatmul.msk.bf16.vlgmr.msra.gmra.mxu1 %vm1560_vm15, %v3546_v34  ;;  %v1533_v47 = vperm.slane %v1529_v54, %v3137_v20  ;;  %v1551_v50 = vshrl.u32 %v1514_v59, 16  ;;  %v1515_v41 = vrot.slane %v1514_v59, 4  ;;  %v1248_v60 = vrot.slane %v1247_v10, 4 }
 0x290   :  { %v2031_v57 = vsel %vm2029_vm1, %v1538_v39, 0  ;;  %v1541_v43 = vpack.i.b16 %v1540_v42, %v1539_v26  ;;  %v1497_v9 = vsel %vm398_vm14, 0, %v1496_v5  ;;  %v1297_v16 = vshrl.u32 %v3727_v38, 16 }
 0x291   :  { %2040 = vmatpush.bf16.msrb.mxu1 %v2031_v57  ;;  %2736 = vmatmul.msk.bf16.vlgmr.msra.gmra.mxu2 %vm1560_vm15, %v3560_v49  ;;  %v1544_v52 = vpack.i.b16 %v1497_v9, %v1478_v18  ;;  %v1546_v4 = vshrl.u32 %v1497_v9, 16  ;;  %v1550_v0 = vpack.i.b16 %v1533_v47, %v1514_v59  ;;  %v1552_v34 = vshrl.u32 %v1533_v47, 16 }
 0x292   :  { %2737 = vmatmul.msk.bf16.vlgmr.msra.gmra.mxu3 %vm1560_vm15, %v3570_v45  ;;  %v2050_v6 = vsel %vm2029_vm1, %v1541_v43, 0  ;;  %v1516_v36 = vsel %vm398_vm14, 0, %v1515_v41  ;;  %v1534_v7 = vrot.slane %v1533_v47, 4  ;;  %v1249_v2 = vsel %vm398_vm14, %v1248_v60, %v1241_v15 }
 0x293   :  { %2059 = vmatpush.bf16.msrb.mxu2 %v2050_v6  ;;  %v2069_v63 = vsel %vm2029_vm1, %v1544_v52, 0  ;;  %v1547_v13 = vpack.i.b16 %v1546_v4, %v1545_v55  ;;  %v2107_v49 = vsel %vm2029_vm1, %v1550_v0, 0  ;;  %v1553_v29 = vpack.i.b16 %v1552_v34, %v1551_v50 }
 0x294   :  { %2078 = vmatpush.bf16.msrb.mxu3 %v2069_v63  ;;  %2738 = vmatmul.msk.bf16.vlgmr.msrb.gmra.mxu0 %vm1560_vm15, %v3584_v23  ;;  %v1535_v45 = vsel %vm398_vm14, 0, %v1534_v7  ;;  %v1557_v48 = vshrl.u32 %v1516_v36, 16  ;;  %v3750_v17 = vperm.slane %v1249_v2, %v3137_v20  ;;  %v1235_v35 = vrot.slane %v3727_v38, 4 }
 0x295   :  { %v2088_v19 = vsel %vm2029_vm1, %v1547_v13, 0  ;;  %2116 = vmatpush.bf16.msra.mxu1 %v2107_v49  ;;  %v2126_v32 = vsel %vm2029_vm1, %v1553_v29, 0  ;;  %v1556_v8 = vpack.i.b16 %v1535_v45, %v1516_v36  ;;  %v1558_v61 = vshrl.u32 %v1535_v45, 16 }
 0x296   :  { %2097 = vmatpush.bf16.msra.mxu0 %v2088_v19  ;;  %v1296_v23 = vpack.i.b16 %v3750_v17, %v3727_v38  ;;  %v1298_v21 = vshrl.u32 %v3750_v17, 16  ;;  %v3759_v31 = vsel %vm398_vm14, 0, %v1235_v35  ;;  %v1254_v27 = vrot.slane %v3750_v17, 4 }
 0x297   :  { %2135 = vmatpush.bf16.msra.mxu2 %v2126_v32  ;;  %v2145_v53 = vsel %vm2029_vm1, %v1556_v8, 0  ;;  %v1559_v56 = vpack.i.b16 %v1558_v61, %v1557_v48  ;;  %v1303_v51 = vshrl.u32 %v3759_v31, 16  ;;  %v3808_v0 = vpack.c.bf16 %v328_v58, %v328_v58 }
 0x298   :  { %2154 = vmatpush.bf16.msra.mxu3 %v2145_v53  ;;  %v3763_v40 = vpack.i.b16 %v1298_v21, %v1297_v16  ;;  %v3766_v37 = vsel %vm398_vm14, 0, %v1254_v27 }
 0x299   :  { %v2164_v1 = vsel %vm2029_vm1, %v1559_v56, 0  ;;  %v1304_v14 = vshrl.u32 %v3766_v37, 16  ;;  %v1302_v46 = vpack.i.b16 %v3766_v37, %v3759_v31 }
 0x29a   :  { %2173 = vmatpush.bf16.msrb.mxu0 %v2164_v1 }
 0x29b   :  { %v3773_v26 = vpack.i.b16 %v1304_v14, %v1303_v51 }
 0x2c8   :  { %v3775_v22 = vpop.f32.mrf.mxu1 }
 0x2c9   :  { %v1842_v18 = vsel %vm1841_vm2, %v3775_v22, -inf }
 0x2ca   :  { %1843 = vmax.xlane.f32.xlu2 %v1842_v18 }
 0x2d0   :  { %v3779_v25 = vpop.f32.mrf.mxu0  ;;  %v1578_v44 = vpop.f32.mrf.mxu1 }
 0x2d1   :  { %v3781_v11 = vpop.f32.mrf.mxu2  ;;  %v1851_v62 = vsel %vm1841_vm2, %v3779_v25, -inf }
 0x2d2   :  { %v1845_v15 = vsel %vm1841_vm2, %v3781_v11, -inf  ;;  %1852 = vmax.xlane.f32.xlu2 %v1851_v62 }
 0x2d3   :  { %1846 = vmax.xlane.f32.xlu0 %v1845_v15 }
 0x2d4   :  { %v3787_v28 = vpop.f32.mrf.mxu3 }
 0x2d5   :  { %v1848_v24 = vsel %vm1841_vm2, %v3787_v28, -inf }
 0x2d6   :  { %1849 = vmax.xlane.f32.xlu1 %v1848_v24 }
 0x2d8   :  { %v1635_v30 = vpop.f32.mrf.mxu0 }
 0x2d9   :  { %v1597_v12 = vpop.f32.mrf.mxu2 }
 0x2dc   :  { %v1616_v33 = vpop.f32.mrf.mxu3 }
 0x2e2   :  { %v3791_v55 = vpop.f32.mrf.mxu1 }
 0x2e3   :  { %v1854_v59 = vsel %vm1841_vm2, %v3791_v55, -inf }
 0x2e4   :  { %1855 = vmax.xlane.f32.xlu1 %v1854_v59 }
 0x2e9   :  { %v3795_v10 = vpop.f32.mrf.mxu0 }
 0x2ea   :  { %v1863_v39 = vsel %vm1841_vm2, %v3795_v10, -inf  ;;  %v1654_v42 = vpop.f32.mrf.mxu1 }
 0x2eb   :  { %1864 = vmax.xlane.f32.xlu2 %v1863_v39  ;;  %v3799_v5 = vpop.f32.mrf.mxu2 }
 0x2ec   :  { %v1857_v54 = vsel %vm1841_vm2, %v3799_v5, -inf }
 0x2ed   :  { %v3803_v47 = vpop.f32.mrf.mxu3  ;;  %1858 = vmax.xlane.f32.xlu1 %v1857_v54 }
 0x2ee   :  { %v1860_v41 = vsel %vm1841_vm2, %v3803_v47, -inf }
 0x2f1   :  { %v1711_v50 = vpop.f32.mrf.mxu0 }
 0x2f3   :  { %1861 = vmax.xlane.f32.xlu2 %v1860_v41  ;;  %v1673_v60 = vpop.f32.mrf.mxu2 }
 0x2f5   :  { %v1692_v57 = vpop.f32.mrf.mxu3 }
 0x2fc   :  { %v1725_v43 = vpop.f32.mrf.mxu1 }
 0x2fd   :  { %v1866_v9 = vsel %vm1841_vm2, %v1725_v43, -inf }
 0x2fe   :  { %1867 = vmax.xlane.f32.xlu0 %v1866_v9 }
 0x301   :  { %v1773_v16 = vpop.f32.mrf.mxu0 }
 0x302   :  { %v1875_v36 = vsel %vm1841_vm2, %v1773_v16, -inf }
 0x304   :  { %v1727_v52 = vpop.f32.mrf.mxu1  ;;  %v1741_v4 = vpop.f32.mrf.mxu2 }
 0x305   :  { %v3810_v34 = vpop.f32.mrf.mxu3  ;;  %v1869_v6 = vsel %vm1841_vm2, %v1741_v4, -inf }
 0x306   :  { %1870 = vmax.xlane.f32.xlu2 %v1869_v6  ;;  %1876 = vmax.xlane.f32.xlu0 %v1875_v36  ;;  %v1872_v49 = vsel %vm1841_vm2, %v3810_v34, -inf }
 0x307   :  { %1080 = vrot.lane.b32.xlu1 %v3808_v0, %s2899_s5 }
 0x309   :  { %v1775_v7 = vpop.f32.mrf.mxu0 }
 0x30c   :  { %v1743_v2 = vpop.f32.mrf.mxu2  ;;  %v3816_v63 = vpop.f32.mrf.mxu1 }
 0x30d   :  { %v1759_v13 = vpop.f32.mrf.mxu3  ;;  %v1878_v29 = vsel %vm1841_vm2, %v3816_v63, -inf }
 0x30e   :  { %1873 = vmax.xlane.f32.xlu0 %v1872_v49  ;;  %1879 = vmax.xlane.f32.xlu2 %v1878_v29 }
 0x311   :  { %v3822_v45 = vpop.f32.mrf.mxu0 }
 0x312   :  { %v1887_v32 = vsel %vm1841_vm2, %v3822_v45, -inf }
 0x314   :  { %v1791_v48 = vpop.f32.mrf.mxu1  ;;  %v3824_v35 = vpop.f32.mrf.mxu2 }
 0x315   :  { %v3826_v19 = vpop.f32.mrf.mxu3  ;;  %v1881_v27 = vsel %vm1841_vm2, %v3824_v35, -inf }
 0x316   :  { %1888 = vmax.xlane.f32.xlu0 %v1887_v32  ;;  %v1884_v53 = vsel %vm1841_vm2, %v3826_v19, -inf }
 0x319   :  { %v1839_v8 = vpop.f32.mrf.mxu0 }
 0x31c   :  { %v1807_v61 = vpop.f32.mrf.mxu2 }
 0x31d   :  { %v1823_v21 = vpop.f32.mrf.mxu3 }
 0x31e   :  { %1882 = vmax.xlane.f32.xlu0 %v1881_v27 }
 0x326   :  { %1084 = vrot.lane.b32.xlu2 %v3808_v0, %s2898_s3  ;;  %1885 = vmax.xlane.f32.xlu0 %v1884_v53 }
 0x33a   :  { %1088 = vrot.lane.b32.xlu0 %v3808_v0, %s2897_s2 }
 0x33d   :  { %v1844_v56 = vpop.xlane.xlu2 %1843 }
 0x345   :  { %v1853_v1 = vpop.xlane.xlu2 %1852 }
 0x346   :  { %v1847_v14 = vpop.xlane.xlu0 %1846 }
 0x349   :  { %v1850_v24 = vpop.xlane.xlu1 %1849 }
 0x357   :  { %v1856_v7 = vpop.xlane.xlu1 %1855 }
 0x35e   :  { %v3838_v51 = vpop.xlane.xlu2 %1864 }
 0x366   :  { %v3840_v18 = vpop.xlane.xlu2 %1861 }
 0x371   :  { %v1868_v58 = vpop.xlane.xlu0 %1867 }
 0x372   :  { %v1890_v44 = vmax.f32 %v1844_v56, %v1868_v58 }
 0x374   :  { %v1898_v62 = vsub.f32 %v3775_v22, %v1890_v44  ;;  %v1922_v15 = vsub.f32 %v1725_v43, %v1890_v44 }
 0x376   :  { %v1906_v30 = vmul.f32 1.442695, %v1898_v62  ;;  %v1930_v12 = vmul.f32 1.442695, %v1922_v15  ;;  %v2240_v62 = vsel %vm2029_vm1, %v3773_v26, 0 }
 0x378   :  { %2822 = vpow2.f32 %v1906_v30 }
 0x379   :  { %2824 = vpow2.f32 %v1930_v12  ;;  %v1871_v33 = vpop.xlane.xlu2 %1870  ;;  %v1877_v59 = vpop.xlane.xlu0 %1876 }
 0x37a   :  { %v1891_v39 = vmax.f32 %v1847_v14, %v1871_v33  ;;  %v1893_v42 = vmax.f32 %v1853_v1, %v1877_v59  ;;  %v1859_v59 = vpop.xlane.xlu1 %1858 }
 0x37c   :  { %v1899_v54 = vsub.f32 %v3781_v11, %v1891_v39  ;;  %v1923_v50 = vsub.f32 %v1741_v4, %v1891_v39  ;;  %v1901_v41 = vsub.f32 %v3779_v25, %v1893_v42  ;;  %v1925_v60 = vsub.f32 %v1773_v16, %v1893_v42 }
 0x37d   :  { %v2183_v4 = vsel %vm2029_vm1, %v1296_v23, 0 }
 0x37e   :  { %v3845_v57 = vpop.eup %2822  ;;  %v1908_v9 = vmul.f32 1.442695, %v1899_v54  ;;  %v1932_v22 = vmul.f32 1.442695, %v1923_v50  ;;  %v1912_v43 = vmul.f32 1.442695, %v1901_v41 }
 0x37f   :  { %v2825_v52 = vpop.eup %2824  ;;  %v1936_v6 = vmul.f32 1.442695, %v1925_v60  ;;  %v1946_v36 = vsel %vm1841_vm2, %v3845_v57, 0.0 }
 0x380   :  { %v2018_v2 = vpack.c.bf16 %v2825_v52, %v2825_v52  ;;  %2826 = vpow2.f32 %v1908_v9  ;;  %v1970_v13 = vsel %vm1841_vm2, %v2825_v52, 0.0  ;;  %1947 = vadd.xlane.f32.xlu1 %v1946_v36 }
 0x381   :  { %2828 = vpow2.f32 %v1932_v22  ;;  %1971 = vadd.xlane.f32.xlu0 %v1970_v13  ;;  %v1880_v25 = vpop.xlane.xlu2 %1879  ;;  %v1874_v11 = vpop.xlane.xlu0 %1873 }
 0x382   :  { %2830 = vpow2.f32 %v1912_v43  ;;  %v1894_v16 = vmax.f32 %v1856_v7, %v1880_v25  ;;  %2739 = vmatmul.msk.bf16.vlgmr.msrb.gmra.mxu1 %vm1841_vm2, %v2018_v2  ;;  %v1892_v49 = vmax.f32 %v1850_v24, %v1874_v11 }
 0x383   :  { %2832 = vpow2.f32 %v1936_v6  ;;  %2192 = vmatpush.bf16.msrb.mxu1 %v2183_v4 }
 0x384   :  { %v1926_v29 = vsub.f32 %v3816_v63, %v1894_v16  ;;  %v1900_v48 = vsub.f32 %v3787_v28, %v1892_v49  ;;  %v1924_v32 = vsub.f32 %v3810_v34, %v1892_v49  ;;  %v1902_v56 = vsub.f32 %v3791_v55, %v1894_v16 }
 0x385   :  { %v2202_v55 = vsel %vm2029_vm1, %v3763_v40, 0  ;;  %v2010_v49 = vpack.c.bf16 %v3845_v57, %v3845_v57 }
 0x386   :  { %v3858_v8 = vpop.eup %2826  ;;  %v1938_v61 = vmul.f32 1.442695, %v1926_v29  ;;  %v1910_v21 = vmul.f32 1.442695, %v1900_v48  ;;  %v1934_v53 = vmul.f32 1.442695, %v1924_v32 }
 0x387   :  { %v2829_v27 = vpop.eup %2828  ;;  %v1949_v38 = vsel %vm1841_vm2, %v3858_v8, 0.0  ;;  %v1914_v44 = vmul.f32 1.442695, %v1902_v56 }
 0x388   :  { %v3862_v17 = vpop.eup %2830  ;;  %v2019_v23 = vpack.c.bf16 %v2829_v27, %v2829_v27  ;;  %v1973_v63 = vsel %vm1841_vm2, %v2829_v27, 0.0  ;;  %2834 = vpow2.f32 %v1938_v61  ;;  %v1105_v61 = vshrl.u32 %v3808_v0, 16 }
 0x389   :  { %v3866_v1 = vpop.eup %2832  ;;  %1974 = vadd.xlane.f32.xlu2 %v1973_v63  ;;  %1950 = vadd.xlane.f32.xlu0 %v1949_v38  ;;  %v1955_v28 = vsel %vm1841_vm2, %v3862_v17, 0.0  ;;  %v1889_v34 = vpop.xlane.xlu0 %1888  ;;  %2836 = vpow2.f32 %v1910_v21 }
 0x38a   :  { %v2021_v14 = vpack.c.bf16 %v3866_v1, %v3866_v1  ;;  %1956 = vadd.xlane.f32.xlu1 %v1955_v28  ;;  %2740 = vmatmul.msk.bf16.vlgmr.msrb.gmra.mxu2 %vm1841_vm2, %v2019_v23  ;;  %v1897_v58 = vmax.f32 %v3838_v51, %v1889_v34  ;;  %2838 = vpow2.f32 %v1934_v53  ;;  %v2013_v23 = vpack.c.bf16 %v3862_v17, %v3862_v17  ;;  %v1085_v56 = vpop.permute.xlu2 %1084 }
 0x38b   :  { %2211 = vmatpush.bf16.msrb.mxu2 %v2202_v55  ;;  %2840 = vpow2.f32 %v1914_v44 }
 0x38c   :  { %2742 = vmatmul.msk.bf16.vlgmr.msra.gmra.mxu0 %vm1841_vm2, %v2021_v14  ;;  %v1929_v15 = vsub.f32 %v3822_v45, %v1897_v58  ;;  %v1905_v12 = vsub.f32 %v3795_v10, %v1897_v58  ;;  %v2221_v10 = vsel %vm2029_vm1, %v1302_v46, 0  ;;  %v1111_v14 = vshrl.u32 %v1085_v56, 16 }
 0x38d   :  { %2249 = vmatpush.bf16.msra.mxu0 %v2240_v62 }
 0x38e   :  { %v1944_v24 = vmul.f32 1.442695, %v1929_v15  ;;  %v2835_v30 = vpop.eup %2834  ;;  %v1920_v50 = vmul.f32 1.442695, %v1905_v12  ;;  %v2011_v15 = vpack.c.bf16 %v3858_v8, %v3858_v8 }
 0x38f   :  { %v3881_v33 = vpop.eup %2836  ;;  %v2022_v40 = vpack.c.bf16 %v2835_v30, %v2835_v30  ;;  %v1982_v37 = vsel %vm1841_vm2, %v2835_v30, 0.0 }
 0x390   :  { %v2839_v51 = vpop.eup %2838  ;;  %2842 = vpow2.f32 %v1944_v24  ;;  %v1952_v39 = vsel %vm1841_vm2, %v3881_v33, 0.0  ;;  %v1979_v24 = vsel %vm1841_vm2, %v3866_v1, 0.0 }
 0x391   :  { %v1883_v42 = vpop.xlane.xlu0 %1882  ;;  %v2020_v54 = vpack.c.bf16 %v2839_v51, %v2839_v51  ;;  %v1976_v26 = vsel %vm1841_vm2, %v2839_v51, 0.0  ;;  %1953 = vadd.xlane.f32.xlu2 %v1952_v39  ;;  %v3894_v9 = vpop.eup %2840  ;;  %2844 = vpow2.f32 %v1920_v50 }
 0x392   :  { %2743 = vmatmul.msk.bf16.vlgmr.msra.gmra.mxu1 %vm1841_vm2, %v2022_v40  ;;  %v1895_v45 = vmax.f32 %v1859_v59, %v1883_v42  ;;  %1977 = vadd.xlane.f32.xlu1 %v1976_v26  ;;  %v1958_v36 = vsel %vm1841_vm2, %v3894_v9, 0.0 }
 0x393   :  { %2741 = vmatmul.msk.bf16.vlgmr.msrb.gmra.mxu3 %vm1841_vm2, %v2020_v54 }
 0x394   :  { %v1903_v41 = vsub.f32 %v3799_v5, %v1895_v45  ;;  %v1927_v60 = vsub.f32 %v3824_v35, %v1895_v45  ;;  %2230 = vmatpush.bf16.msrb.mxu3 %v2221_v10 }
 0x396   :  { %v1916_v22 = vmul.f32 1.442695, %v1903_v41  ;;  %v1940_v43 = vmul.f32 1.442695, %v1927_v60  ;;  %v2843_v52 = vpop.eup %2842 }
 0x397   :  { %v2025_v6 = vpack.c.bf16 %v2843_v52, %v2843_v52  ;;  %v3903_v7 = vpop.eup %2844  ;;  %v1991_v63 = vsel %vm1841_vm2, %v2843_v52, 0.0 }
 0x398   :  { %2846 = vpow2.f32 %v1916_v22 }
 0x399   :  { %2848 = vpow2.f32 %v1940_v43  ;;  %v1886_v31 = vpop.xlane.xlu0 %1885  ;;  %1959 = vadd.xlane.f32.xlu2 %v1958_v36  ;;  %v2012_v43 = vpack.c.bf16 %v3881_v33, %v3881_v33 }
 0x39a   :  { %v1896_v46 = vmax.f32 %v3840_v18, %v1886_v31  ;;  %1983 = vadd.xlane.f32.xlu1 %v1982_v37 }
 0x39c   :  { %2746 = vmatmul.msk.bf16.vlgmr.msrb.gmra.mxu0 %vm1841_vm2, %v2025_v6  ;;  %v1904_v5 = vsub.f32 %v3803_v47, %v1896_v46  ;;  %v1928_v35 = vsub.f32 %v3826_v19, %v1896_v46  ;;  %v1967_v47 = vsel %vm1841_vm2, %v3903_v7, 0.0  ;;  %v1081_v19 = vpop.permute.xlu1 %1080 }
 0x39d   :  { %v1106_v29 = vshrl.u32 %v1081_v19, 16  ;;  %v1104_v57 = vpack.i.b16 %v1081_v19, %v3808_v0 }
 0x39e   :  { %v3905_v2 = vpop.eup %2846  ;;  %v1918_v13 = vmul.f32 1.442695, %v1904_v5  ;;  %v1942_v25 = vmul.f32 1.442695, %v1928_v35 }
 0x39f   :  { %v2849_v11 = vpop.eup %2848  ;;  %v1961_v18 = vsel %vm1841_vm2, %v3905_v2, 0.0  ;;  %v1107_v38 = vpack.i.b16 %v1106_v29, %v1105_v61  ;;  %v1170_v28 = vperm.slane %v1104_v57, %v3129_v3 }
 0x3a0   :  { %v2023_v16 = vpack.c.bf16 %v2849_v11, %v2849_v11  ;;  %2850 = vpow2.f32 %v1918_v13  ;;  %v1985_v4 = vsel %vm1841_vm2, %v2849_v11, 0.0 }
 0x3a1   :  { %2852 = vpow2.f32 %v1942_v25  ;;  %1986 = vadd.xlane.f32.xlu0 %v1985_v4  ;;  %1968 = vadd.xlane.f32.xlu2 %v1967_v47  ;;  %v1196_v34 = vperm.slane %v1107_v38, %v3129_v3  ;;  %v1178_v44 = vrot.slane %v1170_v28, 4 }
 0x3a2   :  { %2744 = vmatmul.msk.bf16.vlgmr.msra.gmra.mxu2 %vm1841_vm2, %v2023_v16  ;;  %1962 = vadd.xlane.f32.xlu1 %v1961_v18 }
 0x3a3   :  { %2747 = vmatmul.msk.bf16.vlgmr.msrb.gmra.mxu1 %vm1841_vm2, %v2010_v49  ;;  %v1204_v30 = vrot.slane %v1196_v34, 4 }
 0x3a6   :  { %v3916_v48 = vpop.eup %2850 }
 0x3a7   :  { %v2853_v32 = vpop.eup %2852  ;;  %v1964_v21 = vsel %vm1841_vm2, %v3916_v48, 0.0 }
 0x3a8   :  { %v2024_v27 = vpack.c.bf16 %v2853_v32, %v2853_v32  ;;  %v1988_v53 = vsel %vm1841_vm2, %v2853_v32, 0.0 }
 0x3a9   :  { %1965 = vadd.xlane.f32.xlu0 %v1964_v21  ;;  %1989 = vadd.xlane.f32.xlu2 %v1988_v53 }
 0x3aa   :  { %2745 = vmatmul.msk.bf16.vlgmr.msra.gmra.mxu3 %vm1841_vm2, %v2024_v27  ;;  %1992 = vadd.xlane.f32.xlu1 %v1991_v63 }
 0x3ac   :  { %2750 = vmatmul.msk.bf16.vlgmr.msra.gmra.mxu0 %vm1841_vm2, %v2013_v23  ;;  %v1089_v0 = vpop.permute.xlu0 %1088 }
 0x3ad   :  { %v1110_v55 = vpack.i.b16 %v1089_v0, %v1085_v56  ;;  %v1112_v58 = vshrl.u32 %v1089_v0, 16 }
 0x3af   :  { %v1113_v62 = vpack.i.b16 %v1112_v58, %v1111_v14  ;;  %v1175_v17 = vperm.slane %v1110_v55, %v3129_v3 }
 0x3b1   :  { %v1176_v12 = vrot.slane %v1175_v17, 4  ;;  %v1179_v40 = vsel %vm398_vm14, %v1175_v17, %v1178_v44  ;;  %v1201_v51 = vperm.slane %v1113_v62, %v3129_v3  ;;  %1980 = vadd.xlane.f32.xlu0 %v1979_v24  ;;  %v2015_v44 = vpack.c.bf16 %v3905_v2, %v3905_v2 }
 0x3b2   :  { %v1187_v59 = vperm.slane %v1179_v40, %v3137_v20  ;;  %2748 = vmatmul.msk.bf16.vlgmr.msrb.gmra.mxu2 %vm1841_vm2, %v2011_v15  ;;  %v2016_v62 = vpack.c.bf16 %v3916_v48, %v3916_v48 }
 0x3b3   :  { %v1177_v39 = vsel %vm398_vm14, %v1176_v12, %v1170_v28  ;;  %v1202_v42 = vrot.slane %v1201_v51, 4  ;;  %v1205_v54 = vsel %vm398_vm14, %v1201_v51, %v1204_v30 }
 0x3b4   :  { %v1183_v8 = vperm.slane %v1177_v39, %v3137_v20  ;;  %v1190_v26 = vrot.slane %v1187_v59, 4  ;;  %v1213_v1 = vperm.slane %v1205_v54, %v3137_v20 }
 0x3b5   :  { %v1203_v45 = vsel %vm398_vm14, %v1202_v42, %v1196_v34  ;;  %v2014_v34 = vpack.c.bf16 %v3894_v9, %v3894_v9  ;;  %v2017_v9 = vpack.c.bf16 %v3903_v7, %v3903_v7 }
 0x3b6   :  { %v1188_v50 = vrot.slane %v1183_v8, 4  ;;  %v1191_v10 = vsel %vm398_vm14, 0, %v1190_v26  ;;  %v1209_v41 = vperm.slane %v1203_v45, %v3137_v20  ;;  %v1216_v60 = vrot.slane %v1213_v1, 4 }
 0x3b7   :  { %v1261_v22 = vrot.slane %v1191_v10, 4  ;;  %v1256_v31 = vsel %vm398_vm14, %v1190_v26, %v1183_v8 }
 0x3b8   :  { %v1189_v52 = vsel %vm398_vm14, 0, %v1188_v50  ;;  %v1214_v6 = vrot.slane %v1209_v41, 4  ;;  %v1217_v36 = vsel %vm398_vm14, 0, %v1216_v60  ;;  %v1275_v13 = vsel %vm398_vm14, %v1216_v60, %v1209_v41 }
 0x3b9   :  { %v1262_v37 = vsel %vm398_vm14, %v1261_v22, %v1189_v52  ;;  %v1280_v46 = vrot.slane %v1217_v36, 4  ;;  %v1260_v25 = vperm.slane %v1256_v31, %v3129_v3  ;;  %v1279_v18 = vperm.slane %v1275_v13, %v3129_v3 }
 0x3ba   :  { %v1215_v5 = vsel %vm398_vm14, 0, %v1214_v6  ;;  %2749 = vmatmul.msk.bf16.vlgmr.msrb.gmra.mxu3 %vm1841_vm2, %v2012_v43  ;;  %v1266_v35 = vperm.slane %v1262_v37, %v3129_v3 }
 0x3bb   :  { %v1281_v33 = vsel %vm398_vm14, %v1280_v46, %v1215_v5 }
 0x3bc   :  { %v1267_v11 = vrot.slane %v1266_v35, 4  ;;  %v1285_v16 = vperm.slane %v1281_v33, %v3129_v3 }
 0x3be   :  { %v1268_v4 = vsel %vm398_vm14, %v1267_v11, %v1260_v25  ;;  %v1286_v49 = vrot.slane %v1285_v16, 4 }
 0x3bf   :  { %v1272_v47 = vperm.slane %v1268_v4, %v3137_v20 }
 0x3c0   :  { %v1287_v19 = vsel %vm398_vm14, %v1286_v49, %v1279_v18 }
 0x3c1   :  { %v1291_v29 = vperm.slane %v1287_v19, %v3137_v20  ;;  %v1273_v32 = vrot.slane %v1272_v47, 4  ;;  %v1309_v61 = vshrl.u32 %v1272_v47, 16 }
 0x3c3   :  { %v1308_v57 = vpack.i.b16 %v1291_v29, %v1272_v47  ;;  %v1310_v21 = vshrl.u32 %v1291_v29, 16  ;;  %v1274_v27 = vsel %vm398_vm14, 0, %v1273_v32  ;;  %v1292_v53 = vrot.slane %v1291_v29, 4 }
 0x3c4   :  { %v1315_v28 = vshrl.u32 %v1274_v27, 16 }
 0x3c5   :  { %v2259_v38 = vsel %vm2029_vm1, %v1308_v57, 0  ;;  %v1311_v23 = vpack.i.b16 %v1310_v21, %v1309_v61  ;;  %v1293_v56 = vsel %vm398_vm14, 0, %v1292_v53 }
 0x3c6   :  { %2268 = vmatpush.bf16.msra.mxu1 %v2259_v38  ;;  %v1314_v63 = vpack.i.b16 %v1293_v56, %v1274_v27  ;;  %v1316_v0 = vshrl.u32 %v1293_v56, 16 }
 0x3c7   :  { %v2278_v14 = vsel %vm2029_vm1, %v1311_v23, 0 }
 0x3c8   :  { %2287 = vmatpush.bf16.msra.mxu2 %v2278_v14  ;;  %v2297_v55 = vsel %vm2029_vm1, %v1314_v63, 0  ;;  %v1317_v58 = vpack.i.b16 %v1316_v0, %v1315_v28 }
 0x3c9   :  { %2751 = vmatmul.msk.bf16.vlgmr.msra.gmra.mxu1 %vm1841_vm2, %v2014_v34  ;;  %2306 = vmatpush.bf16.msra.mxu3 %v2297_v55 }
 0x3ca   :  { %v2316_v17 = vsel %vm2029_vm1, %v1317_v58, 0 }
 0x3cb   :  { %2752 = vmatmul.msk.bf16.vlgmr.msra.gmra.mxu2 %vm1841_vm2, %v2015_v44  ;;  %2325 = vmatpush.bf16.msrb.mxu0 %v2316_v17 }
 0x3cc   :  { %2753 = vmatmul.msk.bf16.vlgmr.msra.gmra.mxu3 %vm1841_vm2, %v2016_v62 }
 0x3ce   :  { %2754 = vmatmul.msk.bf16.vlgmr.msrb.gmra.mxu0 %vm1841_vm2, %v2017_v9 }
 0x3f3   :  { %v1948_v40 = vpop.xlane.xlu1 %1947 }
 0x3f4   :  { %v1972_v2 = vpop.xlane.xlu0 %1971 }
 0x3f5   :  { %v1994_v6 = vadd.f32 %v1972_v2, %v1948_v40 }
 0x3f7   :  { %2854 = vrcp.f32 %v1994_v6 }
 0x3fc   :  { %v1951_v48 = vpop.xlane.xlu0 %1950  ;;  %v1975_v1 = vpop.xlane.xlu2 %1974 }
 0x3fd   :  { %v1957_v8 = vpop.xlane.xlu1 %1956  ;;  %v1995_v46 = vadd.f32 %v1975_v1, %v1951_v48  ;;  %v2855_v16 = vpop.eup %2854 }
 0x3ff   :  { %v2042_v15 = vpop.f32.mrf.mxu1  ;;  %2856 = vrcp.f32 %v1995_v46 }
 0x404   :  { %v1954_v43 = vpop.xlane.xlu2 %1953 }
 0x405   :  { %v1978_v41 = vpop.xlane.xlu1 %1977  ;;  %v2857_v32 = vpop.eup %2856 }
 0x406   :  { %v1996_v18 = vadd.f32 %v1978_v41, %v1954_v43 }
 0x407   :  { %v2044_v24 = vpop.f32.mrf.mxu1 }
 0x409   :  { %v2099_v30 = vpop.f32.mrf.mxu0 }
 0x40c   :  { %v1960_v33 = vpop.xlane.xlu2 %1959 }
 0x40d   :  { %v2061_v12 = vpop.f32.mrf.mxu2  ;;  %v1984_v31 = vpop.xlane.xlu1 %1983 }
 0x40e   :  { %v1998_v9 = vadd.f32 %v1984_v31, %v1960_v33 }
 0x40f   :  { %v3982_v51 = vpop.f32.mrf.mxu1 }
 0x411   :  { %v2101_v59 = vpop.f32.mrf.mxu0 }
 0x414   :  { %v3984_v26 = vpop.xlane.xlu0 %1986  ;;  %v1969_v27 = vpop.xlane.xlu2 %1968 }
 0x415   :  { %v2063_v39 = vpop.f32.mrf.mxu2  ;;  %v1963_v19 = vpop.xlane.xlu1 %1962 }
 0x416   :  { %v2080_v42 = vpop.f32.mrf.mxu3 }
 0x417   :  { %v2120_v54 = vpop.f32.mrf.mxu1 }
 0x418   :  { %v1999_v54 = vadd.f32 %v3984_v26, %v1963_v19 }
 0x419   :  { %v3986_v7 = vpop.f32.mrf.mxu0 }
 0x41c   :  { %v1966_v60 = vpop.xlane.xlu0 %1965 }
 0x41d   :  { %v1993_v44 = vpop.xlane.xlu1 %1992 }
 0x41e   :  { %v2082_v45 = vpop.f32.mrf.mxu3  ;;  %v2001_v24 = vadd.f32 %v1993_v44, %v1969_v27 }
 0x420   :  { %v2194_v50 = vpop.f32.mrf.mxu1 }
 0x421   :  { %v2177_v10 = vpop.f32.mrf.mxu0  ;;  %v2195_v25 = vadd.f32 %v2194_v50, %v2042_v15 }
 0x423   :  { %v2331_v4 = vmul.f32 %v2855_v16, %v2195_v25 }
 0x424   :  { %v1981_v37 = vpop.xlane.xlu0 %1980 }
 0x425   :  { %v3988_v22 = vpop.f32.mrf.mxu2  ;;  %v1997_v13 = vadd.f32 %v1981_v37, %v1957_v8  ;;  %v2339_v61 = vpack.c.bf16 %v2331_v4, %v2331_v4 }
 0x427   :  { %2858 = vrcp.f32 %v1997_v13  ;;  %v2350_v23 = vshrl.u32 %v2339_v61, 16 }
 0x428   :  { %v2196_v52 = vpop.f32.mrf.mxu1  ;;  %2860 = vrcp.f32 %v1996_v18 }
 0x429   :  { %v2251_v36 = vpop.f32.mrf.mxu0  ;;  %2862 = vrcp.f32 %v1998_v9 }
 0x42a   :  { %v2252_v53 = vadd.f32 %v2251_v36, %v2099_v30  ;;  %2864 = vrcp.f32 %v2001_v24 }
 0x42b   :  { %2866 = vrcp.f32 %v1999_v54 }
 0x42d   :  { %v2139_v5 = vpop.f32.mrf.mxu2  ;;  %v3990_v35 = vpop.f32.mrf.mxu3 }
 0x42e   :  { %v2859_v21 = vpop.eup %2858 }
 0x42f   :  { %v2334_v56 = vmul.f32 %v2859_v21, %v2252_v53  ;;  %v2861_v58 = vpop.eup %2860 }
 0x430   :  { %v2863_v46 = vpop.eup %2862 }
 0x431   :  { %v2253_v11 = vpop.f32.mrf.mxu0  ;;  %v2342_v62 = vpack.c.bf16 %v2334_v56, %v2334_v56  ;;  %v2865_v16 = vpop.eup %2864 }
 0x433   :  { %v2357_v40 = vshrl.u32 %v2342_v62, 16 }
 0x435   :  { %v2158_v49 = vpop.f32.mrf.mxu3  ;;  %v2213_v47 = vpop.f32.mrf.mxu2 }
 0x436   :  { %v2214_v29 = vadd.f32 %v2213_v47, %v2061_v12  ;;  %v1990_v12 = vpop.xlane.xlu2 %1989 }
 0x437   :  { %v2000_v50 = vadd.f32 %v1990_v12, %v1966_v60 }
 0x438   :  { %v2332_v57 = vmul.f32 %v2857_v32, %v2214_v29 }
 0x439   :  { %2868 = vrcp.f32 %v2000_v50 }
 0x43a   :  { %v2340_v38 = vpack.c.bf16 %v2332_v57, %v2332_v57 }
 0x43c   :  { %v2349_v63 = vpack.i.b16 %v2340_v38, %v2339_v61  ;;  %v2351_v28 = vshrl.u32 %v2340_v38, 16 }
 0x43d   :  { %v2215_v0 = vpop.f32.mrf.mxu2  ;;  %v2232_v34 = vpop.f32.mrf.mxu3 }
 0x43e   :  { %v2352_v14 = vpack.i.b16 %v2351_v28, %v2350_v23  ;;  %v2233_v55 = vadd.f32 %v2232_v34, %v2080_v42  ;;  %v2375_v15 = vperm.slane %v2349_v63, %v3129_v3  ;;  %v2867_v23 = vpop.eup %2866 }
 0x43f   :  { %v2869_v34 = vpop.eup %2868 }
 0x440   :  { %v2333_v17 = vmul.f32 %v2861_v58, %v2233_v55  ;;  %v2401_v30 = vperm.slane %v2352_v14, %v3129_v3  ;;  %v2383_v42 = vrot.slane %v2375_v15, 4 }
 0x442   :  { %v2341_v2 = vpack.c.bf16 %v2333_v17, %v2333_v17  ;;  %v2409_v10 = vrot.slane %v2401_v30, 4 }
 0x444   :  { %v2355_v48 = vpack.i.b16 %v2342_v62, %v2341_v2  ;;  %v2356_v59 = vshrl.u32 %v2341_v2, 16 }
 0x445   :  { %v2234_v39 = vpop.f32.mrf.mxu3 }
 0x446   :  { %v2358_v8 = vpack.i.b16 %v2357_v40, %v2356_v59  ;;  %v2380_v1 = vperm.slane %v2355_v48, %v3129_v3  ;;  %v2270_v45 = vpop.f32.mrf.mxu1 }
 0x447   :  { %v2271_v6 = vadd.f32 %v2270_v45, %v3982_v51 }
 0x448   :  { %v2381_v41 = vrot.slane %v2380_v1, 4  ;;  %v2384_v43 = vsel %vm398_vm14, %v2380_v1, %v2383_v42  ;;  %v2406_v52 = vperm.slane %v2358_v8, %v3129_v3 }
 0x449   :  { %v2392_v36 = vperm.slane %v2384_v43, %v3137_v20  ;;  %v2335_v11 = vmul.f32 %v2863_v46, %v2271_v6 }
 0x44a   :  { %v2382_v26 = vsel %vm398_vm14, %v2381_v41, %v2375_v15  ;;  %v2407_v31 = vrot.slane %v2406_v52, 4  ;;  %v2410_v37 = vsel %vm398_vm14, %v2406_v52, %v2409_v10 }
 0x44b   :  { %v2388_v60 = vperm.slane %v2382_v26, %v3137_v20  ;;  %v2395_v5 = vrot.slane %v2392_v36, 4  ;;  %v2418_v13 = vperm.slane %v2410_v37, %v3137_v20  ;;  %v2327_v33 = vpop.f32.mrf.mxu0  ;;  %v2343_v28 = vpack.c.bf16 %v2335_v11, %v2335_v11 }
 0x44c   :  { %v2408_v25 = vsel %vm398_vm14, %v2407_v31, %v2401_v30  ;;  %v2328_v51 = vadd.f32 %v2327_v33, %v3986_v7 }
 0x44d   :  { %v2393_v4 = vrot.slane %v2388_v60, 4  ;;  %v2396_v18 = vsel %vm398_vm14, 0, %v2395_v5  ;;  %v2414_v49 = vperm.slane %v2408_v25, %v3137_v20  ;;  %v2421_v47 = vrot.slane %v2418_v13, 4 }
 0x44e   :  { %v2475_v19 = vsel %vm398_vm14, %v2395_v5, %v2388_v60  ;;  %v2480_v29 = vrot.slane %v2396_v18, 4  ;;  %v2338_v32 = vmul.f32 %v2865_v16, %v2328_v51  ;;  %v2272_v61 = vpop.f32.mrf.mxu1  ;;  %v2289_v57 = vpop.f32.mrf.mxu2 }
 0x44f   :  { %v2394_v21 = vsel %vm398_vm14, 0, %v2393_v4  ;;  %v2419_v27 = vrot.slane %v2414_v49, 4  ;;  %v2422_v53 = vsel %vm398_vm14, 0, %v2421_v47  ;;  %v2290_v7 = vadd.f32 %v2289_v57, %v3988_v22  ;;  %v2308_v38 = vpop.f32.mrf.mxu3 }
 0x450   :  { %v2481_v56 = vsel %vm398_vm14, %v2480_v29, %v2394_v21  ;;  %v2499_v63 = vrot.slane %v2422_v53, 4  ;;  %v2309_v0 = vadd.f32 %v2308_v38, %v3990_v35  ;;  %v2346_v44 = vpack.c.bf16 %v2338_v32, %v2338_v32 }
 0x451   :  { %v2420_v14 = vsel %vm398_vm14, 0, %v2419_v27  ;;  %v2336_v55 = vmul.f32 %v2867_v23, %v2290_v7  ;;  %v2485_v58 = vperm.slane %v2481_v56, %v3129_v3  ;;  %v2494_v17 = vsel %vm398_vm14, %v2421_v47, %v2414_v49 }
 0x452   :  { %v2337_v62 = vmul.f32 %v2869_v34, %v2309_v0  ;;  %v2500_v22 = vsel %vm398_vm14, %v2499_v63, %v2420_v14  ;;  %v2479_v2 = vperm.slane %v2475_v19, %v3129_v3  ;;  %v2362_v35 = vshrl.u32 %v2343_v28, 16 }
 0x453   :  { %v2344_v9 = vpack.c.bf16 %v2336_v55, %v2336_v55  ;;  %v2329_v15 = vpop.f32.mrf.mxu0  ;;  %v2486_v24 = vrot.slane %v2485_v58, 4  ;;  %v2504_v30 = vperm.slane %v2500_v22, %v3129_v3  ;;  %v2498_v40 = vperm.slane %v2494_v17, %v3129_v3 }
 0x454   :  { %v2345_v12 = vpack.c.bf16 %v2337_v62, %v2337_v62  ;;  %v2369_v42 = vshrl.u32 %v2346_v44, 16 }
 0x455   :  { %v2361_v48 = vpack.i.b16 %v2344_v9, %v2343_v28  ;;  %v2363_v59 = vshrl.u32 %v2344_v9, 16  ;;  %v2487_v39 = vsel %vm398_vm14, %v2486_v24, %v2479_v2  ;;  %v2505_v54 = vrot.slane %v2504_v30, 4 }
 0x456   :  { %v2367_v8 = vpack.i.b16 %v2346_v44, %v2345_v12  ;;  %v2368_v1 = vshrl.u32 %v2345_v12, 16  ;;  %v2291_v45 = vpop.f32.mrf.mxu2  ;;  %v4023_v50 = vperm.slane %v2487_v39, %v3137_v20 }
 0x457   :  { %v2364_v10 = vpack.i.b16 %v2363_v59, %v2362_v35  ;;  %v2427_v41 = vperm.slane %v2361_v48, %v3129_v3  ;;  %v2310_v43 = vpop.f32.mrf.mxu3  ;;  %v2506_v52 = vsel %vm398_vm14, %v2505_v54, %v2498_v40 }
 0x458   :  { %v2370_v6 = vpack.i.b16 %v2369_v42, %v2368_v1  ;;  %v2432_v36 = vperm.slane %v2367_v8, %v3129_v3  ;;  %v2510_v26 = vperm.slane %v2506_v52, %v3137_v20  ;;  %v2554_v46 = vshrl.u32 %v4023_v50, 16 }
 0x459   :  { %v2435_v31 = vrot.slane %v2427_v41, 4  ;;  %v2453_v37 = vperm.slane %v2364_v10, %v3129_v3  ;;  %v2492_v60 = vrot.slane %v4023_v50, 4 }
 0x45a   :  { %v2433_v5 = vrot.slane %v2432_v36, 4  ;;  %v2458_v13 = vperm.slane %v2370_v6, %v3129_v3  ;;  %v2555_v33 = vshrl.u32 %v2510_v26, 16  ;;  %v2511_v25 = vrot.slane %v2510_v26, 4 }
 0x45b   :  { %v2461_v11 = vrot.slane %v2453_v37, 4  ;;  %v2436_v51 = vsel %vm398_vm14, %v2432_v36, %v2435_v31  ;;  %v2553_v16 = vpack.i.b16 %v2510_v26, %v4023_v50  ;;  %v2493_v32 = vsel %vm398_vm14, 0, %v2492_v60 }
 0x45c   :  { %v2434_v4 = vsel %vm398_vm14, %v2433_v5, %v2427_v41  ;;  %v2444_v18 = vperm.slane %v2436_v51, %v3137_v20  ;;  %v2459_v49 = vrot.slane %v2458_v13, 4  ;;  %v2556_v47 = vpack.i.b16 %v2555_v33, %v2554_v46 }
 0x45d   :  { %v2440_v19 = vperm.slane %v2434_v4, %v3137_v20  ;;  %v2462_v29 = vsel %vm398_vm14, %v2458_v13, %v2461_v11  ;;  %v2512_v61 = vsel %vm398_vm14, 0, %v2511_v25  ;;  %v2560_v28 = vshrl.u32 %v2493_v32, 16  ;;  %v2786_v4 = vld [vmem:[%s4090_s9 + $0x10] sm:$0xff] }
 0x45e   :  { %v2447_v57 = vrot.slane %v2444_v18, 4  ;;  %v2460_v21 = vsel %vm398_vm14, %v2459_v49, %v2453_v37  ;;  %v2470_v27 = vperm.slane %v2462_v29, %v3137_v20  ;;  %v2559_v38 = vpack.i.b16 %v2512_v61, %v2493_v32  ;;  %v2785_v18 = vld [vmem:[%s4090_s9 + $0x8] sm:$0xff]  ;;  %v2784_v49 = vld [vmem:[%s4090_s9] sm:$0xff] }
 0x45f   :  { %v2445_v53 = vrot.slane %v2440_v19, 4  ;;  %v2466_v7 = vperm.slane %v2460_v21, %v3137_v20  ;;  %v2561_v23 = vshrl.u32 %v2512_v61, 16  ;;  %v2575_v6 = vunpack.c.l.b16 %v2553_v16  ;;  %v2787_v16 = vld [vmem:[%s4090_s9 + $0x18] sm:$0xff]  ;;  %s2658_s9 = sshll.u32 %s4091_s10, 4  ;;  %s2659_s9 = int_to_ptr.hbm [resolvable:$true] %s2658_s9 }
 0x460   :  { %v2448_v56 = vsel %vm398_vm14, 0, %v2447_v57  ;;  %v2473_v63 = vrot.slane %v2470_v27, 4  ;;  %v2513_v62 = vsel %vm398_vm14, %v2447_v57, %v2440_v19  ;;  %v2578_v31 = vunpack.c.l.b16 %v2556_v47  ;;  %2640 = vmatpush.bf16.msrb.mxu1 %v2787_v16 }
 0x461   :  { %v2446_v0 = vsel %vm398_vm14, 0, %v2445_v53  ;;  %v2471_v34 = vrot.slane %v2466_v7, 4  ;;  %v2518_v14 = vrot.slane %v2448_v56, 4  ;;  %v2562_v58 = vpack.i.b16 %v2561_v23, %v2560_v28 }
 0x462   :  { %v2474_v55 = vsel %vm398_vm14, 0, %v2473_v63  ;;  %v2532_v15 = vsel %vm398_vm14, %v2473_v63, %v2466_v7  ;;  %v2517_v24 = vperm.slane %v2513_v62, %v3129_v3  ;;  %v2583_v60 = vunpack.c.l.b16 %v2559_v38 }
 0x463   :  { %v2472_v44 = vsel %vm398_vm14, 0, %v2471_v34  ;;  %v2519_v17 = vsel %vm398_vm14, %v2518_v14, %v2446_v0  ;;  %v2537_v22 = vrot.slane %v2474_v55, 4  ;;  %v2536_v40 = vperm.slane %v2532_v15, %v3129_v3 }
 0x464   :  { %v2523_v9 = vperm.slane %v2519_v17, %v3129_v3  ;;  %v2588_v25 = vunpack.c.l.b16 %v2562_v58  ;;  %2641 = vmatpush.bf16.msrb.mxu1 %v2786_v4 }
 0x465   :  { %v2538_v2 = vsel %vm398_vm14, %v2537_v22, %v2472_v44 }
 0x466   :  { %v2524_v30 = vrot.slane %v2523_v9, 4  ;;  %v2542_v35 = vperm.slane %v2538_v2, %v3129_v3 }
 0x468   :  { %v2525_v12 = vsel %vm398_vm14, %v2524_v30, %v2517_v24  ;;  %v2543_v48 = vrot.slane %v2542_v35, 4  ;;  %2642 = vmatpush.bf16.msrb.mxu1 %v2785_v18 }
 0x469   :  { %v2529_v59 = vperm.slane %v2525_v12, %v3137_v20 }
 0x46a   :  { %v2544_v39 = vsel %vm398_vm14, %v2543_v48, %v2536_v40 }
 0x46b   :  { %v2548_v54 = vperm.slane %v2544_v39, %v3137_v20  ;;  %v2530_v42 = vrot.slane %v2529_v59, 4  ;;  %v2566_v8 = vshrl.u32 %v2529_v59, 16 }
 0x46c   :  { %2643 = vmatpush.bf16.msrb.mxu1 %v2784_v49 }
 0x46d   :  { %v2567_v1 = vshrl.u32 %v2548_v54, 16  ;;  %v2531_v45 = vsel %vm398_vm14, 0, %v2530_v42  ;;  %v2549_v50 = vrot.slane %v2548_v54, 4  ;;  %v2565_v10 = vpack.i.b16 %v2548_v54, %v2529_v59 }
 0x46e   :  { %v2572_v36 = vshrl.u32 %v2531_v45, 16 }
 0x46f   :  { %v2568_v41 = vpack.i.b16 %v2567_v1, %v2566_v8  ;;  %v2550_v43 = vsel %vm398_vm14, 0, %v2549_v50  ;;  %v2576_v52 = vunpack.c.l.b16 %v2565_v10 }
 0x470   :  { %v2571_v3 = vpack.i.b16 %v2550_v43, %v2531_v45  ;;  %v2573_v26 = vshrl.u32 %v2550_v43, 16 }
 0x471   :  { %v2579_v37 = vunpack.c.l.b16 %v2568_v41  ;;  %v2577_v46 = vpack.c.b16 %v2576_v52, %v2575_v6 }
 0x472   :  { %v2584_v20 = vunpack.c.l.b16 %v2571_v3  ;;  %v2574_v5 = vpack.i.b16 %v2573_v26, %v2572_v36 }
 0x473   :  { %v2580_v13 = vpack.c.b16 %v2579_v37, %v2578_v31 }
 0x474   :  { %v2585_v33 = vpack.c.b16 %v2584_v20, %v2583_v60  ;;  %v2589_v11 = vunpack.c.l.b16 %v2574_v5 }
 0x475   :  { %2581 = vrot.lane.b32.xlu0 %v2580_v13, %s2902_s21 }
 0x476   :  { %2586 = vrot.lane.b32.xlu2 %v2585_v33, %s2903_s22  ;;  %v2590_v51 = vpack.c.b16 %v2589_v11, %v2588_v25 }
 0x478   :  { %2591 = vrot.lane.b32.xlu1 %v2590_v51, %s2904_s23 }
 0x4d0   :  { %v2587_v19 = vpop.permute.xlu2 %2586 }
 0x4e7   :  { %v2582_v47 = vpop.permute.xlu0 %2581 }
 0x4e8   :  { %v2595_v29 = vsel %vm1560_vm15, %v2577_v46, %v2582_v47 }
 0x4e9   :  { %v2598_v32 = vsel %vm2596_vm3, %v2595_v29, %v2587_v19 }
 0x4ea   :  { %v2592_v61 = vpop.permute.xlu1 %2591 }
 0x4eb   :  { %v2601_v57 = vsel %vm2599_vm4, %v2598_v32, %v2592_v61 }
 0x4ec   :  { %2771 = vmatmul.msk.bf16.vlgmr.msrb.gmra.mxu1 %vm47_vm0, %v2601_v57 }
 0x569   :  { %v2645_v21 = vpop.f32.mrf.mxu1 }
 0x56a   :  { %2650 = vst.msk [vmem:[#allocation2] sm:$0xff] %vm47_vm0, %v2645_v21 }
 0x571   :  { %v2647_v27 = vpop.f32.mrf.mxu1 }
 0x572   :  { %2651 = vst.msk [vmem:[#allocation2 + $0x8] sm:$0xff] %vm47_vm0, %v2647_v27 }
 0x573   :  { %2664 = dma.vmem_to_hbm [thread:$0]  %s2657_s13, 256, %s2659_s9, [#allocation3], %s2906_s16, %s2906_s16, %s2907_s0  }
 0x574   :  { %2894 = dma.done.wait [#allocation3], 256  }
 0x575   :  { %2895 = vsyncadd [#allocation3], 4294967040 }
 0x576   :  { %2669 = vsyncpa [#allocation3], 1 }

// kernel: pallas_perceiver_attention.1
= control target key start
LH: loop header
LB: loop body
LE: loop exit
PB: predicated region body
PF: predicated region fallthrough
CT: control target
= control target key end

     0   :  { %vm47_vm0 = vcmask 523264   ;;  %s4081_s0 = inlined_call_operand.vmem [shape: bf16[2,8,64], index: 0, kind: input, shape index: {}]   ;;  %s4082_s1 = inlined_call_operand.vmem [shape: bf16[2,8,64], index: 1, kind: input, shape index: {}]   ;;  %s4083_s2 = inlined_call_operand.vmem [shape: f32[1,64], index: 2, kind: input, shape index: {}]   ;;  %s4084_s3 = inlined_call_operand.vmem [shape: f32[1,64], index: 3, kind: input, shape index: {}]   ;;  %s4085_s4 = inlined_call_operand.vmem [shape: f32[1,64], index: 4, kind: input, shape index: {}]   ;;  %s4086_s5 = inlined_call_operand.vmem [shape: f32[1,64], index: 5, kind: input, shape index: {}]   ;;  %s4087_s6 = inlined_call_operand.vmem [shape: bf16[64,64], index: 6, kind: input, shape index: {}]   ;;  %s4088_s7 = inlined_call_operand.vmem [shape: bf16[64,64], index: 7, kind: input, shape index: {}]   ;;  %s4089_s8 = inlined_call_operand.vmem [shape: bf16[64,64], index: 8, kind: input, shape index: {}]   ;;  %s4090_s9 = inlined_call_operand.vmem [shape: bf16[64,64], index: 9, kind: input, shape index: {}]   ;;  %s4091_s10 = inlined_call_operand.hbm [shape: f32[2,8,64], index: 10, kind: output, shape index: {}]  }
   0x1   :  { %v2793_v0 = vld [vmem:[%s4082_s1] sm:$0xff]  }
   0x2   :  { %v2789_v1 = vld [vmem:[%s4081_s0] sm:$0xff]   ;;  %v2794_v2 = vunpack.c.l.bf16 %v2793_v0 }
   0x3   :  { %v2790_v3 = vunpack.c.l.bf16 %v2789_v1 }
   0x4   :  { %15 = vsyncpa [#allocation3], 0  ;;  %v112_v4 = vsel %vm47_vm0, %v2794_v2, 0.0  ;;  %v2795_v6 = vunpack.c.h.bf16 %v2793_v0  ;;  %v2791_v7 = vunpack.c.h.bf16 %v2789_v1  ;;  %v2896_v10 = vmov 64.0   ;;  %v2775_v37 = vld [vmem:[%s4087_s6 + $0x18] sm:$0xff]  ;;  %v2774_v40 = vld [vmem:[%s4087_s6 + $0x10] sm:$0xff] }
   0x5   :  { %v48_v5 = vsel %vm47_vm0, %v2790_v3, 0.0  ;;  %113 = vadd.xlane.f32.xlu1 %v112_v4  ;;  %2812 = vrcp.f32 %v2896_v10  ;;  %v2779_v38 = vld [vmem:[%s4088_s7 + $0x18] sm:$0xff]  ;;  %206 = vmatpush.bf16.msra.mxu0 %v2775_v37  ;;  %v2778_v41 = vld [vmem:[%s4088_s7 + $0x10] sm:$0xff]  ;;  %v2773_v43 = vld [vmem:[%s4087_s6 + $0x8] sm:$0xff]  ;;  %vm398_vm14 = vcmask 1047556   ;;  %vm1560_vm15 = vcmask 130048  }
   0x6   :  { %49 = vadd.xlane.f32.xlu0 %v48_v5  ;;  %v115_v8 = vsel %vm47_vm0, %v2795_v6, 0.0  ;;  %v51_v9 = vsel %vm47_vm0, %v2791_v7, 0.0  ;;  %v2783_v39 = vld [vmem:[%s4089_s8 + $0x18] sm:$0xff]  ;;  %257 = vmatpush.bf16.msra.mxu1 %v2779_v38  ;;  %v2782_v42 = vld [vmem:[%s4089_s8 + $0x10] sm:$0xff]  ;;  %v2777_v44 = vld [vmem:[%s4088_s7 + $0x8] sm:$0xff]  ;;  %s2902_s21 = smov 16  }
   0x7   :  { %273 = vmatpush.bf16.msra.mxu2 %v2779_v38  ;;  %321 = vmatpush.bf16.msra.mxu3 %v2783_v39  ;;  %v2781_v45 = vld [vmem:[%s4089_s8 + $0x8] sm:$0xff]  ;;  %v2772_v50 = vld [vmem:[%s4087_s6] sm:$0xff]  ;;  %s2903_s22 = smov 32   ;;  %s2904_s23 = smov 48  }
   0x8   :  { %v2776_v51 = vld [vmem:[%s4088_s7] sm:$0xff]  ;;  %s2905_s12 = smov [#allocation2]   ;;  %s2906_s16 = smov 128  }
   0x9   :  { %207 = vmatpush.bf16.msra.mxu0 %v2774_v40  ;;  %v2780_v52 = vld [vmem:[%s4089_s8] sm:$0xff]  ;;  %s2656_s13 = sshll.u32 %s2905_s12, 4  ;;  %s2907_s0 = smov 8   ;;  %s2657_s13 = int_to_ptr.vmem [resolvable:$true] %s2656_s13 }
   0xa   :  { %258 = vmatpush.bf16.msra.mxu1 %v2778_v41 }
   0xb   :  { %v2813_v11 = vpop.eup %2812  ;;  %274 = vmatpush.bf16.msra.mxu2 %v2778_v41  ;;  %322 = vmatpush.bf16.msra.mxu3 %v2782_v42 }
   0xc   :  { %v55_v12 = vmul.f32 64.0, %v2813_v11  ;;  %vm59_vm1 = vweird.f32 %v2813_v11 }
   0xd   :  { %116 = vadd.xlane.f32.xlu1 %v115_v8  ;;  %208 = vmatpush.bf16.msra.mxu0 %v2773_v43 }
   0xe   :  { %52 = vadd.xlane.f32.xlu0 %v51_v9  ;;  %v56_v13 = vsub.f32 1.0, %v55_v12  ;;  %259 = vmatpush.bf16.msra.mxu1 %v2777_v44 }
   0xf   :  { %275 = vmatpush.bf16.msra.mxu2 %v2777_v44  ;;  %323 = vmatpush.bf16.msra.mxu3 %v2781_v45 }
  0x10   :  { %v57_v14 = vmul.f32 %v2813_v11, %v56_v13 }
  0x11   :  { %209 = vmatpush.bf16.msra.mxu0 %v2772_v50 }
  0x12   :  { %v58_v15 = vadd.f32 %v2813_v11, %v57_v14  ;;  %260 = vmatpush.bf16.msra.mxu1 %v2776_v51 }
  0x13   :  { %276 = vmatpush.bf16.msra.mxu2 %v2776_v51  ;;  %324 = vmatpush.bf16.msra.mxu3 %v2780_v52 }
  0x14   :  { %v2973_v16 = vsel %vm59_vm1, %v2813_v11, %v58_v15  ;;  %vm2029_vm1 = vcmask 1043456  }
  0x15   :  { %337 = vmatpush.bf16.msrb.mxu0 %v2783_v39 }
  0x19   :  { %338 = vmatpush.bf16.msrb.mxu0 %v2782_v42 }
  0x1d   :  { %339 = vmatpush.bf16.msrb.mxu0 %v2781_v45 }
  0x21   :  { %340 = vmatpush.bf16.msrb.mxu0 %v2780_v52 }
  0x78   :  { %v114_v17 = vpop.xlane.xlu1 %113 }
  0x79   :  { %v50_v18 = vpop.xlane.xlu0 %49  ;;  %v118_v19 = vmul.f32 %v114_v17, %v2973_v16 }
  0x7a   :  { %v61_v20 = vmul.f32 %v2973_v16, %v50_v18 }
  0x7b   :  { %v2977_v21 = vsub.f32 %v2794_v2, %v118_v19 }
  0x7c   :  { %v2979_v22 = vsub.f32 %v2790_v3, %v61_v20 }
  0x7d   :  { %v122_v23 = vmul.f32 %v2977_v21, %v2977_v21 }
  0x7e   :  { %v65_v24 = vmul.f32 %v2979_v22, %v2979_v22 }
  0x7f   :  { %v124_v25 = vsel %vm47_vm0, %v122_v23, 0.0 }
  0x80   :  { %v67_v26 = vsel %vm47_vm0, %v65_v24, 0.0  ;;  %v117_v27 = vpop.xlane.xlu1 %116  ;;  %125 = vadd.xlane.f32.xlu0 %v124_v25  ;;  %v2808_v24 = vld [vmem:[%s4085_s4] ss:$0 sm:$0xff] }
  0x81   :  { %68 = vadd.xlane.f32.xlu2 %v67_v26  ;;  %v53_v28 = vpop.xlane.xlu0 %52  ;;  %v119_v29 = vmul.f32 %v117_v27, %v2973_v16  ;;  %v2810_v27 = vld [vmem:[%s4083_s2] ss:$0 sm:$0xff]  ;;  %s2897_s2 = smov 80  }
  0x82   :  { %v62_v30 = vmul.f32 %v2973_v16, %v53_v28 }
  0x83   :  { %v2989_v31 = vsub.f32 %v2795_v6, %v119_v29 }
  0x84   :  { %v2991_v32 = vsub.f32 %v2791_v7, %v62_v30 }
  0x85   :  { %v123_v33 = vmul.f32 %v2989_v31, %v2989_v31 }
  0x86   :  { %v66_v34 = vmul.f32 %v2991_v32, %v2991_v32 }
  0x87   :  { %v127_v35 = vsel %vm47_vm0, %v123_v33, 0.0 }
  0x88   :  { %v70_v36 = vsel %vm47_vm0, %v66_v34, 0.0  ;;  %128 = vadd.xlane.f32.xlu1 %v127_v35  ;;  %v2809_v34 = vld [vmem:[%s4086_s5] ss:$0 sm:$0xff]  ;;  %s2899_s5 = smov 112  }
  0x89   :  { %71 = vadd.xlane.f32.xlu2 %v70_v36  ;;  %v2811_v36 = vld [vmem:[%s4084_s3] ss:$0 sm:$0xff]  ;;  %s2898_s3 = smov 96  }
  0xf3   :  { %v126_v47 = vpop.xlane.xlu0 %125 }
  0xf4   :  { %v69_v46 = vpop.xlane.xlu2 %68  ;;  %v130_v49 = vmul.f32 %v126_v47, %v2973_v16 }
  0xf5   :  { %v73_v48 = vmul.f32 %v69_v46, %v2973_v16 }
  0xf6   :  { %v132_v54 = vadd.f32 1e-05, %v130_v49 }
  0xf7   :  { %v75_v53 = vadd.f32 1e-05, %v73_v48 }
  0xf8   :  { %vm140_vm2 = vweird.f32 %v132_v54 }
  0xf9   :  { %2814 = vrsqrt.f32 %v75_v53  ;;  %vm83_vm5 = vweird.f32 %v75_v53 }
  0xfa   :  { %2816 = vrsqrt.f32 %v132_v54 }
  0xfb   :  { %v129_v55 = vpop.xlane.xlu1 %128 }
  0xfc   :  { %v72_v56 = vpop.xlane.xlu2 %71  ;;  %v131_v57 = vmul.f32 %v129_v55, %v2973_v16 }
  0xfd   :  { %v74_v58 = vmul.f32 %v72_v56, %v2973_v16 }
  0xfe   :  { %v133_v60 = vadd.f32 1e-05, %v131_v57 }
  0xff   :  { %v2815_v59 = vpop.eup %2814  ;;  %v76_v61 = vadd.f32 1e-05, %v74_v58 }
 0x100   :  { %v2817_v62 = vpop.eup %2816  ;;  %v78_v63 = vmul.f32 %v2815_v59, %v75_v53  ;;  %2818 = vrsqrt.f32 %v133_v60  ;;  %vm84_vm4 = vweird.f32 %v2815_v59  ;;  %vm150_vm8 = vweird.f32 %v133_v60 }
 0x101   :  { %v135_v0 = vmul.f32 %v2817_v62, %v132_v54  ;;  %2820 = vrsqrt.f32 %v76_v61  ;;  %vm141_vm3 = vweird.f32 %v2817_v62  ;;  %vm85_vm7 = vmor %vm83_vm5, %vm84_vm4  ;;  %vm93_vm12 = vweird.f32 %v76_v61 }
 0x102   :  { %v79_v1 = vmul.f32 %v2815_v59, %v78_v63  ;;  %vm142_vm6 = vmor %vm140_vm2, %vm141_vm3  ;;  %v2900_v63 = vmov 1983009808   ;;  %vm1841_vm2 = vcmask 64512   ;;  %vm2596_vm3 = vcmask 261120  }
 0x103   :  { %v136_v2 = vmul.f32 %v2817_v62, %v135_v0  ;;  %v389_v0 = vunpack.c.l.s4 %v2900_v63  ;;  %vm2599_vm4 = vcmask 392192  }
 0x104   :  { %v80_v3 = vmul.f32 0.5, %v79_v1 }
 0x105   :  { %v137_v4 = vmul.f32 0.5, %v136_v2 }
 0x106   :  { %v81_v5 = vsub.f32 1.5, %v80_v3  ;;  %v2819_v6 = vpop.eup %2818  ;;  %v3129_v3 = vunpack.c.0.s8 %v389_v0 }
 0x107   :  { %v138_v7 = vsub.f32 1.5, %v137_v4  ;;  %v2821_v8 = vpop.eup %2820  ;;  %v145_v9 = vmul.f32 %v2819_v6, %v133_v60  ;;  %vm151_vm9 = vweird.f32 %v2819_v6 }
 0x108   :  { %v82_v10 = vmul.f32 %v2815_v59, %v81_v5  ;;  %v88_v12 = vmul.f32 %v2821_v8, %v76_v61  ;;  %vm94_vm10 = vweird.f32 %v2821_v8  ;;  %vm152_vm11 = vmor %vm150_vm8, %vm151_vm9 }
 0x109   :  { %v139_v11 = vmul.f32 %v2817_v62, %v138_v7  ;;  %v146_v13 = vmul.f32 %v2819_v6, %v145_v9  ;;  %vm95_vm13 = vmor %vm93_vm12, %vm94_vm10  ;;  %v2901_v7 = vmov 1934713408  }
 0x10a   :  { %v89_v14 = vmul.f32 %v2821_v8, %v88_v12  ;;  %v86_v17 = vsel %vm85_vm7, %v2815_v59, %v82_v10 }
 0x10b   :  { %v143_v15 = vsel %vm142_vm6, %v2817_v62, %v139_v11  ;;  %v147_v16 = vmul.f32 0.5, %v146_v13  ;;  %v97_v25 = vmul.f32 %v86_v17, %v2979_v22 }
 0x10c   :  { %v90_v18 = vmul.f32 0.5, %v89_v14  ;;  %v154_v20 = vmul.f32 %v143_v15, %v2977_v21 }
 0x10d   :  { %v148_v19 = vsub.f32 1.5, %v147_v16  ;;  %v102_v35 = vmul.f32 %v2810_v27, %v97_v25 }
 0x10e   :  { %v91_v23 = vsub.f32 1.5, %v90_v18  ;;  %v159_v33 = vmul.f32 %v2808_v24, %v154_v20 }
 0x10f   :  { %v149_v26 = vmul.f32 %v2819_v6, %v148_v19  ;;  %v107_v41 = vadd.f32 %v2811_v36, %v102_v35 }
 0x110   :  { %v92_v28 = vmul.f32 %v2821_v8, %v91_v23  ;;  %v164_v39 = vadd.f32 %v2809_v34, %v159_v33 }
 0x111   :  { %v153_v29 = vsel %vm152_vm11, %v2819_v6, %v149_v26 }
 0x112   :  { %v155_v21 = vmul.f32 %v153_v29, %v2989_v31  ;;  %v96_v30 = vsel %vm95_vm13, %v2821_v8, %v92_v28  ;;  %v403_v8 = vunpack.c.l.s4 %v2901_v7 }
 0x113   :  { %v98_v22 = vmul.f32 %v96_v30, %v2991_v32 }
 0x114   :  { %v160_v37 = vmul.f32 %v2808_v24, %v155_v21  ;;  %v3137_v20 = vunpack.c.0.s8 %v403_v8 }
 0x115   :  { %v103_v38 = vmul.f32 %v2810_v27, %v98_v22 }
 0x116   :  { %v165_v40 = vadd.f32 %v2809_v34, %v160_v37 }
 0x117   :  { %v108_v42 = vadd.f32 %v2811_v36, %v103_v38 }
 0x118   :  { %v166_v31 = vpack.c.bf16 %v165_v40, %v164_v39 }
 0x119   :  { %v109_v43 = vpack.c.bf16 %v108_v42, %v107_v41 }
 0x11a   :  { %2686 = vmatmul.msk.bf16.vlgmr.msra.gmra.mxu0 %vm47_vm0, %v166_v31  ;;  %2704 = vmatmul.msk.bf16.vlgmr.msra.gmra.mxu2 %vm47_vm0, %v166_v31 }
 0x11b   :  { %2703 = vmatmul.msk.bf16.vlgmr.msra.gmra.mxu1 %vm47_vm0, %v109_v43  ;;  %2721 = vmatmul.msk.bf16.vlgmr.msra.gmra.mxu3 %vm47_vm0, %v109_v43 }
 0x12a   :  { %2722 = vmatmul.msk.bf16.vlgmr.msrb.gmra.mxu0 %vm47_vm0, %v166_v31 }
 0x197   :  { %v211_v45 = vpop.f32.mrf.mxu0 }
 0x198   :  { %v262_v32 = vpop.f32.mrf.mxu1  ;;  %v3063_v47 = vpack.c.bf16 %v211_v45, %v211_v45 }
 0x199   :  { %v267_v44 = vpack.c.bf16 %v262_v32, %v262_v32 }
 0x19a   :  { %v366_v12 = vshrl.u32 %v3063_v47, 16 }
 0x19b   :  { %602 = vrot.lane.b32.xlu1 %v267_v44, %s2897_s2  ;;  %598 = vrot.lane.b32.xlu0 %v267_v44, %s2898_s3  ;;  %v609_v5 = vshrl.u32 %v267_v44, 16 }
 0x19c   :  { %594 = vrot.lane.b32.xlu2 %v267_v44, %s2899_s5 }
 0x19d   :  { %v278_v51 = vpop.f32.mrf.mxu2 }
 0x19e   :  { %v3081_v52 = vpack.c.bf16 %v278_v51, %v278_v51  ;;  %v326_v55 = vpop.f32.mrf.mxu3 }
 0x19f   :  { %v213_v49 = vpop.f32.mrf.mxu0  ;;  %v3097_v56 = vpack.c.bf16 %v326_v55, %v326_v55 }
 0x1a0   :  { %v264_v46 = vpop.f32.mrf.mxu1  ;;  %v3073_v50 = vpack.c.bf16 %v213_v49, %v213_v49  ;;  %v851_v23 = vshrl.u32 %v3081_v52, 16 }
 0x1a1   :  { %v3065_v48 = vpack.c.bf16 %v264_v46, %v264_v46  ;;  %v1093_v30 = vshrl.u32 %v3097_v56, 16 }
 0x1a2   :  { %v378_v21 = vshrl.u32 %v3073_v50, 16 }
 0x1a3   :  { %596 = vrot.lane.b32.xlu1 %v3065_v48, %s2899_s5  ;;  %355 = vrot.lane.b32.xlu0 %v3063_v47, %s2898_s3  ;;  %v621_v29 = vshrl.u32 %v3065_v48, 16 }
 0x1a4   :  { %351 = vrot.lane.b32.xlu2 %v3063_v47, %s2899_s5 }
 0x1a5   :  { %v280_v53 = vpop.f32.mrf.mxu2 }
 0x1a6   :  { %v3089_v54 = vpack.c.bf16 %v280_v53, %v280_v53 }
 0x1a7   :  { %v342_v57 = vpop.f32.mrf.mxu0 }
 0x1a8   :  { %v3105_v58 = vpack.c.bf16 %v342_v57, %v342_v57  ;;  %v863_v37 = vshrl.u32 %v3089_v54, 16 }
 0x1aa   :  { %v1335_v38 = vshrl.u32 %v3105_v58, 16 }
 0x1ab   :  { %600 = vrot.lane.b32.xlu0 %v3065_v48, %s2898_s3  ;;  %353 = vrot.lane.b32.xlu1 %v3073_v50, %s2899_s5 }
 0x1ac   :  { %359 = vrot.lane.b32.xlu2 %v3063_v47, %s2897_s2 }
 0x1af   :  { %v344_v59 = vpop.f32.mrf.mxu0 }
 0x1b0   :  { %v3113_v60 = vpack.c.bf16 %v344_v59, %v344_v59 }
 0x1b2   :  { %v1347_v39 = vshrl.u32 %v3113_v60, 16 }
 0x1b3   :  { %357 = vrot.lane.b32.xlu0 %v3073_v50, %s2898_s3  ;;  %836 = vrot.lane.b32.xlu1 %v3081_v52, %s2899_s5 }
 0x1b4   :  { %604 = vrot.lane.b32.xlu2 %v3065_v48, %s2897_s2 }
 0x1bb   :  { %840 = vrot.lane.b32.xlu0 %v3081_v52, %s2898_s3  ;;  %838 = vrot.lane.b32.xlu1 %v3089_v54, %s2899_s5 }
 0x1bc   :  { %361 = vrot.lane.b32.xlu2 %v3073_v50, %s2897_s2 }
 0x1c3   :  { %842 = vrot.lane.b32.xlu0 %v3089_v54, %s2898_s3  ;;  %1082 = vrot.lane.b32.xlu1 %v3097_v56, %s2898_s3 }
 0x1c4   :  { %844 = vrot.lane.b32.xlu2 %v3081_v52, %s2897_s2 }
 0x1cb   :  { %1086 = vrot.lane.b32.xlu0 %v3097_v56, %s2897_s2  ;;  %1320 = vrot.lane.b32.xlu1 %v3105_v58, %s2899_s5 }
 0x1cc   :  { %846 = vrot.lane.b32.xlu2 %v3089_v54, %s2897_s2 }
 0x1d3   :  { %1324 = vrot.lane.b32.xlu0 %v3105_v58, %s2898_s3  ;;  %1322 = vrot.lane.b32.xlu1 %v3113_v60, %s2899_s5 }
 0x1d4   :  { %1078 = vrot.lane.b32.xlu2 %v3097_v56, %s2899_s5 }
 0x1db   :  { %1326 = vrot.lane.b32.xlu1 %v3113_v60, %s2898_s3 }
 0x1dc   :  { %1328 = vrot.lane.b32.xlu2 %v3105_v58, %s2897_s2 }
 0x1e3   :  { %1330 = vrot.lane.b32.xlu1 %v3113_v60, %s2897_s2 }
 0x1f6   :  { %v595_v61 = vpop.permute.xlu2 %594 }
 0x1f7   :  { %v610_v1 = vshrl.u32 %v595_v61, 16  ;;  %v608_v4 = vpack.i.b16 %v595_v61, %v267_v44 }
 0x1f9   :  { %v611_v6 = vpack.i.b16 %v610_v1, %v609_v5  ;;  %v634_v9 = vperm.slane %v608_v4, %v3129_v3 }
 0x1fb   :  { %v660_v15 = vperm.slane %v611_v6, %v3129_v3  ;;  %v642_v24 = vrot.slane %v634_v9, 4 }
 0x1fd   :  { %v668_v33 = vrot.slane %v660_v15, 4 }
 0x1fe   :  { %v352_v62 = vpop.permute.xlu2 %351 }
 0x1ff   :  { %v367_v10 = vshrl.u32 %v352_v62, 16  ;;  %v365_v11 = vpack.i.b16 %v352_v62, %v3063_v47 }
 0x201   :  { %v368_v25 = vpack.i.b16 %v367_v10, %v366_v12  ;;  %v391_v28 = vperm.slane %v365_v11, %v3129_v3 }
 0x203   :  { %v418_v40 = vperm.slane %v368_v25, %v3129_v3  ;;  %v400_v43 = vrot.slane %v391_v28, 4 }
 0x205   :  { %v426_v0 = vrot.slane %v418_v40, 4 }
 0x206   :  { %v3127_v2 = vpop.permute.xlu2 %359 }
 0x207   :  { %v373_v1 = vshrl.u32 %v3127_v2, 16 }
 0x20d   :  { %v603_v13 = vpop.permute.xlu1 %602  ;;  %v599_v14 = vpop.permute.xlu0 %598 }
 0x20e   :  { %v616_v16 = vshrl.u32 %v603_v13, 16  ;;  %v3135_v17 = vpop.permute.xlu2 %604  ;;  %v614_v18 = vpack.i.b16 %v603_v13, %v599_v14  ;;  %v615_v19 = vshrl.u32 %v599_v14, 16 }
 0x210   :  { %v617_v26 = vpack.i.b16 %v616_v16, %v615_v19  ;;  %v639_v27 = vperm.slane %v614_v18, %v3129_v3 }
 0x212   :  { %v640_v34 = vrot.slane %v639_v27, 4  ;;  %v643_v22 = vsel %vm398_vm14, %v639_v27, %v642_v24  ;;  %v665_v35 = vperm.slane %v617_v26, %v3129_v3 }
 0x213   :  { %v651_v36 = vperm.slane %v643_v22, %v3137_v20 }
 0x214   :  { %v641_v41 = vsel %vm398_vm14, %v640_v34, %v634_v9  ;;  %v666_v42 = vrot.slane %v665_v35, 4  ;;  %v669_v31 = vsel %vm398_vm14, %v665_v35, %v668_v33  ;;  %v628_v9 = vshrl.u32 %v3135_v17, 16 }
 0x215   :  { %v647_v32 = vperm.slane %v641_v41, %v3137_v20  ;;  %v654_v44 = vrot.slane %v651_v36, 4  ;;  %v677_v45 = vperm.slane %v669_v31, %v3137_v20  ;;  %v597_v46 = vpop.permute.xlu1 %596  ;;  %v356_v47 = vpop.permute.xlu0 %355 }
 0x216   :  { %v667_v49 = vsel %vm398_vm14, %v666_v42, %v660_v15  ;;  %v620_v51 = vpack.i.b16 %v597_v46, %v3065_v48  ;;  %v622_v53 = vshrl.u32 %v597_v46, 16  ;;  %v3158_v55 = vpop.permute.xlu2 %361  ;;  %v371_v57 = vpack.i.b16 %v3127_v2, %v356_v47 }
 0x217   :  { %v652_v59 = vrot.slane %v647_v32, 4  ;;  %v655_v61 = vsel %vm398_vm14, 0, %v654_v44  ;;  %v673_v62 = vperm.slane %v667_v49, %v3137_v20  ;;  %v680_v63 = vrot.slane %v677_v45, 4 }
 0x218   :  { %v623_v4 = vpack.i.b16 %v622_v53, %v621_v29  ;;  %v3165_v5 = vperm.slane %v620_v51, %v3129_v3  ;;  %v739_v7 = vrot.slane %v655_v61, 4  ;;  %v372_v8 = vshrl.u32 %v356_v47, 16 }
 0x219   :  { %v678_v6 = vrot.slane %v673_v62, 4  ;;  %v3168_v48 = vsel %vm398_vm14, 0, %v680_v63  ;;  %v653_v10 = vsel %vm398_vm14, 0, %v652_v59  ;;  %v396_v12 = vperm.slane %v371_v57, %v3129_v3 }
 0x21a   :  { %v3173_v11 = vperm.slane %v623_v4, %v3129_v3  ;;  %v758_v2 = vrot.slane %v3168_v48, 4  ;;  %v385_v13 = vshrl.u32 %v3158_v55, 16  ;;  %v374_v14 = vpack.i.b16 %v373_v1, %v372_v8 }
 0x21b   :  { %v3179_v15 = vsel %vm398_vm14, %v654_v44, %v647_v32  ;;  %v694_v16 = vrot.slane %v3165_v5, 4  ;;  %v397_v18 = vrot.slane %v396_v12, 4  ;;  %v401_v19 = vsel %vm398_vm14, %v396_v12, %v400_v43 }
 0x21c   :  { %v3184_v24 = vsel %vm398_vm14, 0, %v678_v6  ;;  %v720_v25 = vrot.slane %v3173_v11, 4  ;;  %v409_v26 = vperm.slane %v401_v19, %v3137_v20  ;;  %v423_v27 = vperm.slane %v374_v14, %v3129_v3 }
 0x21d   :  { %v354_v29 = vpop.permute.xlu1 %353  ;;  %v601_v33 = vpop.permute.xlu0 %600  ;;  %v3190_v34 = vsel %vm398_vm14, %v739_v7, %v653_v10  ;;  %v399_v22 = vsel %vm398_vm14, %v397_v18, %v391_v28  ;;  %v738_v41 = vperm.slane %v3179_v15, %v3129_v3  ;;  %v3218_v4 = vsel %vm398_vm14, %v680_v63, %v673_v62 }
 0x21e   :  { %v377_v35 = vpack.i.b16 %v354_v29, %v3073_v50  ;;  %v379_v36 = vshrl.u32 %v354_v29, 16  ;;  %v405_v42 = vperm.slane %v399_v22, %v3137_v20  ;;  %v412_v31 = vrot.slane %v409_v26, 4  ;;  %v3199_v45 = vpop.permute.xlu2 %844 }
 0x21f   :  { %v424_v43 = vrot.slane %v423_v27, 4  ;;  %v427_v32 = vsel %vm398_vm14, %v423_v27, %v426_v0  ;;  %v626_v28 = vpack.i.b16 %v3135_v17, %v601_v33  ;;  %v744_v47 = vperm.slane %v3190_v34, %v3129_v3 }
 0x220   :  { %v435_v44 = vperm.slane %v427_v32, %v3137_v20  ;;  %v380_v46 = vpack.i.b16 %v379_v36, %v378_v21  ;;  %v410_v49 = vrot.slane %v405_v42, 4  ;;  %v413_v51 = vsel %vm398_vm14, 0, %v412_v31 }
 0x221   :  { %v425_v53 = vsel %vm398_vm14, %v424_v43, %v418_v40  ;;  %v444_v57 = vperm.slane %v377_v35, %v3129_v3  ;;  %v3211_v0 = vsel %vm398_vm14, %v412_v31, %v405_v42  ;;  %v497_v50 = vrot.slane %v413_v51, 4 }
 0x222   :  { %v431_v59 = vperm.slane %v425_v53, %v3137_v20  ;;  %v438_v61 = vrot.slane %v435_v44, 4  ;;  %v411_v21 = vsel %vm398_vm14, 0, %v410_v49  ;;  %v3215_v17 = vperm.slane %v380_v46, %v3129_v3 }
 0x223   :  { %v627_v1 = vshrl.u32 %v601_v33, 16  ;;  %v3222_v7 = vsel %vm398_vm14, %v497_v50, %v411_v21  ;;  %v496_v10 = vperm.slane %v3211_v0, %v3129_v3  ;;  %v858_v14 = vshrl.u32 %v3199_v45, 16 }
 0x224   :  { %v436_v6 = vrot.slane %v431_v59, 4  ;;  %v439_v40 = vsel %vm398_vm14, 0, %v438_v61  ;;  %v3225_v8 = vsel %vm398_vm14, %v438_v61, %v431_v59  ;;  %v502_v12 = vperm.slane %v3222_v7, %v3129_v3 }
 0x225   :  { %v452_v18 = vrot.slane %v444_v57, 4  ;;  %v837_v62 = vpop.permute.xlu1 %836  ;;  %v358_v63 = vpop.permute.xlu0 %357  ;;  %v515_v19 = vperm.slane %v3225_v8, %v3129_v3  ;;  %v516_v26 = vrot.slane %v439_v40, 4  ;;  %v629_v27 = vpack.i.b16 %v628_v9, %v627_v1 }
 0x226   :  { %v691_v29 = vperm.slane %v626_v28, %v3129_v3  ;;  %v437_v33 = vsel %vm398_vm14, 0, %v436_v6  ;;  %v850_v22 = vpack.i.b16 %v837_v62, %v3081_v52  ;;  %v852_v35 = vshrl.u32 %v837_v62, 16 }
 0x227   :  { %v383_v36 = vpack.i.b16 %v3158_v55, %v358_v63  ;;  %v478_v42 = vrot.slane %v3215_v17, 4  ;;  %v717_v32 = vperm.slane %v629_v27, %v3129_v3  ;;  %v384_v46 = vshrl.u32 %v358_v63, 16 }
 0x228   :  { %v692_v31 = vrot.slane %v691_v29, 4  ;;  %v695_v43 = vsel %vm398_vm14, %v691_v29, %v694_v16  ;;  %v853_v9 = vpack.i.b16 %v852_v35, %v851_v23  ;;  %v3246_v49 = vsel %vm398_vm14, %v516_v26, %v437_v33  ;;  %v3251_v16 = vpop.permute.xlu2 %846 }
 0x229   :  { %v703_v44 = vperm.slane %v695_v43, %v3137_v20  ;;  %v449_v28 = vperm.slane %v383_v36, %v3129_v3  ;;  %v718_v53 = vrot.slane %v717_v32, 4  ;;  %v721_v59 = vsel %vm398_vm14, %v717_v32, %v720_v25 }
 0x22a   :  { %v693_v51 = vsel %vm398_vm14, %v692_v31, %v3165_v5  ;;  %v729_v52 = vperm.slane %v721_v59, %v3137_v20  ;;  %v3256_v23 = vperm.slane %v850_v22, %v3129_v3  ;;  %v3261_v1 = vperm.slane %v853_v9, %v3129_v3 }
 0x22b   :  { %v699_v61 = vperm.slane %v693_v51, %v3137_v20  ;;  %v706_v50 = vrot.slane %v703_v44, 4  ;;  %v719_v21 = vsel %vm398_vm14, %v718_v53, %v3173_v11  ;;  %v386_v5 = vpack.i.b16 %v385_v13, %v384_v46 }
 0x22c   :  { %v450_v25 = vrot.slane %v449_v28, 4  ;;  %v725_v62 = vperm.slane %v719_v21, %v3137_v20  ;;  %v732_v63 = vrot.slane %v729_v52, 4  ;;  %v453_v11 = vsel %vm398_vm14, %v449_v28, %v452_v18 }
 0x22d   :  { %v704_v6 = vrot.slane %v699_v61, 4  ;;  %v707_v40 = vsel %vm398_vm14, 0, %v706_v50  ;;  %v3268_v26 = vsel %vm398_vm14, %v706_v50, %v699_v61  ;;  %v870_v13 = vshrl.u32 %v3251_v16, 16 }
 0x22e   :  { %v777_v27 = vrot.slane %v707_v40, 4  ;;  %v451_v29 = vsel %vm398_vm14, %v450_v25, %v444_v57  ;;  %v3274_v55 = vsel %vm398_vm14, 0, %v732_v63  ;;  %v884_v22 = vrot.slane %v3256_v23, 4 }
 0x22f   :  { %v705_v33 = vsel %vm398_vm14, 0, %v704_v6  ;;  %v730_v35 = vrot.slane %v725_v62, 4  ;;  %v776_v36 = vperm.slane %v3268_v26, %v3129_v3  ;;  %v910_v31 = vrot.slane %v3261_v1, 4 }
 0x230   :  { %v457_v43 = vperm.slane %v451_v29, %v3137_v20  ;;  %v3283_v57 = vsel %vm398_vm14, %v777_v27, %v705_v33  ;;  %v461_v18 = vperm.slane %v453_v11, %v3137_v20  ;;  %v475_v32 = vperm.slane %v386_v5, %v3129_v3  ;;  %v1079_v21 = vpop.permute.xlu2 %1078 }
 0x231   :  { %v745_v44 = vrot.slane %v744_v47, 4  ;;  %v3291_v9 = vsel %vm398_vm14, %v732_v63, %v725_v62  ;;  %v796_v46 = vrot.slane %v3274_v55, 4  ;;  %v759_v51 = vsel %vm398_vm14, %v758_v2, %v3184_v24 }
 0x232   :  { %v462_v28 = vrot.slane %v457_v43, 4  ;;  %v464_v53 = vrot.slane %v461_v18, 4  ;;  %v476_v59 = vrot.slane %v475_v32, 4  ;;  %v479_v61 = vsel %vm398_vm14, %v475_v32, %v478_v42 }
 0x233   :  { %v746_v34 = vsel %vm398_vm14, %v745_v44, %v738_v41  ;;  %v3304_v47 = vsel %vm398_vm14, 0, %v730_v35  ;;  %v487_v50 = vperm.slane %v479_v61, %v3137_v20  ;;  %v763_v48 = vperm.slane %v759_v51, %v3129_v3 }
 0x234   :  { %v750_v52 = vperm.slane %v746_v34, %v3137_v20  ;;  %v463_v2 = vsel %vm398_vm14, 0, %v462_v28  ;;  %v465_v24 = vsel %vm398_vm14, 0, %v464_v53  ;;  %v477_v42 = vsel %vm398_vm14, %v476_v59, %v3215_v17 }
 0x235   :  { %v757_v15 = vperm.slane %v3218_v4, %v3129_v3  ;;  %v483_v41 = vperm.slane %v477_v42, %v3137_v20  ;;  %v490_v5 = vrot.slane %v487_v50, 4  ;;  %v3317_v25 = vsel %vm398_vm14, %v464_v53, %v457_v43  ;;  %v841_v4 = vpop.permute.xlu0 %840  ;;  %v839_v53 = vpop.permute.xlu1 %838 }
 0x236   :  { %v535_v6 = vrot.slane %v465_v24, 4  ;;  %v764_v40 = vrot.slane %v763_v48, 4  ;;  %v751_v62 = vrot.slane %v750_v52, 4  ;;  %v1092_v63 = vpack.i.b16 %v1079_v21, %v3097_v56 }
 0x237   :  { %v1094_v27 = vshrl.u32 %v1079_v21, 16  ;;  %v488_v29 = vrot.slane %v483_v41, 4  ;;  %v491_v11 = vsel %vm398_vm14, 0, %v490_v5  ;;  %v3323_v33 = vsel %vm398_vm14, %v490_v5, %v483_v41 }
 0x238   :  { %v536_v17 = vsel %vm398_vm14, %v535_v6, %v463_v2  ;;  %v554_v18 = vrot.slane %v491_v11, 4  ;;  %v765_v43 = vsel %vm398_vm14, %v764_v40, %v757_v15  ;;  %v534_v44 = vperm.slane %v3317_v25, %v3129_v3 }
 0x239   :  { %v540_v35 = vperm.slane %v536_v17, %v3129_v3  ;;  %v489_v32 = vsel %vm398_vm14, 0, %v488_v29  ;;  %v769_v28 = vperm.slane %v765_v43, %v3137_v20  ;;  %v752_v51 = vsel %vm398_vm14, 0, %v751_v62 }
 0x23a   :  { %v553_v59 = vperm.slane %v3323_v33, %v3129_v3  ;;  %v555_v61 = vsel %vm398_vm14, %v554_v18, %v489_v32  ;;  %v813_v34 = vshrl.u32 %v750_v52, 16  ;;  %v1095_v50 = vpack.i.b16 %v1094_v27, %v1093_v30 }
 0x23b   :  { %v812_v48 = vpack.i.b16 %v769_v28, %v750_v52  ;;  %v814_v21 = vshrl.u32 %v769_v28, 16  ;;  %v770_v2 = vrot.slane %v769_v28, 4  ;;  %v3338_v24 = vperm.slane %v1092_v63, %v3129_v3 }
 0x23c   :  { %v3340_v42 = vrot.slane %v540_v35, 4  ;;  %v819_v15 = vshrl.u32 %v752_v51, 16  ;;  %v862_v41 = vpack.i.b16 %v839_v53, %v3089_v54  ;;  %v864_v5 = vshrl.u32 %v839_v53, 16 }
 0x23d   :  { %v559_v6 = vperm.slane %v555_v61, %v3129_v3  ;;  %v1565_v40 = vsel %vm1560_vm15, %v812_v48, 0  ;;  %v815_v62 = vpack.i.b16 %v814_v21, %v813_v34  ;;  %v771_v56 = vsel %vm398_vm14, 0, %v770_v2  ;;  %v843_v53 = vpop.permute.xlu0 %842 }
 0x23e   :  { %1574 = vmatpush.bf16.xpose.msrb.mxu1 %v1565_v40  ;;  %v818_v30 = vpack.i.b16 %v771_v56, %v752_v51  ;;  %v820_v52 = vshrl.u32 %v771_v56, 16  ;;  %v3347_v27 = vperm.slane %v1095_v50, %v3129_v3  ;;  %v865_v63 = vpack.i.b16 %v864_v5, %v863_v37 }
 0x23f   :  { %v1584_v29 = vsel %vm1560_vm15, %v815_v62, 0  ;;  %v1126_v11 = vrot.slane %v3338_v24, 4  ;;  %v856_v17 = vpack.i.b16 %v3199_v45, %v841_v4  ;;  %v857_v35 = vshrl.u32 %v841_v4, 16 }
 0x240   :  { %1593 = vmatpush.bf16.xpose.msrb.mxu2 %v1584_v29  ;;  %v1603_v18 = vsel %vm1560_vm15, %v818_v30, 0  ;;  %v821_v43 = vpack.i.b16 %v820_v52, %v819_v15  ;;  %v3356_v32 = vperm.slane %v862_v41, %v3129_v3  ;;  %v503_v28 = vrot.slane %v502_v12, 4  ;;  %v3399_v52 = vpop.permute.xlu2 %1328 }
 0x241   :  { %v3361_v54 = vrot.slane %v559_v6, 4  ;;  %1612 = vmatpush.bf16.xpose.msrb.mxu3 %v1603_v18  ;;  %v859_v37 = vpack.i.b16 %v858_v14, %v857_v35  ;;  %v881_v51 = vperm.slane %v856_v17, %v3129_v3  ;;  %v521_v4 = vperm.slane %v3246_v49, %v3129_v3  ;;  %v3403_v18 = vpop.permute.xlu1 %1082 }
 0x242   :  { %v1622_v61 = vsel %vm1560_vm15, %v821_v43, 0  ;;  %v1152_v34 = vrot.slane %v3347_v27, 4  ;;  %v3371_v50 = vperm.slane %v865_v63, %v3129_v3  ;;  %v504_v7 = vsel %vm398_vm14, %v503_v28, %v496_v10 }
 0x243   :  { %1631 = vmatpush.bf16.xpose.msra.mxu0 %v1622_v61  ;;  %v882_v45 = vrot.slane %v881_v51, 4  ;;  %v885_v12 = vsel %vm398_vm14, %v881_v51, %v884_v22  ;;  %v907_v14 = vperm.slane %v859_v37, %v3129_v3  ;;  %v508_v49 = vperm.slane %v504_v7, %v3137_v20 }
 0x244   :  { %v936_v48 = vrot.slane %v3356_v32, 4  ;;  %v893_v21 = vperm.slane %v885_v12, %v3137_v20  ;;  %v522_v2 = vrot.slane %v521_v4, 4  ;;  %v868_v15 = vpack.i.b16 %v3251_v16, %v843_v53 }
 0x245   :  { %v883_v0 = vsel %vm398_vm14, %v882_v45, %v3256_v23  ;;  %v908_v10 = vrot.slane %v907_v14, 4  ;;  %v911_v41 = vsel %vm398_vm14, %v907_v14, %v910_v31  ;;  %v571_v22 = vshrl.u32 %v508_v49, 16 }
 0x246   :  { %v889_v5 = vperm.slane %v883_v0, %v3137_v20  ;;  %v896_v6 = vrot.slane %v893_v21, 4  ;;  %v919_v40 = vperm.slane %v911_v41, %v3137_v20  ;;  %v523_v62 = vsel %vm398_vm14, %v522_v2, %v515_v19 }
 0x247   :  { %v909_v56 = vsel %vm398_vm14, %v908_v10, %v3261_v1  ;;  %v527_v23 = vperm.slane %v523_v62, %v3137_v20  ;;  %v509_v30 = vrot.slane %v508_v49, 4  ;;  %v869_v31 = vshrl.u32 %v843_v53, 16 }
 0x248   :  { %v894_v63 = vrot.slane %v889_v5, 4  ;;  %v897_v29 = vsel %vm398_vm14, 0, %v896_v6  ;;  %v915_v17 = vperm.slane %v909_v56, %v3137_v20  ;;  %v922_v35 = vrot.slane %v919_v40, 4 }
 0x249   :  { %v3406_v8 = vsel %vm398_vm14, %v896_v6, %v889_v5  ;;  %v981_v19 = vrot.slane %v897_v29, 4  ;;  %v3408_v43 = vpack.i.b16 %v527_v23, %v508_v49  ;;  %v572_v1 = vshrl.u32 %v527_v23, 16 }
 0x24a   :  { %v962_v28 = vrot.slane %v3371_v50, 4  ;;  %v895_v37 = vsel %vm398_vm14, 0, %v894_v63  ;;  %v3413_v51 = vsel %vm398_vm14, 0, %v922_v35  ;;  %v1342_v4 = vshrl.u32 %v3399_v52, 16 }
 0x24b   :  { %v920_v53 = vrot.slane %v915_v17, 4  ;;  %v980_v61 = vperm.slane %v3406_v8, %v3129_v3  ;;  %2723 = vmatmul.msk.bf16.vlgmr.msrb.gmra.mxu1 %vm1560_vm15, %v3408_v43  ;;  %v3420_v7 = vpack.i.b16 %v572_v1, %v571_v22  ;;  %v1099_v45 = vshrl.u32 %v3403_v18, 16 }
 0x24c   :  { %v3424_v12 = vsel %vm398_vm14, %v981_v19, %v895_v37  ;;  %v510_v14 = vsel %vm398_vm14, 0, %v509_v30  ;;  %v528_v49 = vrot.slane %v527_v23, 4  ;;  %v871_v21 = vpack.i.b16 %v870_v13, %v869_v31 }
 0x24d   :  { %v3430_v2 = vsel %vm398_vm14, %v922_v35, %v915_v17  ;;  %v1000_v0 = vrot.slane %v3413_v51, 4  ;;  %2724 = vmatmul.msk.bf16.vlgmr.msrb.gmra.mxu2 %vm1560_vm15, %v3420_v7  ;;  %v933_v10 = vperm.slane %v868_v15, %v3129_v3  ;;  %v782_v41 = vperm.slane %v3283_v57, %v3129_v3  ;;  %v1321_v35 = vpop.permute.xlu1 %1320 }
 0x24e   :  { %v529_v22 = vsel %vm398_vm14, 0, %v528_v49  ;;  %v577_v5 = vshrl.u32 %v510_v14, 16  ;;  %v959_v6 = vperm.slane %v871_v21, %v3129_v3  ;;  %v797_v16 = vsel %vm398_vm14, %v796_v46, %v3304_v47 }
 0x24f   :  { %v3444_v13 = vpack.i.b16 %v529_v22, %v510_v14  ;;  %v578_v40 = vshrl.u32 %v529_v22, 16  ;;  %v934_v62 = vrot.slane %v933_v10, 4  ;;  %v937_v56 = vsel %vm398_vm14, %v933_v10, %v936_v48 }
 0x250   :  { %v945_v15 = vperm.slane %v937_v56, %v3137_v20  ;;  %v960_v23 = vrot.slane %v959_v6, 4  ;;  %v963_v57 = vsel %vm398_vm14, %v959_v6, %v962_v28  ;;  %v783_v30 = vrot.slane %v782_v41, 4  ;;  %v1087_v41 = vpop.permute.xlu0 %1086 }
 0x251   :  { %v3449_v31 = vpack.i.b16 %v578_v40, %v577_v5  ;;  %2725 = vmatmul.msk.bf16.vlgmr.msrb.gmra.mxu3 %vm1560_vm15, %v3444_v13  ;;  %v935_v55 = vsel %vm398_vm14, %v934_v62, %v3356_v32  ;;  %v971_v46 = vperm.slane %v963_v57, %v3137_v20  ;;  %v801_v47 = vperm.slane %v797_v16, %v3129_v3 }
 0x252   :  { %v941_v48 = vperm.slane %v935_v55, %v3137_v20  ;;  %v948_v63 = vrot.slane %v945_v15, 4  ;;  %v961_v29 = vsel %vm398_vm14, %v960_v23, %v3371_v50  ;;  %v784_v17 = vsel %vm398_vm14, %v783_v30, %v776_v36 }
 0x253   :  { %2726 = vmatmul.msk.bf16.vlgmr.msra.gmra.mxu0 %vm1560_vm15, %v3449_v31  ;;  %v967_v32 = vperm.slane %v961_v29, %v3137_v20  ;;  %v974_v19 = vrot.slane %v971_v46, 4  ;;  %v795_v1 = vperm.slane %v3291_v9, %v3129_v3  ;;  %v802_v28 = vrot.slane %v801_v47, 4 }
 0x254   :  { %v946_v37 = vrot.slane %v941_v48, 4  ;;  %v949_v14 = vsel %vm398_vm14, 0, %v948_v63  ;;  %v3471_v50 = vsel %vm398_vm14, %v948_v63, %v941_v48  ;;  %v788_v26 = vperm.slane %v784_v17, %v3137_v20 }
 0x255   :  { %v3475_v36 = vsel %vm398_vm14, 0, %v920_v53  ;;  %v972_v49 = vrot.slane %v967_v32, 4  ;;  %v3478_v21 = vsel %vm398_vm14, 0, %v974_v19  ;;  %v1334_v10 = vpack.i.b16 %v1321_v35, %v3105_v58 }
 0x256   :  { %v1018_v9 = vperm.slane %v3471_v50, %v3129_v3  ;;  %v1019_v22 = vrot.slane %v949_v14, 4  ;;  %v803_v5 = vsel %vm398_vm14, %v802_v28, %v795_v1  ;;  %v1336_v6 = vshrl.u32 %v1321_v35, 16 }
 0x257   :  { %v947_v16 = vsel %vm398_vm14, 0, %v946_v37  ;;  %v3486_v40 = vsel %vm398_vm14, %v974_v19, %v967_v32  ;;  %v1038_v53 = vrot.slane %v3478_v21, 4  ;;  %v807_v62 = vperm.slane %v803_v5, %v3137_v20  ;;  %v1323_v5 = vpop.permute.xlu1 %1322 }
 0x258   :  { %v3491_v56 = vsel %vm398_vm14, 0, %v972_v49  ;;  %v825_v15 = vshrl.u32 %v788_v26, 16  ;;  %v789_v23 = vrot.slane %v788_v26, 4  ;;  %v1098_v57 = vpack.i.b16 %v1087_v41, %v3403_v18 }
 0x259   :  { %v824_v30 = vpack.i.b16 %v807_v62, %v788_v26  ;;  %v826_v55 = vshrl.u32 %v807_v62, 16  ;;  %v808_v46 = vrot.slane %v807_v62, 4  ;;  %v1100_v47 = vshrl.u32 %v1087_v41, 16 }
 0x25a   :  { %v3495_v48 = vsel %vm398_vm14, %v1019_v22, %v947_v16  ;;  %v790_v63 = vsel %vm398_vm14, 0, %v789_v23  ;;  %v1337_v29 = vpack.i.b16 %v1336_v6, %v1335_v38  ;;  %v1123_v17 = vperm.slane %v1098_v57, %v3129_v3 }
 0x25b   :  { %v1641_v35 = vsel %vm1560_vm15, %v824_v30, 0  ;;  %v827_v32 = vpack.i.b16 %v826_v55, %v825_v15  ;;  %v809_v19 = vsel %vm398_vm14, 0, %v808_v46  ;;  %v3504_v1 = vperm.slane %v1334_v10, %v3129_v3 }
 0x25c   :  { %1650 = vmatpush.bf16.xpose.msra.mxu1 %v1641_v35  ;;  %v830_v28 = vpack.i.b16 %v809_v19, %v790_v63  ;;  %v831_v37 = vshrl.u32 %v790_v63, 16  ;;  %v832_v14 = vshrl.u32 %v809_v19, 16  ;;  %v1101_v26 = vpack.i.b16 %v1100_v47, %v1099_v45 }
 0x25d   :  { %v1660_v58 = vsel %vm1560_vm15, %v827_v32, 0  ;;  %v1124_v38 = vrot.slane %v1123_v17, 4  ;;  %v1127_v49 = vsel %vm398_vm14, %v1123_v17, %v1126_v11  ;;  %v542_v10 = vsel %vm398_vm14, %v3340_v42, %v534_v44 }
 0x25e   :  { %1669 = vmatpush.bf16.xpose.msra.mxu2 %v1660_v58  ;;  %v1679_v41 = vsel %vm1560_vm15, %v830_v28, 0  ;;  %v833_v22 = vpack.i.b16 %v832_v14, %v831_v37  ;;  %v1135_v18 = vperm.slane %v1127_v49, %v3137_v20  ;;  %v1149_v45 = vperm.slane %v1101_v26, %v3129_v3  ;;  %v1325_v14 = vpop.permute.xlu0 %1324 }
 0x25f   :  { %1688 = vmatpush.bf16.xpose.msra.mxu3 %v1679_v41  ;;  %v3521_v6 = vperm.slane %v1337_v29, %v3129_v3  ;;  %v1125_v11 = vsel %vm398_vm14, %v1124_v38, %v3338_v24  ;;  %v546_v25 = vperm.slane %v542_v10, %v3137_v20  ;;  %v561_v44 = vsel %vm398_vm14, %v3361_v54, %v553_v59 }
 0x260   :  { %v1698_v42 = vsel %vm1560_vm15, %v833_v22, 0  ;;  %v1131_v16 = vperm.slane %v1125_v11, %v3137_v20  ;;  %v1138_v62 = vrot.slane %v1135_v18, 4  ;;  %v1150_v15 = vrot.slane %v1149_v45, 4 }
 0x261   :  { %1707 = vmatpush.bf16.xpose.msrb.mxu0 %v1698_v42  ;;  %v1153_v23 = vsel %vm398_vm14, %v1149_v45, %v1152_v34  ;;  %v565_v24 = vperm.slane %v561_v44, %v3137_v20  ;;  %v547_v57 = vrot.slane %v546_v25, 4  ;;  %v1346_v30 = vpack.i.b16 %v1323_v5, %v3113_v60 }
 0x262   :  { %v1136_v33 = vrot.slane %v1131_v16, 4  ;;  %v1139_v55 = vsel %vm398_vm14, 0, %v1138_v62  ;;  %v1151_v59 = vsel %vm398_vm14, %v1150_v15, %v3347_v27  ;;  %v1161_v54 = vperm.slane %v1153_v23, %v3137_v20 }
 0x263   :  { %v1157_v46 = vperm.slane %v1151_v59, %v3137_v20  ;;  %v3544_v47 = vsel %vm398_vm14, %v1138_v62, %v1131_v16  ;;  %v1223_v63 = vrot.slane %v1139_v55, 4  ;;  %v3546_v34 = vpack.i.b16 %v565_v24, %v546_v25 }
 0x264   :  { %v1137_v29 = vsel %vm398_vm14, 0, %v1136_v33  ;;  %v1164_v17 = vrot.slane %v1161_v54, 4  ;;  %v583_v35 = vshrl.u32 %v546_v25, 16  ;;  %v584_v32 = vshrl.u32 %v565_v24, 16 }
 0x265   :  { %v1162_v19 = vrot.slane %v1157_v46, 4  ;;  %v3550_v28 = vsel %vm398_vm14, %v1223_v63, %v1137_v29  ;;  %2727 = vmatmul.msk.bf16.vlgmr.msra.gmra.mxu1 %vm1560_vm15, %v3546_v34  ;;  %v548_v27 = vsel %vm398_vm14, 0, %v547_v57  ;;  %v566_v37 = vrot.slane %v565_v24, 4 }
 0x266   :  { %v1368_v26 = vrot.slane %v3504_v1, 4  ;;  %v1394_v58 = vrot.slane %v3521_v6, 4  ;;  %v3558_v38 = vsel %vm398_vm14, %v1164_v17, %v1157_v46  ;;  %v3560_v49 = vpack.i.b16 %v584_v32, %v583_v35  ;;  %v3601_v46 = vpop.permute.xlu1 %1326 }
 0x267   :  { %v3563_v10 = vsel %vm398_vm14, 0, %v1164_v17  ;;  %v1222_v41 = vperm.slane %v3544_v47, %v3129_v3  ;;  %v567_v22 = vsel %vm398_vm14, 0, %v566_v37  ;;  %v1348_v18 = vshrl.u32 %v1323_v5, 16 }
 0x268   :  { %2728 = vmatmul.msk.bf16.vlgmr.msra.gmra.mxu2 %vm1560_vm15, %v3560_v49  ;;  %v3570_v45 = vpack.i.b16 %v567_v22, %v548_v27  ;;  %v589_v11 = vshrl.u32 %v548_v27, 16  ;;  %v590_v25 = vshrl.u32 %v567_v22, 16  ;;  %v1340_v44 = vpack.i.b16 %v3399_v52, %v1325_v14 }
 0x269   :  { %v3574_v42 = vsel %vm398_vm14, 0, %v1162_v19  ;;  %v3577_v16 = vperm.slane %v1346_v30, %v3129_v3  ;;  %v1341_v62 = vshrl.u32 %v1325_v14, 16  ;;  %v986_v15 = vperm.slane %v3424_v12, %v3129_v3 }
 0x26a   :  { %v1242_v5 = vrot.slane %v3563_v10, 4  ;;  %2729 = vmatmul.msk.bf16.vlgmr.msra.gmra.mxu3 %vm1560_vm15, %v3570_v45  ;;  %v3584_v23 = vpack.i.b16 %v590_v25, %v589_v11  ;;  %v1365_v24 = vperm.slane %v1340_v44, %v3129_v3  ;;  %v1001_v57 = vsel %vm398_vm14, %v1000_v0, %v3475_v36 }
 0x26b   :  { %v1349_v30 = vpack.i.b16 %v1348_v18, %v1347_v39  ;;  %v1343_v12 = vpack.i.b16 %v1342_v4, %v1341_v62  ;;  %v987_v33 = vrot.slane %v986_v15, 4  ;;  %v1005_v55 = vperm.slane %v1001_v57, %v3129_v3 }
 0x26c   :  { %2730 = vmatmul.msk.bf16.vlgmr.msrb.gmra.mxu0 %vm1560_vm15, %v3584_v23  ;;  %v1366_v59 = vrot.slane %v1365_v24, 4  ;;  %v1369_v54 = vsel %vm398_vm14, %v1365_v24, %v1368_v26  ;;  %v999_v51 = vperm.slane %v3430_v2, %v3129_v3  ;;  %v1024_v60 = vperm.slane %v3495_v48, %v3129_v3 }
 0x26d   :  { %v1420_v39 = vrot.slane %v3577_v16, 4  ;;  %v1377_v52 = vperm.slane %v1369_v54, %v3137_v20  ;;  %v1391_v4 = vperm.slane %v1343_v12, %v3129_v3  ;;  %v988_v0 = vsel %vm398_vm14, %v987_v33, %v980_v61 }
 0x26e   :  { %v1367_v36 = vsel %vm398_vm14, %v1366_v59, %v3504_v1  ;;  %v992_v2 = vperm.slane %v988_v0, %v3137_v20  ;;  %v1006_v63 = vrot.slane %v1005_v55, 4  ;;  %v1025_v29 = vrot.slane %v1024_v60, 4  ;;  %v1331_v60 = vpop.permute.xlu1 %1330 }
 0x26f   :  { %v1373_v48 = vperm.slane %v1367_v36, %v3137_v20  ;;  %v1380_v17 = vrot.slane %v1377_v52, 4  ;;  %v1392_v35 = vrot.slane %v1391_v4, 4  ;;  %v1395_v32 = vsel %vm398_vm14, %v1391_v4, %v1394_v58 }
 0x270   :  { %v3618_v19 = vperm.slane %v1349_v30, %v3129_v3  ;;  %v1403_v8 = vperm.slane %v1395_v32, %v3137_v20  ;;  %v1007_v61 = vsel %vm398_vm14, %v1006_v63, %v999_v51  ;;  %v993_v27 = vrot.slane %v992_v2, 4 }
 0x271   :  { %v1378_v37 = vrot.slane %v1373_v48, 4  ;;  %v1381_v1 = vsel %vm398_vm14, 0, %v1380_v17  ;;  %v1393_v14 = vsel %vm398_vm14, %v1392_v35, %v3521_v6  ;;  %v1460_v26 = vsel %vm398_vm14, %v1380_v17, %v1373_v48 }
 0x272   :  { %v1399_v22 = vperm.slane %v1393_v14, %v3137_v20  ;;  %v1406_v18 = vrot.slane %v1403_v8, 4  ;;  %v1465_v58 = vrot.slane %v1381_v1, 4  ;;  %v1353_v11 = vshrl.u32 %v3601_v46, 16 }
 0x273   :  { %v1379_v25 = vsel %vm398_vm14, 0, %v1378_v37  ;;  %v1011_v44 = vperm.slane %v1007_v61, %v3137_v20  ;;  %v994_v62 = vsel %vm398_vm14, 0, %v993_v27  ;;  %v1026_v15 = vsel %vm398_vm14, %v1025_v29, %v1018_v9 }
 0x274   :  { %v1446_v6 = vrot.slane %v3618_v19, 4  ;;  %v1404_v24 = vrot.slane %v1399_v22, 4  ;;  %v1464_v57 = vperm.slane %v1460_v26, %v3129_v3  ;;  %v1055_v30 = vshrl.u32 %v992_v2, 16 }
 0x275   :  { %v3638_v12 = vsel %vm398_vm14, 0, %v1406_v18  ;;  %v1054_v33 = vpack.i.b16 %v1011_v44, %v992_v2  ;;  %v1056_v55 = vshrl.u32 %v1011_v44, 16  ;;  %v1012_v59 = vrot.slane %v1011_v44, 4 }
 0x276   :  { %v1466_v54 = vsel %vm398_vm14, %v1465_v58, %v1379_v25  ;;  %v3642_v51 = vsel %vm398_vm14, %v1406_v18, %v1399_v22  ;;  %v1061_v50 = vshrl.u32 %v994_v62, 16  ;;  %v1030_v9 = vperm.slane %v1026_v15, %v3137_v20 }
 0x277   :  { %v1714_v52 = vsel %vm1560_vm15, %v1054_v33, 0  ;;  %v1057_v4 = vpack.i.b16 %v1056_v55, %v1055_v30  ;;  %v1013_v0 = vsel %vm398_vm14, 0, %v1012_v59  ;;  %v1039_v36 = vsel %vm398_vm14, %v1038_v53, %v3491_v56 }
 0x278   :  { %1723 = vmatpush.bf16.xpose.msrb.mxu1 %v1714_v52  ;;  %v1060_v2 = vpack.i.b16 %v1013_v0, %v994_v62  ;;  %v1062_v63 = vshrl.u32 %v1013_v0, 16  ;;  %v1037_v29 = vperm.slane %v3486_v40, %v3129_v3  ;;  %v1043_v48 = vperm.slane %v1039_v36, %v3129_v3 }
 0x279   :  { %v1730_v17 = vsel %vm1560_vm15, %v1057_v4, 0  ;;  %v1031_v35 = vrot.slane %v1030_v9, 4  ;;  %v1352_v32 = vpack.i.b16 %v1331_v60, %v3601_v46  ;;  %v1354_v8 = vshrl.u32 %v1331_v60, 16 }
 0x27a   :  { %1739 = vmatpush.bf16.xpose.msrb.mxu2 %v1730_v17  ;;  %v1746_v61 = vsel %vm1560_vm15, %v1060_v2, 0  ;;  %v1063_v21 = vpack.i.b16 %v1062_v63, %v1061_v50  ;;  %v1044_v27 = vrot.slane %v1043_v48, 4  ;;  %v1470_v53 = vperm.slane %v1466_v54, %v3129_v3 }
 0x27b   :  { %v1484_v56 = vrot.slane %v3638_v12, 4  ;;  %1755 = vmatpush.bf16.xpose.msrb.mxu3 %v1746_v61  ;;  %v1032_v40 = vsel %vm398_vm14, 0, %v1031_v35  ;;  %v1355_v37 = vpack.i.b16 %v1354_v8, %v1353_v11  ;;  %v1417_v1 = vperm.slane %v1352_v32, %v3129_v3 }
 0x27c   :  { %v1405_v14 = vsel %vm398_vm14, 0, %v1404_v24  ;;  %v1762_v46 = vsel %vm1560_vm15, %v1063_v21, 0  ;;  %v1045_v26 = vsel %vm398_vm14, %v1044_v27, %v1037_v29  ;;  %v1471_v22 = vrot.slane %v1470_v53, 4 }
 0x27d   :  { %1771 = vmatpush.bf16.xpose.msra.mxu0 %v1762_v46  ;;  %v1049_v18 = vperm.slane %v1045_v26, %v3137_v20  ;;  %v1418_v58 = vrot.slane %v1417_v1, 4  ;;  %v1421_v25 = vsel %vm398_vm14, %v1417_v1, %v1420_v39  ;;  %v1443_v44 = vperm.slane %v1355_v37, %v3129_v3 }
 0x27e   :  { %v1067_v11 = vshrl.u32 %v1030_v9, 16  ;;  %v1073_v62 = vshrl.u32 %v1032_v40, 16  ;;  %v1429_v15 = vperm.slane %v1421_v25, %v3137_v20  ;;  %v1472_v24 = vsel %vm398_vm14, %v1471_v22, %v1464_v57 }
 0x27f   :  { %2731 = vmatmul.msk.bf16.vlgmr.msrb.gmra.mxu1 %vm1560_vm15, %v3408_v43  ;;  %v1066_v30 = vpack.i.b16 %v1049_v18, %v1030_v9  ;;  %v1068_v12 = vshrl.u32 %v1049_v18, 16  ;;  %v1050_v33 = vrot.slane %v1049_v18, 4  ;;  %v1419_v55 = vsel %vm398_vm14, %v1418_v58, %v3577_v16 }
 0x280   :  { %v1425_v59 = vperm.slane %v1419_v55, %v3137_v20  ;;  %v1432_v39 = vrot.slane %v1429_v15, 4  ;;  %v1444_v54 = vrot.slane %v1443_v44, 4  ;;  %v1447_v50 = vsel %vm398_vm14, %v1443_v44, %v1446_v6 }
 0x281   :  { %v1778_v60 = vsel %vm1560_vm15, %v1066_v30, 0  ;;  %2732 = vmatmul.msk.bf16.vlgmr.msrb.gmra.mxu2 %vm1560_vm15, %v3420_v7  ;;  %v1069_v57 = vpack.i.b16 %v1068_v12, %v1067_v11  ;;  %v1051_v43 = vsel %vm398_vm14, 0, %v1050_v33  ;;  %v1455_v9 = vperm.slane %v1447_v50, %v3137_v20 }
 0x282   :  { %1787 = vmatpush.bf16.xpose.msra.mxu1 %v1778_v60  ;;  %2733 = vmatmul.msk.bf16.vlgmr.msrb.gmra.mxu3 %vm1560_vm15, %v3444_v13  ;;  %v1072_v16 = vpack.i.b16 %v1051_v43, %v1032_v40  ;;  %v1074_v52 = vshrl.u32 %v1051_v43, 16  ;;  %v1430_v4 = vrot.slane %v1425_v59, 4  ;;  %v1433_v0 = vsel %vm398_vm14, 0, %v1432_v39 }
 0x283   :  { %v1794_v6 = vsel %vm1560_vm15, %v1069_v57, 0  ;;  %v1445_v36 = vsel %vm398_vm14, %v1444_v54, %v3618_v19  ;;  %v1458_v7 = vrot.slane %v1455_v9, 4  ;;  %v1485_v2 = vsel %vm398_vm14, %v1484_v56, %v1405_v14 }
 0x284   :  { %1803 = vmatpush.bf16.xpose.msra.mxu2 %v1794_v6  ;;  %v1810_v63 = vsel %vm1560_vm15, %v1072_v16, 0  ;;  %2734 = vmatmul.msk.bf16.vlgmr.msra.gmra.mxu0 %vm1560_vm15, %v3449_v31  ;;  %v1075_v13 = vpack.i.b16 %v1074_v52, %v1073_v62  ;;  %v1431_v29 = vsel %vm398_vm14, 0, %v1430_v4  ;;  %v1451_v48 = vperm.slane %v1445_v36, %v3137_v20 }
 0x285   :  { %1819 = vmatpush.bf16.xpose.msra.mxu3 %v1810_v63  ;;  %v1459_v17 = vsel %vm398_vm14, 0, %v1458_v7  ;;  %v1503_v35 = vrot.slane %v1433_v0, 4  ;;  %v1476_v19 = vperm.slane %v1472_v24, %v3137_v20  ;;  %v1483_v32 = vperm.slane %v3642_v51, %v3129_v3 }
 0x286   :  { %v1826_v8 = vsel %vm1560_vm15, %v1075_v13, 0  ;;  %v1456_v61 = vrot.slane %v1451_v48, 4  ;;  %v1498_v21 = vsel %vm398_vm14, %v1432_v39, %v1425_v59  ;;  %v1522_v31 = vrot.slane %v1459_v17, 4 }
 0x287   :  { %1835 = vmatpush.bf16.xpose.msrb.mxu0 %v1826_v8  ;;  %v1504_v27 = vsel %vm398_vm14, %v1503_v35, %v1431_v29  ;;  %v1489_v53 = vperm.slane %v1485_v2, %v3129_v3  ;;  %v1477_v56 = vrot.slane %v1476_v19, 4  ;;  %v1517_v37 = vsel %vm398_vm14, %v1458_v7, %v1451_v48 }
 0x288   :  { %v1457_v40 = vsel %vm398_vm14, 0, %v1456_v61  ;;  %v1508_v1 = vperm.slane %v1504_v27, %v3129_v3  ;;  %v1228_v51 = vperm.slane %v3550_v28, %v3129_v3  ;;  %v1502_v14 = vperm.slane %v1498_v21, %v3129_v3 }
 0x289   :  { %v1490_v46 = vrot.slane %v1489_v53, 4  ;;  %v1539_v26 = vshrl.u32 %v1476_v19, 16  ;;  %v1523_v22 = vsel %vm398_vm14, %v1522_v31, %v1457_v40  ;;  %v1478_v18 = vsel %vm398_vm14, 0, %v1477_v56 }
 0x28a   :  { %v1509_v58 = vrot.slane %v1508_v1, 4  ;;  %v1527_v25 = vperm.slane %v1523_v22, %v3129_v3  ;;  %v1229_v44 = vrot.slane %v1228_v51, 4  ;;  %v1521_v62 = vperm.slane %v1517_v37, %v3129_v3 }
 0x28b   :  { %v1491_v11 = vsel %vm398_vm14, %v1490_v46, %v1483_v32  ;;  %v1241_v15 = vperm.slane %v3558_v38, %v3129_v3  ;;  %v1243_v28 = vsel %vm398_vm14, %v1242_v5, %v3574_v42  ;;  %v1545_v55 = vshrl.u32 %v1478_v18, 16 }
 0x28c   :  { %v1495_v24 = vperm.slane %v1491_v11, %v3137_v20  ;;  %v1510_v30 = vsel %vm398_vm14, %v1509_v58, %v1502_v14  ;;  %v1528_v12 = vrot.slane %v1527_v25, 4  ;;  %v1230_v33 = vsel %vm398_vm14, %v1229_v44, %v1222_v41  ;;  %v328_v58 = vpop.f32.mrf.mxu3 }
 0x28d   :  { %v1514_v59 = vperm.slane %v1510_v30, %v3137_v20  ;;  %v3727_v38 = vperm.slane %v1230_v33, %v3137_v20  ;;  %v1247_v10 = vperm.slane %v1243_v28, %v3129_v3 }
 0x28e   :  { %v1538_v39 = vpack.i.b16 %v1495_v24, %v1476_v19  ;;  %v1540_v42 = vshrl.u32 %v1495_v24, 16  ;;  %v1496_v5 = vrot.slane %v1495_v24, 4  ;;  %v1529_v54 = vsel %vm398_vm14, %v1528_v12, %v1521_v62 }
 0x28f   :  { %2735 = vmatmul.msk.bf16.vlgmr.msra.gmra.mxu1 %vm1560_vm15, %v3546_v34  ;;  %v1533_v47 = vperm.slane %v1529_v54, %v3137_v20  ;;  %v1551_v50 = vshrl.u32 %v1514_v59, 16  ;;  %v1515_v41 = vrot.slane %v1514_v59, 4  ;;  %v1248_v60 = vrot.slane %v1247_v10, 4 }
 0x290   :  { %v2031_v57 = vsel %vm2029_vm1, %v1538_v39, 0  ;;  %v1541_v43 = vpack.i.b16 %v1540_v42, %v1539_v26  ;;  %v1497_v9 = vsel %vm398_vm14, 0, %v1496_v5  ;;  %v1297_v16 = vshrl.u32 %v3727_v38, 16 }
 0x291   :  { %2040 = vmatpush.bf16.msrb.mxu1 %v2031_v57  ;;  %2736 = vmatmul.msk.bf16.vlgmr.msra.gmra.mxu2 %vm1560_vm15, %v3560_v49  ;;  %v1544_v52 = vpack.i.b16 %v1497_v9, %v1478_v18  ;;  %v1546_v4 = vshrl.u32 %v1497_v9, 16  ;;  %v1550_v0 = vpack.i.b16 %v1533_v47, %v1514_v59  ;;  %v1552_v34 = vshrl.u32 %v1533_v47, 16 }
 0x292   :  { %2737 = vmatmul.msk.bf16.vlgmr.msra.gmra.mxu3 %vm1560_vm15, %v3570_v45  ;;  %v2050_v6 = vsel %vm2029_vm1, %v1541_v43, 0  ;;  %v1516_v36 = vsel %vm398_vm14, 0, %v1515_v41  ;;  %v1534_v7 = vrot.slane %v1533_v47, 4  ;;  %v1249_v2 = vsel %vm398_vm14, %v1248_v60, %v1241_v15 }
 0x293   :  { %2059 = vmatpush.bf16.msrb.mxu2 %v2050_v6  ;;  %v2069_v63 = vsel %vm2029_vm1, %v1544_v52, 0  ;;  %v1547_v13 = vpack.i.b16 %v1546_v4, %v1545_v55  ;;  %v2107_v49 = vsel %vm2029_vm1, %v1550_v0, 0  ;;  %v1553_v29 = vpack.i.b16 %v1552_v34, %v1551_v50 }
 0x294   :  { %2078 = vmatpush.bf16.msrb.mxu3 %v2069_v63  ;;  %2738 = vmatmul.msk.bf16.vlgmr.msrb.gmra.mxu0 %vm1560_vm15, %v3584_v23  ;;  %v1535_v45 = vsel %vm398_vm14, 0, %v1534_v7  ;;  %v1557_v48 = vshrl.u32 %v1516_v36, 16  ;;  %v3750_v17 = vperm.slane %v1249_v2, %v3137_v20  ;;  %v1235_v35 = vrot.slane %v3727_v38, 4 }
 0x295   :  { %v2088_v19 = vsel %vm2029_vm1, %v1547_v13, 0  ;;  %2116 = vmatpush.bf16.msra.mxu1 %v2107_v49  ;;  %v2126_v32 = vsel %vm2029_vm1, %v1553_v29, 0  ;;  %v1556_v8 = vpack.i.b16 %v1535_v45, %v1516_v36  ;;  %v1558_v61 = vshrl.u32 %v1535_v45, 16 }
 0x296   :  { %2097 = vmatpush.bf16.msra.mxu0 %v2088_v19  ;;  %v1296_v23 = vpack.i.b16 %v3750_v17, %v3727_v38  ;;  %v1298_v21 = vshrl.u32 %v3750_v17, 16  ;;  %v3759_v31 = vsel %vm398_vm14, 0, %v1235_v35  ;;  %v1254_v27 = vrot.slane %v3750_v17, 4 }
 0x297   :  { %2135 = vmatpush.bf16.msra.mxu2 %v2126_v32  ;;  %v2145_v53 = vsel %vm2029_vm1, %v1556_v8, 0  ;;  %v1559_v56 = vpack.i.b16 %v1558_v61, %v1557_v48  ;;  %v1303_v51 = vshrl.u32 %v3759_v31, 16  ;;  %v3808_v0 = vpack.c.bf16 %v328_v58, %v328_v58 }
 0x298   :  { %2154 = vmatpush.bf16.msra.mxu3 %v2145_v53  ;;  %v3763_v40 = vpack.i.b16 %v1298_v21, %v1297_v16  ;;  %v3766_v37 = vsel %vm398_vm14, 0, %v1254_v27 }
 0x299   :  { %v2164_v1 = vsel %vm2029_vm1, %v1559_v56, 0  ;;  %v1304_v14 = vshrl.u32 %v3766_v37, 16  ;;  %v1302_v46 = vpack.i.b16 %v3766_v37, %v3759_v31 }
 0x29a   :  { %2173 = vmatpush.bf16.msrb.mxu0 %v2164_v1 }
 0x29b   :  { %v3773_v26 = vpack.i.b16 %v1304_v14, %v1303_v51 }
 0x2c8   :  { %v3775_v22 = vpop.f32.mrf.mxu1 }
 0x2c9   :  { %v1842_v18 = vsel %vm1841_vm2, %v3775_v22, -inf }
 0x2ca   :  { %1843 = vmax.xlane.f32.xlu2 %v1842_v18 }
 0x2d0   :  { %v3779_v25 = vpop.f32.mrf.mxu0  ;;  %v1578_v44 = vpop.f32.mrf.mxu1 }
 0x2d1   :  { %v3781_v11 = vpop.f32.mrf.mxu2  ;;  %v1851_v62 = vsel %vm1841_vm2, %v3779_v25, -inf }
 0x2d2   :  { %v1845_v15 = vsel %vm1841_vm2, %v3781_v11, -inf  ;;  %1852 = vmax.xlane.f32.xlu2 %v1851_v62 }
 0x2d3   :  { %1846 = vmax.xlane.f32.xlu0 %v1845_v15 }
 0x2d4   :  { %v3787_v28 = vpop.f32.mrf.mxu3 }
 0x2d5   :  { %v1848_v24 = vsel %vm1841_vm2, %v3787_v28, -inf }
 0x2d6   :  { %1849 = vmax.xlane.f32.xlu1 %v1848_v24 }
 0x2d8   :  { %v1635_v30 = vpop.f32.mrf.mxu0 }
 0x2d9   :  { %v1597_v12 = vpop.f32.mrf.mxu2 }
 0x2dc   :  { %v1616_v33 = vpop.f32.mrf.mxu3 }
 0x2e2   :  { %v3791_v55 = vpop.f32.mrf.mxu1 }
 0x2e3   :  { %v1854_v59 = vsel %vm1841_vm2, %v3791_v55, -inf }
 0x2e4   :  { %1855 = vmax.xlane.f32.xlu1 %v1854_v59 }
 0x2e9   :  { %v3795_v10 = vpop.f32.mrf.mxu0 }
 0x2ea   :  { %v1863_v39 = vsel %vm1841_vm2, %v3795_v10, -inf  ;;  %v1654_v42 = vpop.f32.mrf.mxu1 }
 0x2eb   :  { %1864 = vmax.xlane.f32.xlu2 %v1863_v39  ;;  %v3799_v5 = vpop.f32.mrf.mxu2 }
 0x2ec   :  { %v1857_v54 = vsel %vm1841_vm2, %v3799_v5, -inf }
 0x2ed   :  { %v3803_v47 = vpop.f32.mrf.mxu3  ;;  %1858 = vmax.xlane.f32.xlu1 %v1857_v54 }
 0x2ee   :  { %v1860_v41 = vsel %vm1841_vm2, %v3803_v47, -inf }
 0x2f1   :  { %v1711_v50 = vpop.f32.mrf.mxu0 }
 0x2f3   :  { %1861 = vmax.xlane.f32.xlu2 %v1860_v41  ;;  %v1673_v60 = vpop.f32.mrf.mxu2 }
 0x2f5   :  { %v1692_v57 = vpop.f32.mrf.mxu3 }
 0x2fc   :  { %v1725_v43 = vpop.f32.mrf.mxu1 }
 0x2fd   :  { %v1866_v9 = vsel %vm1841_vm2, %v1725_v43, -inf }
 0x2fe   :  { %1867 = vmax.xlane.f32.xlu0 %v1866_v9 }
 0x301   :  { %v1773_v16 = vpop.f32.mrf.mxu0 }
 0x302   :  { %v1875_v36 = vsel %vm1841_vm2, %v1773_v16, -inf }
 0x304   :  { %v1727_v52 = vpop.f32.mrf.mxu1  ;;  %v1741_v4 = vpop.f32.mrf.mxu2 }
 0x305   :  { %v3810_v34 = vpop.f32.mrf.mxu3  ;;  %v1869_v6 = vsel %vm1841_vm2, %v1741_v4, -inf }
 0x306   :  { %1870 = vmax.xlane.f32.xlu2 %v1869_v6  ;;  %1876 = vmax.xlane.f32.xlu0 %v1875_v36  ;;  %v1872_v49 = vsel %vm1841_vm2, %v3810_v34, -inf }
 0x307   :  { %1080 = vrot.lane.b32.xlu1 %v3808_v0, %s2899_s5 }
 0x309   :  { %v1775_v7 = vpop.f32.mrf.mxu0 }
 0x30c   :  { %v1743_v2 = vpop.f32.mrf.mxu2  ;;  %v3816_v63 = vpop.f32.mrf.mxu1 }
 0x30d   :  { %v1759_v13 = vpop.f32.mrf.mxu3  ;;  %v1878_v29 = vsel %vm1841_vm2, %v3816_v63, -inf }
 0x30e   :  { %1873 = vmax.xlane.f32.xlu0 %v1872_v49  ;;  %1879 = vmax.xlane.f32.xlu2 %v1878_v29 }
 0x311   :  { %v3822_v45 = vpop.f32.mrf.mxu0 }
 0x312   :  { %v1887_v32 = vsel %vm1841_vm2, %v3822_v45, -inf }
 0x314   :  { %v1791_v48 = vpop.f32.mrf.mxu1  ;;  %v3824_v35 = vpop.f32.mrf.mxu2 }
 0x315   :  { %v3826_v19 = vpop.f32.mrf.mxu3  ;;  %v1881_v27 = vsel %vm1841_vm2, %v3824_v35, -inf }
 0x316   :  { %1888 = vmax.xlane.f32.xlu0 %v1887_v32  ;;  %v1884_v53 = vsel %vm1841_vm2, %v3826_v19, -inf }
 0x319   :  { %v1839_v8 = vpop.f32.mrf.mxu0 }
 0x31c   :  { %v1807_v61 = vpop.f32.mrf.mxu2 }
 0x31d   :  { %v1823_v21 = vpop.f32.mrf.mxu3 }
 0x31e   :  { %1882 = vmax.xlane.f32.xlu0 %v1881_v27 }
 0x326   :  { %1084 = vrot.lane.b32.xlu2 %v3808_v0, %s2898_s3  ;;  %1885 = vmax.xlane.f32.xlu0 %v1884_v53 }
 0x33a   :  { %1088 = vrot.lane.b32.xlu0 %v3808_v0, %s2897_s2 }
 0x33d   :  { %v1844_v56 = vpop.xlane.xlu2 %1843 }
 0x345   :  { %v1853_v1 = vpop.xlane.xlu2 %1852 }
 0x346   :  { %v1847_v14 = vpop.xlane.xlu0 %1846 }
 0x349   :  { %v1850_v24 = vpop.xlane.xlu1 %1849 }
 0x357   :  { %v1856_v7 = vpop.xlane.xlu1 %1855 }
 0x35e   :  { %v3838_v51 = vpop.xlane.xlu2 %1864 }
 0x366   :  { %v3840_v18 = vpop.xlane.xlu2 %1861 }
 0x371   :  { %v1868_v58 = vpop.xlane.xlu0 %1867 }
 0x372   :  { %v1890_v44 = vmax.f32 %v1844_v56, %v1868_v58 }
 0x374   :  { %v1898_v62 = vsub.f32 %v3775_v22, %v1890_v44  ;;  %v1922_v15 = vsub.f32 %v1725_v43, %v1890_v44 }
 0x376   :  { %v1906_v30 = vmul.f32 1.442695, %v1898_v62  ;;  %v1930_v12 = vmul.f32 1.442695, %v1922_v15  ;;  %v2240_v62 = vsel %vm2029_vm1, %v3773_v26, 0 }
 0x378   :  { %2822 = vpow2.f32 %v1906_v30 }
 0x379   :  { %2824 = vpow2.f32 %v1930_v12  ;;  %v1871_v33 = vpop.xlane.xlu2 %1870  ;;  %v1877_v59 = vpop.xlane.xlu0 %1876 }
 0x37a   :  { %v1891_v39 = vmax.f32 %v1847_v14, %v1871_v33  ;;  %v1893_v42 = vmax.f32 %v1853_v1, %v1877_v59  ;;  %v1859_v59 = vpop.xlane.xlu1 %1858 }
 0x37c   :  { %v1899_v54 = vsub.f32 %v3781_v11, %v1891_v39  ;;  %v1923_v50 = vsub.f32 %v1741_v4, %v1891_v39  ;;  %v1901_v41 = vsub.f32 %v3779_v25, %v1893_v42  ;;  %v1925_v60 = vsub.f32 %v1773_v16, %v1893_v42 }
 0x37d   :  { %v2183_v4 = vsel %vm2029_vm1, %v1296_v23, 0 }
 0x37e   :  { %v3845_v57 = vpop.eup %2822  ;;  %v1908_v9 = vmul.f32 1.442695, %v1899_v54  ;;  %v1932_v22 = vmul.f32 1.442695, %v1923_v50  ;;  %v1912_v43 = vmul.f32 1.442695, %v1901_v41 }
 0x37f   :  { %v2825_v52 = vpop.eup %2824  ;;  %v1936_v6 = vmul.f32 1.442695, %v1925_v60  ;;  %v1946_v36 = vsel %vm1841_vm2, %v3845_v57, 0.0 }
 0x380   :  { %v2018_v2 = vpack.c.bf16 %v2825_v52, %v2825_v52  ;;  %2826 = vpow2.f32 %v1908_v9  ;;  %v1970_v13 = vsel %vm1841_vm2, %v2825_v52, 0.0  ;;  %1947 = vadd.xlane.f32.xlu1 %v1946_v36 }
 0x381   :  { %2828 = vpow2.f32 %v1932_v22  ;;  %1971 = vadd.xlane.f32.xlu0 %v1970_v13  ;;  %v1880_v25 = vpop.xlane.xlu2 %1879  ;;  %v1874_v11 = vpop.xlane.xlu0 %1873 }
 0x382   :  { %2830 = vpow2.f32 %v1912_v43  ;;  %v1894_v16 = vmax.f32 %v1856_v7, %v1880_v25  ;;  %2739 = vmatmul.msk.bf16.vlgmr.msrb.gmra.mxu1 %vm1841_vm2, %v2018_v2  ;;  %v1892_v49 = vmax.f32 %v1850_v24, %v1874_v11 }
 0x383   :  { %2832 = vpow2.f32 %v1936_v6  ;;  %2192 = vmatpush.bf16.msrb.mxu1 %v2183_v4 }
 0x384   :  { %v1926_v29 = vsub.f32 %v3816_v63, %v1894_v16  ;;  %v1900_v48 = vsub.f32 %v3787_v28, %v1892_v49  ;;  %v1924_v32 = vsub.f32 %v3810_v34, %v1892_v49  ;;  %v1902_v56 = vsub.f32 %v3791_v55, %v1894_v16 }
 0x385   :  { %v2202_v55 = vsel %vm2029_vm1, %v3763_v40, 0  ;;  %v2010_v49 = vpack.c.bf16 %v3845_v57, %v3845_v57 }
 0x386   :  { %v3858_v8 = vpop.eup %2826  ;;  %v1938_v61 = vmul.f32 1.442695, %v1926_v29  ;;  %v1910_v21 = vmul.f32 1.442695, %v1900_v48  ;;  %v1934_v53 = vmul.f32 1.442695, %v1924_v32 }
 0x387   :  { %v2829_v27 = vpop.eup %2828  ;;  %v1949_v38 = vsel %vm1841_vm2, %v3858_v8, 0.0  ;;  %v1914_v44 = vmul.f32 1.442695, %v1902_v56 }
 0x388   :  { %v3862_v17 = vpop.eup %2830  ;;  %v2019_v23 = vpack.c.bf16 %v2829_v27, %v2829_v27  ;;  %v1973_v63 = vsel %vm1841_vm2, %v2829_v27, 0.0  ;;  %2834 = vpow2.f32 %v1938_v61  ;;  %v1105_v61 = vshrl.u32 %v3808_v0, 16 }
 0x389   :  { %v3866_v1 = vpop.eup %2832  ;;  %1974 = vadd.xlane.f32.xlu2 %v1973_v63  ;;  %1950 = vadd.xlane.f32.xlu0 %v1949_v38  ;;  %v1955_v28 = vsel %vm1841_vm2, %v3862_v17, 0.0  ;;  %v1889_v34 = vpop.xlane.xlu0 %1888  ;;  %2836 = vpow2.f32 %v1910_v21 }
 0x38a   :  { %v2021_v14 = vpack.c.bf16 %v3866_v1, %v3866_v1  ;;  %1956 = vadd.xlane.f32.xlu1 %v1955_v28  ;;  %2740 = vmatmul.msk.bf16.vlgmr.msrb.gmra.mxu2 %vm1841_vm2, %v2019_v23  ;;  %v1897_v58 = vmax.f32 %v3838_v51, %v1889_v34  ;;  %2838 = vpow2.f32 %v1934_v53  ;;  %v2013_v23 = vpack.c.bf16 %v3862_v17, %v3862_v17  ;;  %v1085_v56 = vpop.permute.xlu2 %1084 }
 0x38b   :  { %2211 = vmatpush.bf16.msrb.mxu2 %v2202_v55  ;;  %2840 = vpow2.f32 %v1914_v44 }
 0x38c   :  { %2742 = vmatmul.msk.bf16.vlgmr.msra.gmra.mxu0 %vm1841_vm2, %v2021_v14  ;;  %v1929_v15 = vsub.f32 %v3822_v45, %v1897_v58  ;;  %v1905_v12 = vsub.f32 %v3795_v10, %v1897_v58  ;;  %v2221_v10 = vsel %vm2029_vm1, %v1302_v46, 0  ;;  %v1111_v14 = vshrl.u32 %v1085_v56, 16 }
 0x38d   :  { %2249 = vmatpush.bf16.msra.mxu0 %v2240_v62 }
 0x38e   :  { %v1944_v24 = vmul.f32 1.442695, %v1929_v15  ;;  %v2835_v30 = vpop.eup %2834  ;;  %v1920_v50 = vmul.f32 1.442695, %v1905_v12  ;;  %v2011_v15 = vpack.c.bf16 %v3858_v8, %v3858_v8 }
 0x38f   :  { %v3881_v33 = vpop.eup %2836  ;;  %v2022_v40 = vpack.c.bf16 %v2835_v30, %v2835_v30  ;;  %v1982_v37 = vsel %vm1841_vm2, %v2835_v30, 0.0 }
 0x390   :  { %v2839_v51 = vpop.eup %2838  ;;  %2842 = vpow2.f32 %v1944_v24  ;;  %v1952_v39 = vsel %vm1841_vm2, %v3881_v33, 0.0  ;;  %v1979_v24 = vsel %vm1841_vm2, %v3866_v1, 0.0 }
 0x391   :  { %v1883_v42 = vpop.xlane.xlu0 %1882  ;;  %v2020_v54 = vpack.c.bf16 %v2839_v51, %v2839_v51  ;;  %v1976_v26 = vsel %vm1841_vm2, %v2839_v51, 0.0  ;;  %1953 = vadd.xlane.f32.xlu2 %v1952_v39  ;;  %v3894_v9 = vpop.eup %2840  ;;  %2844 = vpow2.f32 %v1920_v50 }
 0x392   :  { %2743 = vmatmul.msk.bf16.vlgmr.msra.gmra.mxu1 %vm1841_vm2, %v2022_v40  ;;  %v1895_v45 = vmax.f32 %v1859_v59, %v1883_v42  ;;  %1977 = vadd.xlane.f32.xlu1 %v1976_v26  ;;  %v1958_v36 = vsel %vm1841_vm2, %v3894_v9, 0.0 }
 0x393   :  { %2741 = vmatmul.msk.bf16.vlgmr.msrb.gmra.mxu3 %vm1841_vm2, %v2020_v54 }
 0x394   :  { %v1903_v41 = vsub.f32 %v3799_v5, %v1895_v45  ;;  %v1927_v60 = vsub.f32 %v3824_v35, %v1895_v45  ;;  %2230 = vmatpush.bf16.msrb.mxu3 %v2221_v10 }
 0x396   :  { %v1916_v22 = vmul.f32 1.442695, %v1903_v41  ;;  %v1940_v43 = vmul.f32 1.442695, %v1927_v60  ;;  %v2843_v52 = vpop.eup %2842 }
 0x397   :  { %v2025_v6 = vpack.c.bf16 %v2843_v52, %v2843_v52  ;;  %v3903_v7 = vpop.eup %2844  ;;  %v1991_v63 = vsel %vm1841_vm2, %v2843_v52, 0.0 }
 0x398   :  { %2846 = vpow2.f32 %v1916_v22 }
 0x399   :  { %2848 = vpow2.f32 %v1940_v43  ;;  %v1886_v31 = vpop.xlane.xlu0 %1885  ;;  %1959 = vadd.xlane.f32.xlu2 %v1958_v36  ;;  %v2012_v43 = vpack.c.bf16 %v3881_v33, %v3881_v33 }
 0x39a   :  { %v1896_v46 = vmax.f32 %v3840_v18, %v1886_v31  ;;  %1983 = vadd.xlane.f32.xlu1 %v1982_v37 }
 0x39c   :  { %2746 = vmatmul.msk.bf16.vlgmr.msrb.gmra.mxu0 %vm1841_vm2, %v2025_v6  ;;  %v1904_v5 = vsub.f32 %v3803_v47, %v1896_v46  ;;  %v1928_v35 = vsub.f32 %v3826_v19, %v1896_v46  ;;  %v1967_v47 = vsel %vm1841_vm2, %v3903_v7, 0.0  ;;  %v1081_v19 = vpop.permute.xlu1 %1080 }
 0x39d   :  { %v1106_v29 = vshrl.u32 %v1081_v19, 16  ;;  %v1104_v57 = vpack.i.b16 %v1081_v19, %v3808_v0 }
 0x39e   :  { %v3905_v2 = vpop.eup %2846  ;;  %v1918_v13 = vmul.f32 1.442695, %v1904_v5  ;;  %v1942_v25 = vmul.f32 1.442695, %v1928_v35 }
 0x39f   :  { %v2849_v11 = vpop.eup %2848  ;;  %v1961_v18 = vsel %vm1841_vm2, %v3905_v2, 0.0  ;;  %v1107_v38 = vpack.i.b16 %v1106_v29, %v1105_v61  ;;  %v1170_v28 = vperm.slane %v1104_v57, %v3129_v3 }
 0x3a0   :  { %v2023_v16 = vpack.c.bf16 %v2849_v11, %v2849_v11  ;;  %2850 = vpow2.f32 %v1918_v13  ;;  %v1985_v4 = vsel %vm1841_vm2, %v2849_v11, 0.0 }
 0x3a1   :  { %2852 = vpow2.f32 %v1942_v25  ;;  %1986 = vadd.xlane.f32.xlu0 %v1985_v4  ;;  %1968 = vadd.xlane.f32.xlu2 %v1967_v47  ;;  %v1196_v34 = vperm.slane %v1107_v38, %v3129_v3  ;;  %v1178_v44 = vrot.slane %v1170_v28, 4 }
 0x3a2   :  { %2744 = vmatmul.msk.bf16.vlgmr.msra.gmra.mxu2 %vm1841_vm2, %v2023_v16  ;;  %1962 = vadd.xlane.f32.xlu1 %v1961_v18 }
 0x3a3   :  { %2747 = vmatmul.msk.bf16.vlgmr.msrb.gmra.mxu1 %vm1841_vm2, %v2010_v49  ;;  %v1204_v30 = vrot.slane %v1196_v34, 4 }
 0x3a6   :  { %v3916_v48 = vpop.eup %2850 }
 0x3a7   :  { %v2853_v32 = vpop.eup %2852  ;;  %v1964_v21 = vsel %vm1841_vm2, %v3916_v48, 0.0 }
 0x3a8   :  { %v2024_v27 = vpack.c.bf16 %v2853_v32, %v2853_v32  ;;  %v1988_v53 = vsel %vm1841_vm2, %v2853_v32, 0.0 }
 0x3a9   :  { %1965 = vadd.xlane.f32.xlu0 %v1964_v21  ;;  %1989 = vadd.xlane.f32.xlu2 %v1988_v53 }
 0x3aa   :  { %2745 = vmatmul.msk.bf16.vlgmr.msra.gmra.mxu3 %vm1841_vm2, %v2024_v27  ;;  %1992 = vadd.xlane.f32.xlu1 %v1991_v63 }
 0x3ac   :  { %2750 = vmatmul.msk.bf16.vlgmr.msra.gmra.mxu0 %vm1841_vm2, %v2013_v23  ;;  %v1089_v0 = vpop.permute.xlu0 %1088 }
 0x3ad   :  { %v1110_v55 = vpack.i.b16 %v1089_v0, %v1085_v56  ;;  %v1112_v58 = vshrl.u32 %v1089_v0, 16 }
 0x3af   :  { %v1113_v62 = vpack.i.b16 %v1112_v58, %v1111_v14  ;;  %v1175_v17 = vperm.slane %v1110_v55, %v3129_v3 }
 0x3b1   :  { %v1176_v12 = vrot.slane %v1175_v17, 4  ;;  %v1179_v40 = vsel %vm398_vm14, %v1175_v17, %v1178_v44  ;;  %v1201_v51 = vperm.slane %v1113_v62, %v3129_v3  ;;  %1980 = vadd.xlane.f32.xlu0 %v1979_v24  ;;  %v2015_v44 = vpack.c.bf16 %v3905_v2, %v3905_v2 }
 0x3b2   :  { %v1187_v59 = vperm.slane %v1179_v40, %v3137_v20  ;;  %2748 = vmatmul.msk.bf16.vlgmr.msrb.gmra.mxu2 %vm1841_vm2, %v2011_v15  ;;  %v2016_v62 = vpack.c.bf16 %v3916_v48, %v3916_v48 }
 0x3b3   :  { %v1177_v39 = vsel %vm398_vm14, %v1176_v12, %v1170_v28  ;;  %v1202_v42 = vrot.slane %v1201_v51, 4  ;;  %v1205_v54 = vsel %vm398_vm14, %v1201_v51, %v1204_v30 }
 0x3b4   :  { %v1183_v8 = vperm.slane %v1177_v39, %v3137_v20  ;;  %v1190_v26 = vrot.slane %v1187_v59, 4  ;;  %v1213_v1 = vperm.slane %v1205_v54, %v3137_v20 }
 0x3b5   :  { %v1203_v45 = vsel %vm398_vm14, %v1202_v42, %v1196_v34  ;;  %v2014_v34 = vpack.c.bf16 %v3894_v9, %v3894_v9  ;;  %v2017_v9 = vpack.c.bf16 %v3903_v7, %v3903_v7 }
 0x3b6   :  { %v1188_v50 = vrot.slane %v1183_v8, 4  ;;  %v1191_v10 = vsel %vm398_vm14, 0, %v1190_v26  ;;  %v1209_v41 = vperm.slane %v1203_v45, %v3137_v20  ;;  %v1216_v60 = vrot.slane %v1213_v1, 4 }
 0x3b7   :  { %v1261_v22 = vrot.slane %v1191_v10, 4  ;;  %v1256_v31 = vsel %vm398_vm14, %v1190_v26, %v1183_v8 }
 0x3b8   :  { %v1189_v52 = vsel %vm398_vm14, 0, %v1188_v50  ;;  %v1214_v6 = vrot.slane %v1209_v41, 4  ;;  %v1217_v36 = vsel %vm398_vm14, 0, %v1216_v60  ;;  %v1275_v13 = vsel %vm398_vm14, %v1216_v60, %v1209_v41 }
 0x3b9   :  { %v1262_v37 = vsel %vm398_vm14, %v1261_v22, %v1189_v52  ;;  %v1280_v46 = vrot.slane %v1217_v36, 4  ;;  %v1260_v25 = vperm.slane %v1256_v31, %v3129_v3  ;;  %v1279_v18 = vperm.slane %v1275_v13, %v3129_v3 }
 0x3ba   :  { %v1215_v5 = vsel %vm398_vm14, 0, %v1214_v6  ;;  %2749 = vmatmul.msk.bf16.vlgmr.msrb.gmra.mxu3 %vm1841_vm2, %v2012_v43  ;;  %v1266_v35 = vperm.slane %v1262_v37, %v3129_v3 }
 0x3bb   :  { %v1281_v33 = vsel %vm398_vm14, %v1280_v46, %v1215_v5 }
 0x3bc   :  { %v1267_v11 = vrot.slane %v1266_v35, 4  ;;  %v1285_v16 = vperm.slane %v1281_v33, %v3129_v3 }
 0x3be   :  { %v1268_v4 = vsel %vm398_vm14, %v1267_v11, %v1260_v25  ;;  %v1286_v49 = vrot.slane %v1285_v16, 4 }
 0x3bf   :  { %v1272_v47 = vperm.slane %v1268_v4, %v3137_v20 }
 0x3c0   :  { %v1287_v19 = vsel %vm398_vm14, %v1286_v49, %v1279_v18 }
 0x3c1   :  { %v1291_v29 = vperm.slane %v1287_v19, %v3137_v20  ;;  %v1273_v32 = vrot.slane %v1272_v47, 4  ;;  %v1309_v61 = vshrl.u32 %v1272_v47, 16 }
 0x3c3   :  { %v1308_v57 = vpack.i.b16 %v1291_v29, %v1272_v47  ;;  %v1310_v21 = vshrl.u32 %v1291_v29, 16  ;;  %v1274_v27 = vsel %vm398_vm14, 0, %v1273_v32  ;;  %v1292_v53 = vrot.slane %v1291_v29, 4 }
 0x3c4   :  { %v1315_v28 = vshrl.u32 %v1274_v27, 16 }
 0x3c5   :  { %v2259_v38 = vsel %vm2029_vm1, %v1308_v57, 0  ;;  %v1311_v23 = vpack.i.b16 %v1310_v21, %v1309_v61  ;;  %v1293_v56 = vsel %vm398_vm14, 0, %v1292_v53 }
 0x3c6   :  { %2268 = vmatpush.bf16.msra.mxu1 %v2259_v38  ;;  %v1314_v63 = vpack.i.b16 %v1293_v56, %v1274_v27  ;;  %v1316_v0 = vshrl.u32 %v1293_v56, 16 }
 0x3c7   :  { %v2278_v14 = vsel %vm2029_vm1, %v1311_v23, 0 }
 0x3c8   :  { %2287 = vmatpush.bf16.msra.mxu2 %v2278_v14  ;;  %v2297_v55 = vsel %vm2029_vm1, %v1314_v63, 0  ;;  %v1317_v58 = vpack.i.b16 %v1316_v0, %v1315_v28 }
 0x3c9   :  { %2751 = vmatmul.msk.bf16.vlgmr.msra.gmra.mxu1 %vm1841_vm2, %v2014_v34  ;;  %2306 = vmatpush.bf16.msra.mxu3 %v2297_v55 }
 0x3ca   :  { %v2316_v17 = vsel %vm2029_vm1, %v1317_v58, 0 }
 0x3cb   :  { %2752 = vmatmul.msk.bf16.vlgmr.msra.gmra.mxu2 %vm1841_vm2, %v2015_v44  ;;  %2325 = vmatpush.bf16.msrb.mxu0 %v2316_v17 }
 0x3cc   :  { %2753 = vmatmul.msk.bf16.vlgmr.msra.gmra.mxu3 %vm1841_vm2, %v2016_v62 }
 0x3ce   :  { %2754 = vmatmul.msk.bf16.vlgmr.msrb.gmra.mxu0 %vm1841_vm2, %v2017_v9 }
 0x3f3   :  { %v1948_v40 = vpop.xlane.xlu1 %1947 }
 0x3f4   :  { %v1972_v2 = vpop.xlane.xlu0 %1971 }
 0x3f5   :  { %v1994_v6 = vadd.f32 %v1972_v2, %v1948_v40 }
 0x3f7   :  { %2854 = vrcp.f32 %v1994_v6 }
 0x3fc   :  { %v1951_v48 = vpop.xlane.xlu0 %1950  ;;  %v1975_v1 = vpop.xlane.xlu2 %1974 }
 0x3fd   :  { %v1957_v8 = vpop.xlane.xlu1 %1956  ;;  %v1995_v46 = vadd.f32 %v1975_v1, %v1951_v48  ;;  %v2855_v16 = vpop.eup %2854 }
 0x3ff   :  { %v2042_v15 = vpop.f32.mrf.mxu1  ;;  %2856 = vrcp.f32 %v1995_v46 }
 0x404   :  { %v1954_v43 = vpop.xlane.xlu2 %1953 }
 0x405   :  { %v1978_v41 = vpop.xlane.xlu1 %1977  ;;  %v2857_v32 = vpop.eup %2856 }
 0x406   :  { %v1996_v18 = vadd.f32 %v1978_v41, %v1954_v43 }
 0x407   :  { %v2044_v24 = vpop.f32.mrf.mxu1 }
 0x409   :  { %v2099_v30 = vpop.f32.mrf.mxu0 }
 0x40c   :  { %v1960_v33 = vpop.xlane.xlu2 %1959 }
 0x40d   :  { %v2061_v12 = vpop.f32.mrf.mxu2  ;;  %v1984_v31 = vpop.xlane.xlu1 %1983 }
 0x40e   :  { %v1998_v9 = vadd.f32 %v1984_v31, %v1960_v33 }
 0x40f   :  { %v3982_v51 = vpop.f32.mrf.mxu1 }
 0x411   :  { %v2101_v59 = vpop.f32.mrf.mxu0 }
 0x414   :  { %v3984_v26 = vpop.xlane.xlu0 %1986  ;;  %v1969_v27 = vpop.xlane.xlu2 %1968 }
 0x415   :  { %v2063_v39 = vpop.f32.mrf.mxu2  ;;  %v1963_v19 = vpop.xlane.xlu1 %1962 }
 0x416   :  { %v2080_v42 = vpop.f32.mrf.mxu3 }
 0x417   :  { %v2120_v54 = vpop.f32.mrf.mxu1 }
 0x418   :  { %v1999_v54 = vadd.f32 %v3984_v26, %v1963_v19 }
 0x419   :  { %v3986_v7 = vpop.f32.mrf.mxu0 }
 0x41c   :  { %v1966_v60 = vpop.xlane.xlu0 %1965 }
 0x41d   :  { %v1993_v44 = vpop.xlane.xlu1 %1992 }
 0x41e   :  { %v2082_v45 = vpop.f32.mrf.mxu3  ;;  %v2001_v24 = vadd.f32 %v1993_v44, %v1969_v27 }
 0x420   :  { %v2194_v50 = vpop.f32.mrf.mxu1 }
 0x421   :  { %v2177_v10 = vpop.f32.mrf.mxu0  ;;  %v2195_v25 = vadd.f32 %v2194_v50, %v2042_v15 }
 0x423   :  { %v2331_v4 = vmul.f32 %v2855_v16, %v2195_v25 }
 0x424   :  { %v1981_v37 = vpop.xlane.xlu0 %1980 }
 0x425   :  { %v3988_v22 = vpop.f32.mrf.mxu2  ;;  %v1997_v13 = vadd.f32 %v1981_v37, %v1957_v8  ;;  %v2339_v61 = vpack.c.bf16 %v2331_v4, %v2331_v4 }
 0x427   :  { %2858 = vrcp.f32 %v1997_v13  ;;  %v2350_v23 = vshrl.u32 %v2339_v61, 16 }
 0x428   :  { %v2196_v52 = vpop.f32.mrf.mxu1  ;;  %2860 = vrcp.f32 %v1996_v18 }
 0x429   :  { %v2251_v36 = vpop.f32.mrf.mxu0  ;;  %2862 = vrcp.f32 %v1998_v9 }
 0x42a   :  { %v2252_v53 = vadd.f32 %v2251_v36, %v2099_v30  ;;  %2864 = vrcp.f32 %v2001_v24 }
 0x42b   :  { %2866 = vrcp.f32 %v1999_v54 }
 0x42d   :  { %v2139_v5 = vpop.f32.mrf.mxu2  ;;  %v3990_v35 = vpop.f32.mrf.mxu3 }
 0x42e   :  { %v2859_v21 = vpop.eup %2858 }
 0x42f   :  { %v2334_v56 = vmul.f32 %v2859_v21, %v2252_v53  ;;  %v2861_v58 = vpop.eup %2860 }
 0x430   :  { %v2863_v46 = vpop.eup %2862 }
 0x431   :  { %v2253_v11 = vpop.f32.mrf.mxu0  ;;  %v2342_v62 = vpack.c.bf16 %v2334_v56, %v2334_v56  ;;  %v2865_v16 = vpop.eup %2864 }
 0x433   :  { %v2357_v40 = vshrl.u32 %v2342_v62, 16 }
 0x435   :  { %v2158_v49 = vpop.f32.mrf.mxu3  ;;  %v2213_v47 = vpop.f32.mrf.mxu2 }
 0x436   :  { %v2214_v29 = vadd.f32 %v2213_v47, %v2061_v12  ;;  %v1990_v12 = vpop.xlane.xlu2 %1989 }
 0x437   :  { %v2000_v50 = vadd.f32 %v1990_v12, %v1966_v60 }
 0x438   :  { %v2332_v57 = vmul.f32 %v2857_v32, %v2214_v29 }
 0x439   :  { %2868 = vrcp.f32 %v2000_v50 }
 0x43a   :  { %v2340_v38 = vpack.c.bf16 %v2332_v57, %v2332_v57 }
 0x43c   :  { %v2349_v63 = vpack.i.b16 %v2340_v38, %v2339_v61  ;;  %v2351_v28 = vshrl.u32 %v2340_v38, 16 }
 0x43d   :  { %v2215_v0 = vpop.f32.mrf.mxu2  ;;  %v2232_v34 = vpop.f32.mrf.mxu3 }
 0x43e   :  { %v2352_v14 = vpack.i.b16 %v2351_v28, %v2350_v23  ;;  %v2233_v55 = vadd.f32 %v2232_v34, %v2080_v42  ;;  %v2375_v15 = vperm.slane %v2349_v63, %v3129_v3  ;;  %v2867_v23 = vpop.eup %2866 }
 0x43f   :  { %v2869_v34 = vpop.eup %2868 }
 0x440   :  { %v2333_v17 = vmul.f32 %v2861_v58, %v2233_v55  ;;  %v2401_v30 = vperm.slane %v2352_v14, %v3129_v3  ;;  %v2383_v42 = vrot.slane %v2375_v15, 4 }
 0x442   :  { %v2341_v2 = vpack.c.bf16 %v2333_v17, %v2333_v17  ;;  %v2409_v10 = vrot.slane %v2401_v30, 4 }
 0x444   :  { %v2355_v48 = vpack.i.b16 %v2342_v62, %v2341_v2  ;;  %v2356_v59 = vshrl.u32 %v2341_v2, 16 }
 0x445   :  { %v2234_v39 = vpop.f32.mrf.mxu3 }
 0x446   :  { %v2358_v8 = vpack.i.b16 %v2357_v40, %v2356_v59  ;;  %v2380_v1 = vperm.slane %v2355_v48, %v3129_v3  ;;  %v2270_v45 = vpop.f32.mrf.mxu1 }
 0x447   :  { %v2271_v6 = vadd.f32 %v2270_v45, %v3982_v51 }
 0x448   :  { %v2381_v41 = vrot.slane %v2380_v1, 4  ;;  %v2384_v43 = vsel %vm398_vm14, %v2380_v1, %v2383_v42  ;;  %v2406_v52 = vperm.slane %v2358_v8, %v3129_v3 }
 0x449   :  { %v2392_v36 = vperm.slane %v2384_v43, %v3137_v20  ;;  %v2335_v11 = vmul.f32 %v2863_v46, %v2271_v6 }
 0x44a   :  { %v2382_v26 = vsel %vm398_vm14, %v2381_v41, %v2375_v15  ;;  %v2407_v31 = vrot.slane %v2406_v52, 4  ;;  %v2410_v37 = vsel %vm398_vm14, %v2406_v52, %v2409_v10 }
 0x44b   :  { %v2388_v60 = vperm.slane %v2382_v26, %v3137_v20  ;;  %v2395_v5 = vrot.slane %v2392_v36, 4  ;;  %v2418_v13 = vperm.slane %v2410_v37, %v3137_v20  ;;  %v2327_v33 = vpop.f32.mrf.mxu0  ;;  %v2343_v28 = vpack.c.bf16 %v2335_v11, %v2335_v11 }
 0x44c   :  { %v2408_v25 = vsel %vm398_vm14, %v2407_v31, %v2401_v30  ;;  %v2328_v51 = vadd.f32 %v2327_v33, %v3986_v7 }
 0x44d   :  { %v2393_v4 = vrot.slane %v2388_v60, 4  ;;  %v2396_v18 = vsel %vm398_vm14, 0, %v2395_v5  ;;  %v2414_v49 = vperm.slane %v2408_v25, %v3137_v20  ;;  %v2421_v47 = vrot.slane %v2418_v13, 4 }
 0x44e   :  { %v2475_v19 = vsel %vm398_vm14, %v2395_v5, %v2388_v60  ;;  %v2480_v29 = vrot.slane %v2396_v18, 4  ;;  %v2338_v32 = vmul.f32 %v2865_v16, %v2328_v51  ;;  %v2272_v61 = vpop.f32.mrf.mxu1  ;;  %v2289_v57 = vpop.f32.mrf.mxu2 }
 0x44f   :  { %v2394_v21 = vsel %vm398_vm14, 0, %v2393_v4  ;;  %v2419_v27 = vrot.slane %v2414_v49, 4  ;;  %v2422_v53 = vsel %vm398_vm14, 0, %v2421_v47  ;;  %v2290_v7 = vadd.f32 %v2289_v57, %v3988_v22  ;;  %v2308_v38 = vpop.f32.mrf.mxu3 }
 0x450   :  { %v2481_v56 = vsel %vm398_vm14, %v2480_v29, %v2394_v21  ;;  %v2499_v63 = vrot.slane %v2422_v53, 4  ;;  %v2309_v0 = vadd.f32 %v2308_v38, %v3990_v35  ;;  %v2346_v44 = vpack.c.bf16 %v2338_v32, %v2338_v32 }
 0x451   :  { %v2420_v14 = vsel %vm398_vm14, 0, %v2419_v27  ;;  %v2336_v55 = vmul.f32 %v2867_v23, %v2290_v7  ;;  %v2485_v58 = vperm.slane %v2481_v56, %v3129_v3  ;;  %v2494_v17 = vsel %vm398_vm14, %v2421_v47, %v2414_v49 }
 0x452   :  { %v2337_v62 = vmul.f32 %v2869_v34, %v2309_v0  ;;  %v2500_v22 = vsel %vm398_vm14, %v2499_v63, %v2420_v14  ;;  %v2479_v2 = vperm.slane %v2475_v19, %v3129_v3  ;;  %v2362_v35 = vshrl.u32 %v2343_v28, 16 }
 0x453   :  { %v2344_v9 = vpack.c.bf16 %v2336_v55, %v2336_v55  ;;  %v2329_v15 = vpop.f32.mrf.mxu0  ;;  %v2486_v24 = vrot.slane %v2485_v58, 4  ;;  %v2504_v30 = vperm.slane %v2500_v22, %v3129_v3  ;;  %v2498_v40 = vperm.slane %v2494_v17, %v3129_v3 }
 0x454   :  { %v2345_v12 = vpack.c.bf16 %v2337_v62, %v2337_v62  ;;  %v2369_v42 = vshrl.u32 %v2346_v44, 16 }
 0x455   :  { %v2361_v48 = vpack.i.b16 %v2344_v9, %v2343_v28  ;;  %v2363_v59 = vshrl.u32 %v2344_v9, 16  ;;  %v2487_v39 = vsel %vm398_vm14, %v2486_v24, %v2479_v2  ;;  %v2505_v54 = vrot.slane %v2504_v30, 4 }
 0x456   :  { %v2367_v8 = vpack.i.b16 %v2346_v44, %v2345_v12  ;;  %v2368_v1 = vshrl.u32 %v2345_v12, 16  ;;  %v2291_v45 = vpop.f32.mrf.mxu2  ;;  %v4023_v50 = vperm.slane %v2487_v39, %v3137_v20 }
 0x457   :  { %v2364_v10 = vpack.i.b16 %v2363_v59, %v2362_v35  ;;  %v2427_v41 = vperm.slane %v2361_v48, %v3129_v3  ;;  %v2310_v43 = vpop.f32.mrf.mxu3  ;;  %v2506_v52 = vsel %vm398_vm14, %v2505_v54, %v2498_v40 }
 0x458   :  { %v2370_v6 = vpack.i.b16 %v2369_v42, %v2368_v1  ;;  %v2432_v36 = vperm.slane %v2367_v8, %v3129_v3  ;;  %v2510_v26 = vperm.slane %v2506_v52, %v3137_v20  ;;  %v2554_v46 = vshrl.u32 %v4023_v50, 16 }
 0x459   :  { %v2435_v31 = vrot.slane %v2427_v41, 4  ;;  %v2453_v37 = vperm.slane %v2364_v10, %v3129_v3  ;;  %v2492_v60 = vrot.slane %v4023_v50, 4 }
 0x45a   :  { %v2433_v5 = vrot.slane %v2432_v36, 4  ;;  %v2458_v13 = vperm.slane %v2370_v6, %v3129_v3  ;;  %v2555_v33 = vshrl.u32 %v2510_v26, 16  ;;  %v2511_v25 = vrot.slane %v2510_v26, 4 }
 0x45b   :  { %v2461_v11 = vrot.slane %v2453_v37, 4  ;;  %v2436_v51 = vsel %vm398_vm14, %v2432_v36, %v2435_v31  ;;  %v2553_v16 = vpack.i.b16 %v2510_v26, %v4023_v50  ;;  %v2493_v32 = vsel %vm398_vm14, 0, %v2492_v60 }
 0x45c   :  { %v2434_v4 = vsel %vm398_vm14, %v2433_v5, %v2427_v41  ;;  %v2444_v18 = vperm.slane %v2436_v51, %v3137_v20  ;;  %v2459_v49 = vrot.slane %v2458_v13, 4  ;;  %v2556_v47 = vpack.i.b16 %v2555_v33, %v2554_v46 }
 0x45d   :  { %v2440_v19 = vperm.slane %v2434_v4, %v3137_v20  ;;  %v2462_v29 = vsel %vm398_vm14, %v2458_v13, %v2461_v11  ;;  %v2512_v61 = vsel %vm398_vm14, 0, %v2511_v25  ;;  %v2560_v28 = vshrl.u32 %v2493_v32, 16  ;;  %v2786_v4 = vld [vmem:[%s4090_s9 + $0x10] sm:$0xff] }
 0x45e   :  { %v2447_v57 = vrot.slane %v2444_v18, 4  ;;  %v2460_v21 = vsel %vm398_vm14, %v2459_v49, %v2453_v37  ;;  %v2470_v27 = vperm.slane %v2462_v29, %v3137_v20  ;;  %v2559_v38 = vpack.i.b16 %v2512_v61, %v2493_v32  ;;  %v2785_v18 = vld [vmem:[%s4090_s9 + $0x8] sm:$0xff]  ;;  %v2784_v49 = vld [vmem:[%s4090_s9] sm:$0xff] }
 0x45f   :  { %v2445_v53 = vrot.slane %v2440_v19, 4  ;;  %v2466_v7 = vperm.slane %v2460_v21, %v3137_v20  ;;  %v2561_v23 = vshrl.u32 %v2512_v61, 16  ;;  %v2575_v6 = vunpack.c.l.b16 %v2553_v16  ;;  %v2787_v16 = vld [vmem:[%s4090_s9 + $0x18] sm:$0xff]  ;;  %s2658_s9 = sshll.u32 %s4091_s10, 4  ;;  %s2659_s9 = int_to_ptr.hbm [resolvable:$true] %s2658_s9 }
 0x460   :  { %v2448_v56 = vsel %vm398_vm14, 0, %v2447_v57  ;;  %v2473_v63 = vrot.slane %v2470_v27, 4  ;;  %v2513_v62 = vsel %vm398_vm14, %v2447_v57, %v2440_v19  ;;  %v2578_v31 = vunpack.c.l.b16 %v2556_v47  ;;  %2640 = vmatpush.bf16.msrb.mxu1 %v2787_v16 }
 0x461   :  { %v2446_v0 = vsel %vm398_vm14, 0, %v2445_v53  ;;  %v2471_v34 = vrot.slane %v2466_v7, 4  ;;  %v2518_v14 = vrot.slane %v2448_v56, 4  ;;  %v2562_v58 = vpack.i.b16 %v2561_v23, %v2560_v28 }
 0x462   :  { %v2474_v55 = vsel %vm398_vm14, 0, %v2473_v63  ;;  %v2532_v15 = vsel %vm398_vm14, %v2473_v63, %v2466_v7  ;;  %v2517_v24 = vperm.slane %v2513_v62, %v3129_v3  ;;  %v2583_v60 = vunpack.c.l.b16 %v2559_v38 }
 0x463   :  { %v2472_v44 = vsel %vm398_vm14, 0, %v2471_v34  ;;  %v2519_v17 = vsel %vm398_vm14, %v2518_v14, %v2446_v0  ;;  %v2537_v22 = vrot.slane %v2474_v55, 4  ;;  %v2536_v40 = vperm.slane %v2532_v15, %v3129_v3 }
 0x464   :  { %v2523_v9 = vperm.slane %v2519_v17, %v3129_v3  ;;  %v2588_v25 = vunpack.c.l.b16 %v2562_v58  ;;  %2641 = vmatpush.bf16.msrb.mxu1 %v2786_v4 }
 0x465   :  { %v2538_v2 = vsel %vm398_vm14, %v2537_v22, %v2472_v44 }
 0x466   :  { %v2524_v30 = vrot.slane %v2523_v9, 4  ;;  %v2542_v35 = vperm.slane %v2538_v2, %v3129_v3 }
 0x468   :  { %v2525_v12 = vsel %vm398_vm14, %v2524_v30, %v2517_v24  ;;  %v2543_v48 = vrot.slane %v2542_v35, 4  ;;  %2642 = vmatpush.bf16.msrb.mxu1 %v2785_v18 }
 0x469   :  { %v2529_v59 = vperm.slane %v2525_v12, %v3137_v20 }
 0x46a   :  { %v2544_v39 = vsel %vm398_vm14, %v2543_v48, %v2536_v40 }
 0x46b   :  { %v2548_v54 = vperm.slane %v2544_v39, %v3137_v20  ;;  %v2530_v42 = vrot.slane %v2529_v59, 4  ;;  %v2566_v8 = vshrl.u32 %v2529_v59, 16 }
 0x46c   :  { %2643 = vmatpush.bf16.msrb.mxu1 %v2784_v49 }
 0x46d   :  { %v2567_v1 = vshrl.u32 %v2548_v54, 16  ;;  %v2531_v45 = vsel %vm398_vm14, 0, %v2530_v42  ;;  %v2549_v50 = vrot.slane %v2548_v54, 4  ;;  %v2565_v10 = vpack.i.b16 %v2548_v54, %v2529_v59 }
 0x46e   :  { %v2572_v36 = vshrl.u32 %v2531_v45, 16 }
 0x46f   :  { %v2568_v41 = vpack.i.b16 %v2567_v1, %v2566_v8  ;;  %v2550_v43 = vsel %vm398_vm14, 0, %v2549_v50  ;;  %v2576_v52 = vunpack.c.l.b16 %v2565_v10 }
 0x470   :  { %v2571_v3 = vpack.i.b16 %v2550_v43, %v2531_v45  ;;  %v2573_v26 = vshrl.u32 %v2550_v43, 16 }
 0x471   :  { %v2579_v37 = vunpack.c.l.b16 %v2568_v41  ;;  %v2577_v46 = vpack.c.b16 %v2576_v52, %v2575_v6 }
 0x472   :  { %v2584_v20 = vunpack.c.l.b16 %v2571_v3  ;;  %v2574_v5 = vpack.i.b16 %v2573_v26, %v2572_v36 }
 0x473   :  { %v2580_v13 = vpack.c.b16 %v2579_v37, %v2578_v31 }
 0x474   :  { %v2585_v33 = vpack.c.b16 %v2584_v20, %v2583_v60  ;;  %v2589_v11 = vunpack.c.l.b16 %v2574_v5 }
 0x475   :  { %2581 = vrot.lane.b32.xlu0 %v2580_v13, %s2902_s21 }
 0x476   :  { %2586 = vrot.lane.b32.xlu2 %v2585_v33, %s2903_s22  ;;  %v2590_v51 = vpack.c.b16 %v2589_v11, %v2588_v25 }
 0x478   :  { %2591 = vrot.lane.b32.xlu1 %v2590_v51, %s2904_s23 }
 0x4d0   :  { %v2587_v19 = vpop.permute.xlu2 %2586 }
 0x4e7   :  { %v2582_v47 = vpop.permute.xlu0 %2581 }
 0x4e8   :  { %v2595_v29 = vsel %vm1560_vm15, %v2577_v46, %v2582_v47 }
 0x4e9   :  { %v2598_v32 = vsel %vm2596_vm3, %v2595_v29, %v2587_v19 }
 0x4ea   :  { %v2592_v61 = vpop.permute.xlu1 %2591 }
 0x4eb   :  { %v2601_v57 = vsel %vm2599_vm4, %v2598_v32, %v2592_v61 }
 0x4ec   :  { %2771 = vmatmul.msk.bf16.vlgmr.msrb.gmra.mxu1 %vm47_vm0, %v2601_v57 }
 0x569   :  { %v2645_v21 = vpop.f32.mrf.mxu1 }
 0x56a   :  { %2650 = vst.msk [vmem:[#allocation2] sm:$0xff] %vm47_vm0, %v2645_v21 }
 0x571   :  { %v2647_v27 = vpop.f32.mrf.mxu1 }
 0x572   :  { %2651 = vst.msk [vmem:[#allocation2 + $0x8] sm:$0xff] %vm47_vm0, %v2647_v27 }
 0x573   :  { %2664 = dma.vmem_to_hbm [thread:$0]  %s2657_s13, 256, %s2659_s9, [#allocation3], %s2906_s16, %s2906_s16, %s2907_s0  }
 0x574   :  { %2894 = dma.done.wait [#allocation3], 256  }
 0x575   :  { %2895 = vsyncadd [#allocation3], 4294967040 }
 0x576   :  { %2669 = vsyncpa [#allocation3], 1 }

</bundles_post_ra>
